<compile_context>
chip_gen: v5e
topology: v5e:2x2
jax: 0.10.0
libtpu: 0.0.40
codegen_flags: <defaults>
</compile_context>

<pallas_src>
import functools

import jax
import jax.numpy as jnp
from jax.experimental import pallas as pl
from jax.experimental.pallas import tpu as pltpu

_EPS = 1e-5
_VMEM_LIMIT = 32 * 1024 * 1024


def _round_up(x, m):
    return (x + m - 1) // m * m


# ---------------------------------------------------------------------------
# The single fused SKunit kernel (one grid step per sample, CHW orientation)
# ---------------------------------------------------------------------------
def _skunit_kernel(x_ref, w1_ref, t1_ref, dw3_ref, tb0_ref, dw5_ref, tb1_ref,
                   fca_ref, fcb_ref, s2_ref, t2_ref, wc3_ref, wsc_ref, b3_ref,
                   mask_ref, o_ref, xf_ref, *, H, W, OFF):
    HW = H * W
    C = w1_ref.shape[0]          # planes
    P = xf_ref.shape[1]          # OFF + HW + OFF

    x2 = x_ref[0]                # (Cin, HW)  lane-dense input sample

    # ---- conv1 (1x1) with BN1 scale folded into weights, + shift + ReLU ----
    out1 = jnp.dot(w1_ref[...], x2, preferred_element_type=jnp.float32)
    out1 = jnp.maximum(out1 + t1_ref[...], 0.0)                    # (C, HW)

    # ---- stage into lane-padded scratch; zero ONLY the halo strips ---------
    # (must be re-zeroed every step: the scratch persists across grid steps)
    xf_ref[:, :OFF] = jnp.zeros((C, OFF), jnp.float32)
    xf_ref[:, OFF + HW:] = jnp.zeros((C, P - OFF - HW), jnp.float32)
    xf_ref[:, OFF:OFF + HW] = out1                                  # aligned store
    xf = xf_ref[...]                                                # (C, P)

    # ---- depthwise 3x3 / 5x5 branches (BN scales folded into the taps) -----
    # Each tap is a static lane-offset slice of the padded slab + one FMA.
    # Out-of-image reads along H land in the zero halo; the W-edge wrap is
    # corrected with a single mask multiply per kw column.
    def dwconv(k, w_ref):
        pad = (k - 1) // 2
        total = None
        for j in range(k):                       # kw
            dw = j - pad
            col = None
            for i in range(k):                   # kh
                dh = i - pad
                start = OFF + dh * W + dw
                tap = xf[:, start:start + HW] * w_ref[:, i * k + j:i * k + j + 1]
                col = tap if col is None else col + tap
            col = col * mask_ref[dw + 2:dw + 3, :]
            total = col if total is None else total + col
        return total

    f0 = jnp.maximum(dwconv(3, dw3_ref) + tb0_ref[...], 0.0)        # (C, HW)
    f1 = jnp.maximum(dwconv(5, dw5_ref) + tb1_ref[...], 0.0)        # (C, HW)

    # ---- SK attention: GAP -> folded (fc o fcs) affine -> 2-way softmax ----
    fea_s = jnp.sum(f0 + f1, axis=1, keepdims=True) * (1.0 / HW)    # (C, 1)
    v = jnp.dot(fca_ref[...], fea_s,
                preferred_element_type=jnp.float32) + fcb_ref[...]  # (2C, 1)
    v0 = v[:C, :]
    v1 = v[C:, :]
    m = jnp.maximum(v0, v1)
    e0 = jnp.exp(v0 - m)
    e1 = jnp.exp(v1 - m)
    inv = 1.0 / (e0 + e1)
    a0 = e0 * inv
    a1 = e1 * inv

    # ---- blend + BN2 + ReLU -------------------------------------------------
    sk = jnp.maximum((f0 * a0 + f1 * a1) * s2_ref[...] + t2_ref[...], 0.0)

    # ---- conv3+BN3 and shortcut conv+BNsc (scales folded) + add + ReLU ------
    y = jnp.dot(wc3_ref[...], sk, preferred_element_type=jnp.float32)
    y = y + jnp.dot(wsc_ref[...], x2, preferred_element_type=jnp.float32)
    o_ref[0] = jnp.maximum(y + b3_ref[...], 0.0).astype(o_ref.dtype)


def _skunit_pallas(x_r, prep, masks, *, H, W):
    (w1sT, t1c, dw3, tb0c, dw5, tb1c, fcA, fcB, s2c, t2c, wc3, wsc, b3c) = prep
    n, cin, hw = x_r.shape
    planes = w1sT.shape[0]
    cout = wc3.shape[0]
    OFF = _round_up(2 * W + 2, 128)      # lane-aligned halo, covers +/-(2W+2) taps
    P = OFF + hw + OFF

    params = (w1sT, t1c, dw3, tb0c, dw5, tb1c, fcA, fcB, s2c, t2c,
              wc3, wsc, b3c, masks)
    in_specs = [pl.BlockSpec((1, cin, hw), lambda i: (i, 0, 0))]
    in_specs += [pl.BlockSpec(a.shape, lambda i: (0, 0)) for a in params]

    return pl.pallas_call(
        functools.partial(_skunit_kernel, H=H, W=W, OFF=OFF),
        out_shape=jax.ShapeDtypeStruct((n, cout, hw), jnp.float32),
        grid_spec=pltpu.PrefetchScalarGridSpec(
            num_scalar_prefetch=0,
            grid=(n,),
            in_specs=in_specs,
            out_specs=pl.BlockSpec((1, cout, hw), lambda i: (i, 0, 0)),
            scratch_shapes=[pltpu.VMEM((planes, P), jnp.float32)],
        ),
        compiler_params=pltpu.CompilerParams(
            dimension_semantics=("parallel",),
            vmem_limit_bytes=_VMEM_LIMIT),
    )(x_r, *params)


# ---------------------------------------------------------------------------
# Host-side folding / glue
# ---------------------------------------------------------------------------
def bn_fold(gamma, beta, mean, var, conv_bias=None):
    """Fold inference-mode BatchNorm (and optional preceding conv bias)."""
    scale = gamma / jnp.sqrt(var + _EPS)
    if conv_bias is None:
        shift = beta - mean * scale
    else:
        shift = beta + (conv_bias - mean) * scale
    return scale, shift


def _prepare(p):
    planes = p['w1'].shape[1]
    s1, t1 = bn_fold(*p['bn1'])
    w1sT = (p['w1'] * s1[None, :]).T                               # (planes, cin)
    t1c = t1[:, None]

    sb0, tb0 = bn_fold(*p['br0_bn'], conv_bias=p['br0_b'])
    sb1, tb1 = bn_fold(*p['br1_bn'], conv_bias=p['br1_b'])
    dw3 = p['br0_w'].reshape(9, planes).T * sb0[:, None]           # (planes, 9)
    dw5 = p['br1_w'].reshape(25, planes).T * sb1[:, None]          # (planes, 25)
    tb0c, tb1c = tb0[:, None], tb1[:, None]

    s2, t2 = bn_fold(*p['bn2'])
    s2c, t2c = s2[:, None], t2[:, None]

    # Fold fc (C->d) and the two fcs (d->C) linear layers (no nonlinearity in
    # between) into one affine map (2C x C) applied to the GAP vector.
    fc_wT = p['fc_w'].T                                            # (d, planes)
    fc_bc = p['fc_b'].T                                            # (d, 1)
    fcs_wT = jnp.concatenate([p['fc0_w'].T, p['fc1_w'].T], axis=0)  # (2p, d)
    fcs_bc = jnp.concatenate([p['fc0_b'], p['fc1_b']], axis=1).T    # (2p, 1)
    fcA = fcs_wT @ fc_wT                                            # (2p, planes)
    fcB = fcs_wT @ fc_bc + fcs_bc                                   # (2p, 1)

    s3, t3 = bn_fold(*p['bn3'])
    ssc, tsc = bn_fold(*p['bn_sc'])
    wc3 = (p['w3'] * s3[None, :]).T                                 # (cout, planes)
    wsc = (p['wsc'] * ssc[None, :]).T                               # (cout, cin)
    b3c = (t3 + tsc)[:, None]                                       # (cout, 1)
    return (w1sT, t1c, dw3, tb0c, dw5, tb1c, fcA, fcB, s2c, t2c, wc3, wsc, b3c)


def _edge_masks(h, w):
    """(5, h*w) f32 masks: mask[dw+2, p] = 1 iff column (p % w) + dw is inside."""
    wi = jnp.arange(h * w, dtype=jnp.int32) % w
    rows = [(((wi + dw) >= 0) & ((wi + dw) < w)).astype(jnp.float32)
            for dw in range(-2, 3)]
    return jnp.stack(rows, axis=0)


def skunit_forward(x_nchw, p):
    n, cin, h, w = x_nchw.shape
    prep = _prepare(p)
    masks = _edge_masks(h, w)
    x_r = x_nchw.reshape(n, cin, h * w)        # free reshape (NCHW is C-major)
    out = _skunit_pallas(x_r, prep, masks, H=h, W=w)
    return out.reshape(n, out.shape[1], h, w)  # free reshape back to NCHW


# ---------------------------------------------------------------------------
# Deterministic synthetic parameters
# ---------------------------------------------------------------------------
def _bn_params(key, c):
    k1, k2, k3, k4 = jax.random.split(key, 4)
    gamma = 1.0 + 0.1 * jax.random.normal(k1, (c,), jnp.float32)
    beta = 0.1 * jax.random.normal(k2, (c,), jnp.float32)
    mean = 0.1 * jax.random.normal(k3, (c,), jnp.float32)
    var = 0.5 + jax.random.uniform(k4, (c,), jnp.float32)
    return gamma, beta, mean, var


def init_params(key, in_planes, planes, expansion=2, G=32, r=16, L=32):
    assert planes == G, "this kernel implements the depthwise (features == G) case"
    d = max(planes // r, L)
    cout = expansion * planes
    ks = jax.random.split(key, 19)

    def w(k, shape, fan_in):
        return jax.random.normal(k, shape, jnp.float32) / jnp.sqrt(float(fan_in))

    p = {}
    p['w1'] = w(ks[0], (in_planes, planes), in_planes)
    p['bn1'] = _bn_params(ks[1], planes)
    p['br0_w'] = w(ks[2], (3, 3, 1, planes), 9)
    p['br0_b'] = 0.1 * jax.random.normal(ks[3], (planes,), jnp.float32)
    p['br0_bn'] = _bn_params(ks[4], planes)
    p['br1_w'] = w(ks[5], (5, 5, 1, planes), 25)
    p['br1_b'] = 0.1 * jax.random.normal(ks[6], (planes,), jnp.float32)
    p['br1_bn'] = _bn_params(ks[7], planes)
    p['fc_w'] = w(ks[8], (planes, d), planes)
    p['fc_b'] = 0.1 * jax.random.normal(ks[9], (1, d), jnp.float32)
    p['fc0_w'] = w(ks[10], (d, planes), d)
    p['fc0_b'] = 0.1 * jax.random.normal(ks[11], (1, planes), jnp.float32)
    p['fc1_w'] = w(ks[12], (d, planes), d)
    p['fc1_b'] = 0.1 * jax.random.normal(ks[13], (1, planes), jnp.float32)
    p['bn2'] = _bn_params(ks[14], planes)
    p['w3'] = w(ks[15], (planes, cout), planes)
    p['bn3'] = _bn_params(ks[16], cout)
    p['wsc'] = w(ks[17], (in_planes, cout), in_planes)
    p['bn_sc'] = _bn_params(ks[18], cout)
    return p


# ---------------------------------------------------------------------------
# Pure-JAX reference (for correctness check)
# ---------------------------------------------------------------------------
def reference_forward(x_nchw, p):
    def bn(x, g, b, m, v):
        return (x - m) / jnp.sqrt(v + _EPS) * g + b

    x = jnp.transpose(x_nchw, (0, 2, 3, 1))
    out = jnp.einsum('nhwc,cd->nhwd', x, p['w1'])
    out = jax.nn.relu(bn(out, *p['bn1']))

    def branch(xin, wk, bias, bnp):
        y = jax.lax.conv_general_dilated(
            xin, wk, window_strides=(1, 1), padding='SAME',
            dimension_numbers=('NHWC', 'HWIO', 'NHWC'),
            feature_group_count=xin.shape[-1])
        return jax.nn.relu(bn(y + bias, *bnp))

    fea0 = branch(out, p['br0_w'], p['br0_b'], p['br0_bn'])
    fea1 = branch(out, p['br1_w'], p['br1_b'], p['br1_bn'])
    fea_u = fea0 + fea1
    fea_s = fea_u.mean(axis=(1, 2))
    fea_z = fea_s @ p['fc_w'] + p['fc_b'][0]
    v0 = fea_z @ p['fc0_w'] + p['fc0_b'][0]
    v1 = fea_z @ p['fc1_w'] + p['fc1_b'][0]
    att = jax.nn.softmax(jnp.stack([v0, v1], axis=1), axis=1)
    fea_v = fea0 * att[:, 0, None, None, :] + fea1 * att[:, 1, None, None, :]
    out2 = jax.nn.relu(bn(fea_v, *p['bn2']))
    out3 = bn(jnp.einsum('nhwc,cd->nhwd', out2, p['w3']), *p['bn3'])
    sc = bn(jnp.einsum('nhwc,cd->nhwd', x, p['wsc']), *p['bn_sc'])
    return jnp.transpose(jax.nn.relu(out3 + sc), (0, 3, 1, 2))


if __name__ == "__main__":
    key = jax.random.PRNGKey(0)
    in_planes, planes = 16, 32          # planes == G == 32 (depthwise branches)
    N, H, W = 2, 16, 16
    kx, kp = jax.random.split(key)
    x = jax.random.normal(kx, (N, in_planes, H, W), jnp.float32)
    params = init_params(kp, in_planes, planes)

    out = jax.jit(skunit_forward)(x, params)
    out = jax.block_until_ready(out)

    ref = reference_forward(x, params)
    assert out.shape == (N, 2 * planes, H, W), out.shape
    max_err = float(jnp.max(jnp.abs(out - ref)))
    assert max_err < 1e-3, f"mismatch vs reference, max abs err = {max_err}"
    print("KERNEL_OK")
</pallas_src>

<mosaic_0001>
module attributes {stable_mosaic.version = 11 : i64} {
  func.func @_skunit_kernel(%arg0: i32, %arg1: memref<1x16x256xf32, #tpu.memory_space<vmem>>, %arg2: memref<32x16xf32, #tpu.memory_space<vmem>>, %arg3: memref<32x1xf32, #tpu.memory_space<vmem>>, %arg4: memref<32x9xf32, #tpu.memory_space<vmem>>, %arg5: memref<32x1xf32, #tpu.memory_space<vmem>>, %arg6: memref<32x25xf32, #tpu.memory_space<vmem>>, %arg7: memref<32x1xf32, #tpu.memory_space<vmem>>, %arg8: memref<64x32xf32, #tpu.memory_space<vmem>>, %arg9: memref<64x1xf32, #tpu.memory_space<vmem>>, %arg10: memref<32x1xf32, #tpu.memory_space<vmem>>, %arg11: memref<32x1xf32, #tpu.memory_space<vmem>>, %arg12: memref<64x32xf32, #tpu.memory_space<vmem>>, %arg13: memref<64x16xf32, #tpu.memory_space<vmem>>, %arg14: memref<64x1xf32, #tpu.memory_space<vmem>>, %arg15: memref<5x256xf32, #tpu.memory_space<vmem>>, %arg16: memref<1x64x256xf32, #tpu.memory_space<vmem>>, %arg17: memref<32x512xf32, #tpu.memory_space<vmem>>) attributes {dimension_semantics = [#tpu.dimension_semantics<parallel>], iteration_bounds = array<i64: 2>, scalar_prefetch = 0 : i64, scratch_operands = 1 : i64, tpu.core_type = #tpu.core_type<tc>, window_params = [{transform_indices = @transform_0, window_bounds = array<i64: 1, 16, 256>}, {pipeline_mode = #tpu.pipeline_mode<synchronous>, transform_indices = @transform_1, window_bounds = array<i64: 32, 16>}, {pipeline_mode = #tpu.pipeline_mode<synchronous>, transform_indices = @transform_2, window_bounds = array<i64: 32, 1>}, {pipeline_mode = #tpu.pipeline_mode<synchronous>, transform_indices = @transform_3, window_bounds = array<i64: 32, 9>}, {pipeline_mode = #tpu.pipeline_mode<synchronous>, transform_indices = @transform_4, window_bounds = array<i64: 32, 1>}, {pipeline_mode = #tpu.pipeline_mode<synchronous>, transform_indices = @transform_5, window_bounds = array<i64: 32, 25>}, {pipeline_mode = #tpu.pipeline_mode<synchronous>, transform_indices = @transform_6, window_bounds = array<i64: 32, 1>}, {pipeline_mode = #tpu.pipeline_mode<synchronous>, transform_indices = @transform_7, window_bounds = array<i64: 64, 32>}, {pipeline_mode = #tpu.pipeline_mode<synchronous>, transform_indices = @transform_8, window_bounds = array<i64: 64, 1>}, {pipeline_mode = #tpu.pipeline_mode<synchronous>, transform_indices = @transform_9, window_bounds = array<i64: 32, 1>}, {pipeline_mode = #tpu.pipeline_mode<synchronous>, transform_indices = @transform_10, window_bounds = array<i64: 32, 1>}, {pipeline_mode = #tpu.pipeline_mode<synchronous>, transform_indices = @transform_11, window_bounds = array<i64: 64, 32>}, {pipeline_mode = #tpu.pipeline_mode<synchronous>, transform_indices = @transform_12, window_bounds = array<i64: 64, 16>}, {pipeline_mode = #tpu.pipeline_mode<synchronous>, transform_indices = @transform_13, window_bounds = array<i64: 64, 1>}, {pipeline_mode = #tpu.pipeline_mode<synchronous>, transform_indices = @transform_14, window_bounds = array<i64: 5, 256>}, {transform_indices = @transform_15, window_bounds = array<i64: 1, 64, 256>}]} {
    %c0 = arith.constant 0 : index
    %c0_0 = arith.constant 0 : index
    %c0_1 = arith.constant 0 : index
    %0 = vector.load %arg1[%c0, %c0_0, %c0_1] : memref<1x16x256xf32, #tpu.memory_space<vmem>>, vector<1x16x256xf32>
    %1 = vector.shape_cast %0 : vector<1x16x256xf32> to vector<16x256xf32>
    %c0_2 = arith.constant 0 : index
    %c0_3 = arith.constant 0 : index
    %2 = vector.load %arg2[%c0_2, %c0_3] : memref<32x16xf32, #tpu.memory_space<vmem>>, vector<32x16xf32>
    %cst = arith.constant dense<0.000000e+00> : vector<32x256xf32>
    %3 = tpu.matmul %2, %1, %cst {dimension_numbers = #tpu.dot_dimension_numbers<[1], [0], [0], [1], [0, 0, 1, 1], [], []>} : vector<32x16xf32>, vector<16x256xf32>, vector<32x256xf32> -> vector<32x256xf32>
    %c0_4 = arith.constant 0 : index
    %c0_5 = arith.constant 0 : index
    %4 = vector.load %arg3[%c0_4, %c0_5] : memref<32x1xf32, #tpu.memory_space<vmem>>, vector<32x1xf32>
    %5 = vector.broadcast %4 : vector<32x1xf32> to vector<32x256xf32>
    %6 = arith.addf %3, %5 : vector<32x256xf32>
    %cst_6 = arith.constant 0.000000e+00 : f32
    %7 = vector.broadcast %cst_6 : f32 to vector<32x256xf32>
    %8 = arith.maximumf %6, %7 : vector<32x256xf32>
    %cst_7 = arith.constant 0.000000e+00 : f32
    %9 = vector.broadcast %cst_7 : f32 to vector<32x128xf32>
    %c0_8 = arith.constant 0 : index
    %c0_9 = arith.constant 0 : index
    %10 = vector.load %arg17[%c0_8, %c0_9] : memref<32x512xf32, #tpu.memory_space<vmem>>, vector<32x128xf32>
    tpu.vector_store %arg17[%c0_8, %c0_9], %9 {strides = array<i32>} : memref<32x512xf32, #tpu.memory_space<vmem>>, vector<32x128xf32>,
    %cst_10 = arith.constant 0.000000e+00 : f32
    %11 = vector.broadcast %cst_10 : f32 to vector<32x128xf32>
    %c0_11 = arith.constant 0 : index
    %c384 = arith.constant 384 : index
    %12 = vector.load %arg17[%c0_11, %c384] : memref<32x512xf32, #tpu.memory_space<vmem>>, vector<32x128xf32>
    tpu.vector_store %arg17[%c0_11, %c384], %11 {strides = array<i32>} : memref<32x512xf32, #tpu.memory_space<vmem>>, vector<32x128xf32>,
    %c0_12 = arith.constant 0 : index
    %c128 = arith.constant 128 : index
    %13 = vector.load %arg17[%c0_12, %c128] : memref<32x512xf32, #tpu.memory_space<vmem>>, vector<32x256xf32>
    tpu.vector_store %arg17[%c0_12, %c128], %8 {strides = array<i32>} : memref<32x512xf32, #tpu.memory_space<vmem>>, vector<32x256xf32>,
    %c0_13 = arith.constant 0 : index
    %c0_14 = arith.constant 0 : index
    %14 = vector.load %arg17[%c0_13, %c0_14] : memref<32x512xf32, #tpu.memory_space<vmem>>, vector<32x512xf32>
    %15 = vector.extract_strided_slice %14 {offsets = [0, 111], sizes = [32, 256], strides = [1, 1]} : vector<32x512xf32> to vector<32x256xf32>
    %c0_15 = arith.constant 0 : index
    %c0_16 = arith.constant 0 : index
    %16 = vector.load %arg4[%c0_15, %c0_16] : memref<32x9xf32, #tpu.memory_space<vmem>>, vector<32x1xf32>
    %17 = vector.broadcast %16 : vector<32x1xf32> to vector<32x256xf32>
    %18 = arith.mulf %15, %17 : vector<32x256xf32>
    %19 = vector.extract_strided_slice %14 {offsets = [0, 127], sizes = [32, 256], strides = [1, 1]} : vector<32x512xf32> to vector<32x256xf32>
    %c0_17 = arith.constant 0 : index
    %c3 = arith.constant 3 : index
    %20 = vector.load %arg4[%c0_17, %c3] : memref<32x9xf32, #tpu.memory_space<vmem>>, vector<32x1xf32>
    %21 = vector.broadcast %20 : vector<32x1xf32> to vector<32x256xf32>
    %22 = arith.mulf %19, %21 : vector<32x256xf32>
    %23 = arith.addf %18, %22 : vector<32x256xf32>
    %24 = vector.extract_strided_slice %14 {offsets = [0, 143], sizes = [32, 256], strides = [1, 1]} : vector<32x512xf32> to vector<32x256xf32>
    %c0_18 = arith.constant 0 : index
    %c6 = arith.constant 6 : index
    %25 = vector.load %arg4[%c0_18, %c6] : memref<32x9xf32, #tpu.memory_space<vmem>>, vector<32x1xf32>
    %26 = vector.broadcast %25 : vector<32x1xf32> to vector<32x256xf32>
    %27 = arith.mulf %24, %26 : vector<32x256xf32>
    %28 = arith.addf %23, %27 : vector<32x256xf32>
    %c1 = arith.constant 1 : index
    %c0_19 = arith.constant 0 : index
    %29 = vector.load %arg15[%c1, %c0_19] : memref<5x256xf32, #tpu.memory_space<vmem>>, vector<1x256xf32>
    %30 = vector.broadcast %29 : vector<1x256xf32> to vector<32x256xf32>
    %31 = arith.mulf %28, %30 : vector<32x256xf32>
    %32 = vector.extract_strided_slice %14 {offsets = [0, 112], sizes = [32, 256], strides = [1, 1]} : vector<32x512xf32> to vector<32x256xf32>
    %c0_20 = arith.constant 0 : index
    %c1_21 = arith.constant 1 : index
    %33 = vector.load %arg4[%c0_20, %c1_21] : memref<32x9xf32, #tpu.memory_space<vmem>>, vector<32x1xf32>
    %34 = vector.broadcast %33 : vector<32x1xf32> to vector<32x256xf32>
    %35 = arith.mulf %32, %34 : vector<32x256xf32>
    %36 = vector.extract_strided_slice %14 {offsets = [0, 128], sizes = [32, 256], strides = [1, 1]} : vector<32x512xf32> to vector<32x256xf32>
    %c0_22 = arith.constant 0 : index
    %c4 = arith.constant 4 : index
    %37 = vector.load %arg4[%c0_22, %c4] : memref<32x9xf32, #tpu.memory_space<vmem>>, vector<32x1xf32>
    %38 = vector.broadcast %37 : vector<32x1xf32> to vector<32x256xf32>
    %39 = arith.mulf %36, %38 : vector<32x256xf32>
    %40 = arith.addf %35, %39 : vector<32x256xf32>
    %41 = vector.extract_strided_slice %14 {offsets = [0, 144], sizes = [32, 256], strides = [1, 1]} : vector<32x512xf32> to vector<32x256xf32>
    %c0_23 = arith.constant 0 : index
    %c7 = arith.constant 7 : index
    %42 = vector.load %arg4[%c0_23, %c7] : memref<32x9xf32, #tpu.memory_space<vmem>>, vector<32x1xf32>
    %43 = vector.broadcast %42 : vector<32x1xf32> to vector<32x256xf32>
    %44 = arith.mulf %41, %43 : vector<32x256xf32>
    %45 = arith.addf %40, %44 : vector<32x256xf32>
    %c2 = arith.constant 2 : index
    %c0_24 = arith.constant 0 : index
    %46 = vector.load %arg15[%c2, %c0_24] : memref<5x256xf32, #tpu.memory_space<vmem>>, vector<1x256xf32>
    %47 = vector.broadcast %46 : vector<1x256xf32> to vector<32x256xf32>
    %48 = arith.mulf %45, %47 : vector<32x256xf32>
    %49 = arith.addf %31, %48 : vector<32x256xf32>
    %50 = vector.extract_strided_slice %14 {offsets = [0, 113], sizes = [32, 256], strides = [1, 1]} : vector<32x512xf32> to vector<32x256xf32>
    %c0_25 = arith.constant 0 : index
    %c2_26 = arith.constant 2 : index
    %51 = vector.load %arg4[%c0_25, %c2_26] : memref<32x9xf32, #tpu.memory_space<vmem>>, vector<32x1xf32>
    %52 = vector.broadcast %51 : vector<32x1xf32> to vector<32x256xf32>
    %53 = arith.mulf %50, %52 : vector<32x256xf32>
    %54 = vector.extract_strided_slice %14 {offsets = [0, 129], sizes = [32, 256], strides = [1, 1]} : vector<32x512xf32> to vector<32x256xf32>
    %c0_27 = arith.constant 0 : index
    %c5 = arith.constant 5 : index
    %55 = vector.load %arg4[%c0_27, %c5] : memref<32x9xf32, #tpu.memory_space<vmem>>, vector<32x1xf32>
    %56 = vector.broadcast %55 : vector<32x1xf32> to vector<32x256xf32>
    %57 = arith.mulf %54, %56 : vector<32x256xf32>
    %58 = arith.addf %53, %57 : vector<32x256xf32>
    %59 = vector.extract_strided_slice %14 {offsets = [0, 145], sizes = [32, 256], strides = [1, 1]} : vector<32x512xf32> to vector<32x256xf32>
    %c0_28 = arith.constant 0 : index
    %c8 = arith.constant 8 : index
    %60 = vector.load %arg4[%c0_28, %c8] : memref<32x9xf32, #tpu.memory_space<vmem>>, vector<32x1xf32>
    %61 = vector.broadcast %60 : vector<32x1xf32> to vector<32x256xf32>
    %62 = arith.mulf %59, %61 : vector<32x256xf32>
    %63 = arith.addf %58, %62 : vector<32x256xf32>
    %c3_29 = arith.constant 3 : index
    %c0_30 = arith.constant 0 : index
    %64 = vector.load %arg15[%c3_29, %c0_30] : memref<5x256xf32, #tpu.memory_space<vmem>>, vector<1x256xf32>
    %65 = vector.broadcast %64 : vector<1x256xf32> to vector<32x256xf32>
    %66 = arith.mulf %63, %65 : vector<32x256xf32>
    %67 = arith.addf %49, %66 : vector<32x256xf32>
    %c0_31 = arith.constant 0 : index
    %c0_32 = arith.constant 0 : index
    %68 = vector.load %arg5[%c0_31, %c0_32] : memref<32x1xf32, #tpu.memory_space<vmem>>, vector<32x1xf32>
    %69 = vector.broadcast %68 : vector<32x1xf32> to vector<32x256xf32>
    %70 = arith.addf %67, %69 : vector<32x256xf32>
    %cst_33 = arith.constant 0.000000e+00 : f32
    %71 = vector.broadcast %cst_33 : f32 to vector<32x256xf32>
    %72 = arith.maximumf %70, %71 : vector<32x256xf32>
    %73 = vector.extract_strided_slice %14 {offsets = [0, 94], sizes = [32, 256], strides = [1, 1]} : vector<32x512xf32> to vector<32x256xf32>
    %c0_34 = arith.constant 0 : index
    %c0_35 = arith.constant 0 : index
    %74 = vector.load %arg6[%c0_34, %c0_35] : memref<32x25xf32, #tpu.memory_space<vmem>>, vector<32x1xf32>
    %75 = vector.broadcast %74 : vector<32x1xf32> to vector<32x256xf32>
    %76 = arith.mulf %73, %75 : vector<32x256xf32>
    %77 = vector.extract_strided_slice %14 {offsets = [0, 110], sizes = [32, 256], strides = [1, 1]} : vector<32x512xf32> to vector<32x256xf32>
    %c0_36 = arith.constant 0 : index
    %c5_37 = arith.constant 5 : index
    %78 = vector.load %arg6[%c0_36, %c5_37] : memref<32x25xf32, #tpu.memory_space<vmem>>, vector<32x1xf32>
    %79 = vector.broadcast %78 : vector<32x1xf32> to vector<32x256xf32>
    %80 = arith.mulf %77, %79 : vector<32x256xf32>
    %81 = arith.addf %76, %80 : vector<32x256xf32>
    %82 = vector.extract_strided_slice %14 {offsets = [0, 126], sizes = [32, 256], strides = [1, 1]} : vector<32x512xf32> to vector<32x256xf32>
    %c0_38 = arith.constant 0 : index
    %c10 = arith.constant 10 : index
    %83 = vector.load %arg6[%c0_38, %c10] : memref<32x25xf32, #tpu.memory_space<vmem>>, vector<32x1xf32>
    %84 = vector.broadcast %83 : vector<32x1xf32> to vector<32x256xf32>
    %85 = arith.mulf %82, %84 : vector<32x256xf32>
    %86 = arith.addf %81, %85 : vector<32x256xf32>
    %87 = vector.extract_strided_slice %14 {offsets = [0, 142], sizes = [32, 256], strides = [1, 1]} : vector<32x512xf32> to vector<32x256xf32>
    %c0_39 = arith.constant 0 : index
    %c15 = arith.constant 15 : index
    %88 = vector.load %arg6[%c0_39, %c15] : memref<32x25xf32, #tpu.memory_space<vmem>>, vector<32x1xf32>
    %89 = vector.broadcast %88 : vector<32x1xf32> to vector<32x256xf32>
    %90 = arith.mulf %87, %89 : vector<32x256xf32>
    %91 = arith.addf %86, %90 : vector<32x256xf32>
    %92 = vector.extract_strided_slice %14 {offsets = [0, 158], sizes = [32, 256], strides = [1, 1]} : vector<32x512xf32> to vector<32x256xf32>
    %c0_40 = arith.constant 0 : index
    %c20 = arith.constant 20 : index
    %93 = vector.load %arg6[%c0_40, %c20] : memref<32x25xf32, #tpu.memory_space<vmem>>, vector<32x1xf32>
    %94 = vector.broadcast %93 : vector<32x1xf32> to vector<32x256xf32>
    %95 = arith.mulf %92, %94 : vector<32x256xf32>
    %96 = arith.addf %91, %95 : vector<32x256xf32>
    %c0_41 = arith.constant 0 : index
    %c0_42 = arith.constant 0 : index
    %97 = vector.load %arg15[%c0_41, %c0_42] : memref<5x256xf32, #tpu.memory_space<vmem>>, vector<1x256xf32>
    %98 = vector.broadcast %97 : vector<1x256xf32> to vector<32x256xf32>
    %99 = arith.mulf %96, %98 : vector<32x256xf32>
    %100 = vector.extract_strided_slice %14 {offsets = [0, 95], sizes = [32, 256], strides = [1, 1]} : vector<32x512xf32> to vector<32x256xf32>
    %c0_43 = arith.constant 0 : index
    %c1_44 = arith.constant 1 : index
    %101 = vector.load %arg6[%c0_43, %c1_44] : memref<32x25xf32, #tpu.memory_space<vmem>>, vector<32x1xf32>
    %102 = vector.broadcast %101 : vector<32x1xf32> to vector<32x256xf32>
    %103 = arith.mulf %100, %102 : vector<32x256xf32>
    %104 = vector.extract_strided_slice %14 {offsets = [0, 111], sizes = [32, 256], strides = [1, 1]} : vector<32x512xf32> to vector<32x256xf32>
    %c0_45 = arith.constant 0 : index
    %c6_46 = arith.constant 6 : index
    %105 = vector.load %arg6[%c0_45, %c6_46] : memref<32x25xf32, #tpu.memory_space<vmem>>, vector<32x1xf32>
    %106 = vector.broadcast %105 : vector<32x1xf32> to vector<32x256xf32>
    %107 = arith.mulf %104, %106 : vector<32x256xf32>
    %108 = arith.addf %103, %107 : vector<32x256xf32>
    %109 = vector.extract_strided_slice %14 {offsets = [0, 127], sizes = [32, 256], strides = [1, 1]} : vector<32x512xf32> to vector<32x256xf32>
    %c0_47 = arith.constant 0 : index
    %c11 = arith.constant 11 : index
    %110 = vector.load %arg6[%c0_47, %c11] : memref<32x25xf32, #tpu.memory_space<vmem>>, vector<32x1xf32>
    %111 = vector.broadcast %110 : vector<32x1xf32> to vector<32x256xf32>
    %112 = arith.mulf %109, %111 : vector<32x256xf32>
    %113 = arith.addf %108, %112 : vector<32x256xf32>
    %114 = vector.extract_strided_slice %14 {offsets = [0, 143], sizes = [32, 256], strides = [1, 1]} : vector<32x512xf32> to vector<32x256xf32>
    %c0_48 = arith.constant 0 : index
    %c16 = arith.constant 16 : index
    %115 = vector.load %arg6[%c0_48, %c16] : memref<32x25xf32, #tpu.memory_space<vmem>>, vector<32x1xf32>
    %116 = vector.broadcast %115 : vector<32x1xf32> to vector<32x256xf32>
    %117 = arith.mulf %114, %116 : vector<32x256xf32>
    %118 = arith.addf %113, %117 : vector<32x256xf32>
    %119 = vector.extract_strided_slice %14 {offsets = [0, 159], sizes = [32, 256], strides = [1, 1]} : vector<32x512xf32> to vector<32x256xf32>
    %c0_49 = arith.constant 0 : index
    %c21 = arith.constant 21 : index
    %120 = vector.load %arg6[%c0_49, %c21] : memref<32x25xf32, #tpu.memory_space<vmem>>, vector<32x1xf32>
    %121 = vector.broadcast %120 : vector<32x1xf32> to vector<32x256xf32>
    %122 = arith.mulf %119, %121 : vector<32x256xf32>
    %123 = arith.addf %118, %122 : vector<32x256xf32>
    %c1_50 = arith.constant 1 : index
    %c0_51 = arith.constant 0 : index
    %124 = vector.load %arg15[%c1_50, %c0_51] : memref<5x256xf32, #tpu.memory_space<vmem>>, vector<1x256xf32>
    %125 = vector.broadcast %124 : vector<1x256xf32> to vector<32x256xf32>
    %126 = arith.mulf %123, %125 : vector<32x256xf32>
    %127 = arith.addf %99, %126 : vector<32x256xf32>
    %128 = vector.extract_strided_slice %14 {offsets = [0, 96], sizes = [32, 256], strides = [1, 1]} : vector<32x512xf32> to vector<32x256xf32>
    %c0_52 = arith.constant 0 : index
    %c2_53 = arith.constant 2 : index
    %129 = vector.load %arg6[%c0_52, %c2_53] : memref<32x25xf32, #tpu.memory_space<vmem>>, vector<32x1xf32>
    %130 = vector.broadcast %129 : vector<32x1xf32> to vector<32x256xf32>
    %131 = arith.mulf %128, %130 : vector<32x256xf32>
    %132 = vector.extract_strided_slice %14 {offsets = [0, 112], sizes = [32, 256], strides = [1, 1]} : vector<32x512xf32> to vector<32x256xf32>
    %c0_54 = arith.constant 0 : index
    %c7_55 = arith.constant 7 : index
    %133 = vector.load %arg6[%c0_54, %c7_55] : memref<32x25xf32, #tpu.memory_space<vmem>>, vector<32x1xf32>
    %134 = vector.broadcast %133 : vector<32x1xf32> to vector<32x256xf32>
    %135 = arith.mulf %132, %134 : vector<32x256xf32>
    %136 = arith.addf %131, %135 : vector<32x256xf32>
    %137 = vector.extract_strided_slice %14 {offsets = [0, 128], sizes = [32, 256], strides = [1, 1]} : vector<32x512xf32> to vector<32x256xf32>
    %c0_56 = arith.constant 0 : index
    %c12 = arith.constant 12 : index
    %138 = vector.load %arg6[%c0_56, %c12] : memref<32x25xf32, #tpu.memory_space<vmem>>, vector<32x1xf32>
    %139 = vector.broadcast %138 : vector<32x1xf32> to vector<32x256xf32>
    %140 = arith.mulf %137, %139 : vector<32x256xf32>
    %141 = arith.addf %136, %140 : vector<32x256xf32>
    %142 = vector.extract_strided_slice %14 {offsets = [0, 144], sizes = [32, 256], strides = [1, 1]} : vector<32x512xf32> to vector<32x256xf32>
    %c0_57 = arith.constant 0 : index
    %c17 = arith.constant 17 : index
    %143 = vector.load %arg6[%c0_57, %c17] : memref<32x25xf32, #tpu.memory_space<vmem>>, vector<32x1xf32>
    %144 = vector.broadcast %143 : vector<32x1xf32> to vector<32x256xf32>
    %145 = arith.mulf %142, %144 : vector<32x256xf32>
    %146 = arith.addf %141, %145 : vector<32x256xf32>
    %147 = vector.extract_strided_slice %14 {offsets = [0, 160], sizes = [32, 256], strides = [1, 1]} : vector<32x512xf32> to vector<32x256xf32>
    %c0_58 = arith.constant 0 : index
    %c22 = arith.constant 22 : index
    %148 = vector.load %arg6[%c0_58, %c22] : memref<32x25xf32, #tpu.memory_space<vmem>>, vector<32x1xf32>
    %149 = vector.broadcast %148 : vector<32x1xf32> to vector<32x256xf32>
    %150 = arith.mulf %147, %149 : vector<32x256xf32>
    %151 = arith.addf %146, %150 : vector<32x256xf32>
    %c2_59 = arith.constant 2 : index
    %c0_60 = arith.constant 0 : index
    %152 = vector.load %arg15[%c2_59, %c0_60] : memref<5x256xf32, #tpu.memory_space<vmem>>, vector<1x256xf32>
    %153 = vector.broadcast %152 : vector<1x256xf32> to vector<32x256xf32>
    %154 = arith.mulf %151, %153 : vector<32x256xf32>
    %155 = arith.addf %127, %154 : vector<32x256xf32>
    %156 = vector.extract_strided_slice %14 {offsets = [0, 97], sizes = [32, 256], strides = [1, 1]} : vector<32x512xf32> to vector<32x256xf32>
    %c0_61 = arith.constant 0 : index
    %c3_62 = arith.constant 3 : index
    %157 = vector.load %arg6[%c0_61, %c3_62] : memref<32x25xf32, #tpu.memory_space<vmem>>, vector<32x1xf32>
    %158 = vector.broadcast %157 : vector<32x1xf32> to vector<32x256xf32>
    %159 = arith.mulf %156, %158 : vector<32x256xf32>
    %160 = vector.extract_strided_slice %14 {offsets = [0, 113], sizes = [32, 256], strides = [1, 1]} : vector<32x512xf32> to vector<32x256xf32>
    %c0_63 = arith.constant 0 : index
    %c8_64 = arith.constant 8 : index
    %161 = vector.load %arg6[%c0_63, %c8_64] : memref<32x25xf32, #tpu.memory_space<vmem>>, vector<32x1xf32>
    %162 = vector.broadcast %161 : vector<32x1xf32> to vector<32x256xf32>
    %163 = arith.mulf %160, %162 : vector<32x256xf32>
    %164 = arith.addf %159, %163 : vector<32x256xf32>
    %165 = vector.extract_strided_slice %14 {offsets = [0, 129], sizes = [32, 256], strides = [1, 1]} : vector<32x512xf32> to vector<32x256xf32>
    %c0_65 = arith.constant 0 : index
    %c13 = arith.constant 13 : index
    %166 = vector.load %arg6[%c0_65, %c13] : memref<32x25xf32, #tpu.memory_space<vmem>>, vector<32x1xf32>
    %167 = vector.broadcast %166 : vector<32x1xf32> to vector<32x256xf32>
    %168 = arith.mulf %165, %167 : vector<32x256xf32>
    %169 = arith.addf %164, %168 : vector<32x256xf32>
    %170 = vector.extract_strided_slice %14 {offsets = [0, 145], sizes = [32, 256], strides = [1, 1]} : vector<32x512xf32> to vector<32x256xf32>
    %c0_66 = arith.constant 0 : index
    %c18 = arith.constant 18 : index
    %171 = vector.load %arg6[%c0_66, %c18] : memref<32x25xf32, #tpu.memory_space<vmem>>, vector<32x1xf32>
    %172 = vector.broadcast %171 : vector<32x1xf32> to vector<32x256xf32>
    %173 = arith.mulf %170, %172 : vector<32x256xf32>
    %174 = arith.addf %169, %173 : vector<32x256xf32>
    %175 = vector.extract_strided_slice %14 {offsets = [0, 161], sizes = [32, 256], strides = [1, 1]} : vector<32x512xf32> to vector<32x256xf32>
    %c0_67 = arith.constant 0 : index
    %c23 = arith.constant 23 : index
    %176 = vector.load %arg6[%c0_67, %c23] : memref<32x25xf32, #tpu.memory_space<vmem>>, vector<32x1xf32>
    %177 = vector.broadcast %176 : vector<32x1xf32> to vector<32x256xf32>
    %178 = arith.mulf %175, %177 : vector<32x256xf32>
    %179 = arith.addf %174, %178 : vector<32x256xf32>
    %c3_68 = arith.constant 3 : index
    %c0_69 = arith.constant 0 : index
    %180 = vector.load %arg15[%c3_68, %c0_69] : memref<5x256xf32, #tpu.memory_space<vmem>>, vector<1x256xf32>
    %181 = vector.broadcast %180 : vector<1x256xf32> to vector<32x256xf32>
    %182 = arith.mulf %179, %181 : vector<32x256xf32>
    %183 = arith.addf %155, %182 : vector<32x256xf32>
    %184 = vector.extract_strided_slice %14 {offsets = [0, 98], sizes = [32, 256], strides = [1, 1]} : vector<32x512xf32> to vector<32x256xf32>
    %c0_70 = arith.constant 0 : index
    %c4_71 = arith.constant 4 : index
    %185 = vector.load %arg6[%c0_70, %c4_71] : memref<32x25xf32, #tpu.memory_space<vmem>>, vector<32x1xf32>
    %186 = vector.broadcast %185 : vector<32x1xf32> to vector<32x256xf32>
    %187 = arith.mulf %184, %186 : vector<32x256xf32>
    %188 = vector.extract_strided_slice %14 {offsets = [0, 114], sizes = [32, 256], strides = [1, 1]} : vector<32x512xf32> to vector<32x256xf32>
    %c0_72 = arith.constant 0 : index
    %c9 = arith.constant 9 : index
    %189 = vector.load %arg6[%c0_72, %c9] : memref<32x25xf32, #tpu.memory_space<vmem>>, vector<32x1xf32>
    %190 = vector.broadcast %189 : vector<32x1xf32> to vector<32x256xf32>
    %191 = arith.mulf %188, %190 : vector<32x256xf32>
    %192 = arith.addf %187, %191 : vector<32x256xf32>
    %193 = vector.extract_strided_slice %14 {offsets = [0, 130], sizes = [32, 256], strides = [1, 1]} : vector<32x512xf32> to vector<32x256xf32>
    %c0_73 = arith.constant 0 : index
    %c14 = arith.constant 14 : index
    %194 = vector.load %arg6[%c0_73, %c14] : memref<32x25xf32, #tpu.memory_space<vmem>>, vector<32x1xf32>
    %195 = vector.broadcast %194 : vector<32x1xf32> to vector<32x256xf32>
    %196 = arith.mulf %193, %195 : vector<32x256xf32>
    %197 = arith.addf %192, %196 : vector<32x256xf32>
    %198 = vector.extract_strided_slice %14 {offsets = [0, 146], sizes = [32, 256], strides = [1, 1]} : vector<32x512xf32> to vector<32x256xf32>
    %c0_74 = arith.constant 0 : index
    %c19 = arith.constant 19 : index
    %199 = vector.load %arg6[%c0_74, %c19] : memref<32x25xf32, #tpu.memory_space<vmem>>, vector<32x1xf32>
    %200 = vector.broadcast %199 : vector<32x1xf32> to vector<32x256xf32>
    %201 = arith.mulf %198, %200 : vector<32x256xf32>
    %202 = arith.addf %197, %201 : vector<32x256xf32>
    %203 = vector.extract_strided_slice %14 {offsets = [0, 162], sizes = [32, 256], strides = [1, 1]} : vector<32x512xf32> to vector<32x256xf32>
    %c0_75 = arith.constant 0 : index
    %c24 = arith.constant 24 : index
    %204 = vector.load %arg6[%c0_75, %c24] : memref<32x25xf32, #tpu.memory_space<vmem>>, vector<32x1xf32>
    %205 = vector.broadcast %204 : vector<32x1xf32> to vector<32x256xf32>
    %206 = arith.mulf %203, %205 : vector<32x256xf32>
    %207 = arith.addf %202, %206 : vector<32x256xf32>
    %c4_76 = arith.constant 4 : index
    %c0_77 = arith.constant 0 : index
    %208 = vector.load %arg15[%c4_76, %c0_77] : memref<5x256xf32, #tpu.memory_space<vmem>>, vector<1x256xf32>
    %209 = vector.broadcast %208 : vector<1x256xf32> to vector<32x256xf32>
    %210 = arith.mulf %207, %209 : vector<32x256xf32>
    %211 = arith.addf %183, %210 : vector<32x256xf32>
    %c0_78 = arith.constant 0 : index
    %c0_79 = arith.constant 0 : index
    %212 = vector.load %arg7[%c0_78, %c0_79] : memref<32x1xf32, #tpu.memory_space<vmem>>, vector<32x1xf32>
    %213 = vector.broadcast %212 : vector<32x1xf32> to vector<32x256xf32>
    %214 = arith.addf %211, %213 : vector<32x256xf32>
    %cst_80 = arith.constant 0.000000e+00 : f32
    %215 = vector.broadcast %cst_80 : f32 to vector<32x256xf32>
    %216 = arith.maximumf %214, %215 : vector<32x256xf32>
    %217 = arith.addf %72, %216 : vector<32x256xf32>
    %cst_81 = arith.constant dense<0.000000e+00> : vector<32xf32>
    %218 = vector.multi_reduction <add>, %217, %cst_81 [1] : vector<32x256xf32> to vector<32xf32>
    %219 = vector.shape_cast %218 : vector<32xf32> to vector<32x1xf32>
    %cst_82 = arith.constant 3.906250e-03 : f32
    %220 = vector.broadcast %cst_82 : f32 to vector<32x1xf32>
    %221 = arith.mulf %219, %220 : vector<32x1xf32>
    %c0_83 = arith.constant 0 : index
    %c0_84 = arith.constant 0 : index
    %222 = vector.load %arg8[%c0_83, %c0_84] : memref<64x32xf32, #tpu.memory_space<vmem>>, vector<64x32xf32>
    %cst_85 = arith.constant dense<0.000000e+00> : vector<64x1xf32>
    %223 = tpu.matmul %222, %221, %cst_85 {dimension_numbers = #tpu.dot_dimension_numbers<[1], [0], [0], [1], [0, 0, 1, 1], [], []>} : vector<64x32xf32>, vector<32x1xf32>, vector<64x1xf32> -> vector<64x1xf32>
    %c0_86 = arith.constant 0 : index
    %c0_87 = arith.constant 0 : index
    %224 = vector.load %arg9[%c0_86, %c0_87] : memref<64x1xf32, #tpu.memory_space<vmem>>, vector<64x1xf32>
    %225 = arith.addf %223, %224 : vector<64x1xf32>
    %226 = vector.extract_strided_slice %225 {offsets = [0, 0], sizes = [32, 1], strides = [1, 1]} : vector<64x1xf32> to vector<32x1xf32>
    %227 = vector.extract_strided_slice %225 {offsets = [32, 0], sizes = [32, 1], strides = [1, 1]} : vector<64x1xf32> to vector<32x1xf32>
    %228 = arith.maximumf %226, %227 : vector<32x1xf32>
    %229 = arith.subf %226, %228 : vector<32x1xf32>
    %230 = math.exp %229 : vector<32x1xf32>
    %231 = arith.subf %227, %228 : vector<32x1xf32>
    %232 = math.exp %231 : vector<32x1xf32>
    %233 = arith.addf %230, %232 : vector<32x1xf32>
    %cst_88 = arith.constant 1.000000e+00 : f32
    %234 = vector.broadcast %cst_88 : f32 to vector<32x1xf32>
    %235 = arith.divf %234, %233 : vector<32x1xf32>
    %236 = arith.mulf %230, %235 : vector<32x1xf32>
    %237 = arith.mulf %232, %235 : vector<32x1xf32>
    %238 = vector.broadcast %236 : vector<32x1xf32> to vector<32x256xf32>
    %239 = arith.mulf %72, %238 : vector<32x256xf32>
    %240 = vector.broadcast %237 : vector<32x1xf32> to vector<32x256xf32>
    %241 = arith.mulf %216, %240 : vector<32x256xf32>
    %242 = arith.addf %239, %241 : vector<32x256xf32>
    %c0_89 = arith.constant 0 : index
    %c0_90 = arith.constant 0 : index
    %243 = vector.load %arg10[%c0_89, %c0_90] : memref<32x1xf32, #tpu.memory_space<vmem>>, vector<32x1xf32>
    %244 = vector.broadcast %243 : vector<32x1xf32> to vector<32x256xf32>
    %245 = arith.mulf %242, %244 : vector<32x256xf32>
    %c0_91 = arith.constant 0 : index
    %c0_92 = arith.constant 0 : index
    %246 = vector.load %arg11[%c0_91, %c0_92] : memref<32x1xf32, #tpu.memory_space<vmem>>, vector<32x1xf32>
    %247 = vector.broadcast %246 : vector<32x1xf32> to vector<32x256xf32>
    %248 = arith.addf %245, %247 : vector<32x256xf32>
    %cst_93 = arith.constant 0.000000e+00 : f32
    %249 = vector.broadcast %cst_93 : f32 to vector<32x256xf32>
    %250 = arith.maximumf %248, %249 : vector<32x256xf32>
    %c0_94 = arith.constant 0 : index
    %c0_95 = arith.constant 0 : index
    %251 = vector.load %arg12[%c0_94, %c0_95] : memref<64x32xf32, #tpu.memory_space<vmem>>, vector<64x32xf32>
    %cst_96 = arith.constant dense<0.000000e+00> : vector<64x256xf32>
    %252 = tpu.matmul %251, %250, %cst_96 {dimension_numbers = #tpu.dot_dimension_numbers<[1], [0], [0], [1], [0, 0, 1, 1], [], []>} : vector<64x32xf32>, vector<32x256xf32>, vector<64x256xf32> -> vector<64x256xf32>
    %c0_97 = arith.constant 0 : index
    %c0_98 = arith.constant 0 : index
    %253 = vector.load %arg13[%c0_97, %c0_98] : memref<64x16xf32, #tpu.memory_space<vmem>>, vector<64x16xf32>
    %cst_99 = arith.constant dense<0.000000e+00> : vector<64x256xf32>
    %254 = tpu.matmul %253, %1, %cst_99 {dimension_numbers = #tpu.dot_dimension_numbers<[1], [0], [0], [1], [0, 0, 1, 1], [], []>} : vector<64x16xf32>, vector<16x256xf32>, vector<64x256xf32> -> vector<64x256xf32>
    %255 = arith.addf %252, %254 : vector<64x256xf32>
    %c0_100 = arith.constant 0 : index
    %c0_101 = arith.constant 0 : index
    %256 = vector.load %arg14[%c0_100, %c0_101] : memref<64x1xf32, #tpu.memory_space<vmem>>, vector<64x1xf32>
    %257 = vector.broadcast %256 : vector<64x1xf32> to vector<64x256xf32>
    %258 = arith.addf %255, %257 : vector<64x256xf32>
    %cst_102 = arith.constant 0.000000e+00 : f32
    %259 = vector.broadcast %cst_102 : f32 to vector<64x256xf32>
    %260 = arith.maximumf %258, %259 : vector<64x256xf32>
    %c0_103 = arith.constant 0 : index
    %c0_104 = arith.constant 0 : index
    %c0_105 = arith.constant 0 : index
    %261 = vector.load %arg16[%c0_103, %c0_104, %c0_105] : memref<1x64x256xf32, #tpu.memory_space<vmem>>, vector<1x64x256xf32>
    %262 = vector.shape_cast %261 : vector<1x64x256xf32> to vector<64x256xf32>
    %263 = vector.shape_cast %260 : vector<64x256xf32> to vector<1x64x256xf32>
    tpu.vector_store %arg16[%c0_103, %c0_104, %c0_105], %263 {strides = array<i32>} : memref<1x64x256xf32, #tpu.memory_space<vmem>>, vector<1x64x256xf32>,
    return
  }
  func.func @transform_0(%arg0: i32) -> (i32, i32, i32) {
    %c0_i32 = arith.constant 0 : i32
    %c0_i32_0 = arith.constant 0 : i32
    %c0_i32_1 = arith.constant 0 : i32
    return %arg0, %c0_i32, %c0_i32_0 : i32, i32, i32
  }
  func.func @transform_1(%arg0: i32) -> (i32, i32) {
    %c0_i32 = arith.constant 0 : i32
    %c0_i32_0 = arith.constant 0 : i32
    %c0_i32_1 = arith.constant 0 : i32
    return %c0_i32, %c0_i32_0 : i32, i32
  }
  func.func @transform_2(%arg0: i32) -> (i32, i32) {
    %c0_i32 = arith.constant 0 : i32
    %c0_i32_0 = arith.constant 0 : i32
    %c0_i32_1 = arith.constant 0 : i32
    return %c0_i32, %c0_i32_0 : i32, i32
  }
  func.func @transform_3(%arg0: i32) -> (i32, i32) {
    %c0_i32 = arith.constant 0 : i32
    %c0_i32_0 = arith.constant 0 : i32
    %c0_i32_1 = arith.constant 0 : i32
    return %c0_i32, %c0_i32_0 : i32, i32
  }
  func.func @transform_4(%arg0: i32) -> (i32, i32) {
    %c0_i32 = arith.constant 0 : i32
    %c0_i32_0 = arith.constant 0 : i32
    %c0_i32_1 = arith.constant 0 : i32
    return %c0_i32, %c0_i32_0 : i32, i32
  }
  func.func @transform_5(%arg0: i32) -> (i32, i32) {
    %c0_i32 = arith.constant 0 : i32
    %c0_i32_0 = arith.constant 0 : i32
    %c0_i32_1 = arith.constant 0 : i32
    return %c0_i32, %c0_i32_0 : i32, i32
  }
  func.func @transform_6(%arg0: i32) -> (i32, i32) {
    %c0_i32 = arith.constant 0 : i32
    %c0_i32_0 = arith.constant 0 : i32
    %c0_i32_1 = arith.constant 0 : i32
    return %c0_i32, %c0_i32_0 : i32, i32
  }
  func.func @transform_7(%arg0: i32) -> (i32, i32) {
    %c0_i32 = arith.constant 0 : i32
    %c0_i32_0 = arith.constant 0 : i32
    %c0_i32_1 = arith.constant 0 : i32
    return %c0_i32, %c0_i32_0 : i32, i32
  }
  func.func @transform_8(%arg0: i32) -> (i32, i32) {
    %c0_i32 = arith.constant 0 : i32
    %c0_i32_0 = arith.constant 0 : i32
    %c0_i32_1 = arith.constant 0 : i32
    return %c0_i32, %c0_i32_0 : i32, i32
  }
  func.func @transform_9(%arg0: i32) -> (i32, i32) {
    %c0_i32 = arith.constant 0 : i32
    %c0_i32_0 = arith.constant 0 : i32
    %c0_i32_1 = arith.constant 0 : i32
    return %c0_i32, %c0_i32_0 : i32, i32
  }
  func.func @transform_10(%arg0: i32) -> (i32, i32) {
    %c0_i32 = arith.constant 0 : i32
    %c0_i32_0 = arith.constant 0 : i32
    %c0_i32_1 = arith.constant 0 : i32
    return %c0_i32, %c0_i32_0 : i32, i32
  }
  func.func @transform_11(%arg0: i32) -> (i32, i32) {
    %c0_i32 = arith.constant 0 : i32
    %c0_i32_0 = arith.constant 0 : i32
    %c0_i32_1 = arith.constant 0 : i32
    return %c0_i32, %c0_i32_0 : i32, i32
  }
  func.func @transform_12(%arg0: i32) -> (i32, i32) {
    %c0_i32 = arith.constant 0 : i32
    %c0_i32_0 = arith.constant 0 : i32
    %c0_i32_1 = arith.constant 0 : i32
    return %c0_i32, %c0_i32_0 : i32, i32
  }
  func.func @transform_13(%arg0: i32) -> (i32, i32) {
    %c0_i32 = arith.constant 0 : i32
    %c0_i32_0 = arith.constant 0 : i32
    %c0_i32_1 = arith.constant 0 : i32
    return %c0_i32, %c0_i32_0 : i32, i32
  }
  func.func @transform_14(%arg0: i32) -> (i32, i32) {
    %c0_i32 = arith.constant 0 : i32
    %c0_i32_0 = arith.constant 0 : i32
    %c0_i32_1 = arith.constant 0 : i32
    return %c0_i32, %c0_i32_0 : i32, i32
  }
  func.func @transform_15(%arg0: i32) -> (i32, i32, i32) {
    %c0_i32 = arith.constant 0 : i32
    %c0_i32_0 = arith.constant 0 : i32
    %c0_i32_1 = arith.constant 0 : i32
    return %arg0, %c0_i32, %c0_i32_0 : i32, i32, i32
  }
}

</mosaic_0001>

<bundles_post_ra>
// kernel: skunit_forward.1
= control target key start
LH: loop header
LB: loop body
LE: loop exit
PB: predicated region body
PF: predicated region fallthrough
CT: control target
= control target key end

     0   :  { %s5415_s18 = smov 0   ;;  %s8859_s0 = inlined_call_operand.vmem [shape: f32[2,16,256], index: 0, kind: input, shape index: {}]   ;;  %s8860_s1 = inlined_call_operand.vmem [shape: f32[32,16], index: 1, kind: input, shape index: {}]   ;;  %s8861_s2 = inlined_call_operand.vmem [shape: f32[32,1], index: 2, kind: input, shape index: {}]   ;;  %s8862_s3 = inlined_call_operand.vmem [shape: f32[32,9], index: 3, kind: input, shape index: {}]   ;;  %s8863_s4 = inlined_call_operand.vmem [shape: f32[32,1], index: 4, kind: input, shape index: {}]   ;;  %s8864_s5 = inlined_call_operand.vmem [shape: f32[32,25], index: 5, kind: input, shape index: {}]   ;;  %s8865_s6 = inlined_call_operand.vmem [shape: f32[32,1], index: 6, kind: input, shape index: {}]   ;;  %s8866_s7 = inlined_call_operand.vmem [shape: f32[64,32], index: 7, kind: input, shape index: {}]   ;;  %s8867_s8 = inlined_call_operand.vmem [shape: f32[64,1], index: 8, kind: input, shape index: {}]   ;;  %s8868_s9 = inlined_call_operand.vmem [shape: f32[32,1], index: 9, kind: input, shape index: {}]   ;;  %s8869_s10 = inlined_call_operand.vmem [shape: f32[32,1], index: 10, kind: input, shape index: {}]   ;;  %s8870_s11 = inlined_call_operand.vmem [shape: f32[64,32], index: 11, kind: input, shape index: {}]   ;;  %s8871_s12 = inlined_call_operand.vmem [shape: f32[64,16], index: 12, kind: input, shape index: {}]   ;;  %s8872_s13 = inlined_call_operand.vmem [shape: f32[64,1], index: 13, kind: input, shape index: {}]   ;;  %s8873_s14 = inlined_call_operand.vmem [shape: f32[5,256], index: 14, kind: input, shape index: {}]   ;;  %s8874_s15 = inlined_call_operand.vmem [shape: f32[2,64,256], index: 15, kind: output, shape index: {}]  }
   0x1 LB: > { %s5002_s19 = sadd.s32 4294967295, %s5293_s18   ;;  %p5006_p0 = scmp.ge.s32.totalorder %s5293_s18, 1  ;;  %s5293_s18 = sphi %s5415_s18, %s25_s18  }
   0x2   : > { %p437_p1 = scmp.lt.s32.totalorder %s5293_s18, 3 }
   0x4   : > { %p438_p2 = pnand %p5006_p0, %p437_p1 }
   0x6   : > { %441 = sbr.rel (%p438_p2) target bundleno = 4977 (0x1371), region = 80 }
   0xb   : > { %v5426_v0 = vld [vmem:[%s8862_s3] sm:$0xff]  ;;  %v505_v1 = vld [vmem:[%s8861_s2 + $0x10] sm:$0xff]  ;;  %p485_p3 = scmp.lt.s32.totalorder %s5002_s19, 1  ;;  %v8891_v3 = vmov 0   ;;  %v5453_v8 = vld [vmem:[%s8862_s3 + $0x8] sm:$0xff]  ;;  %vm527_vm0 = vcmask 130048  }
   0xc   : > { %v503_v2 = vld [vmem:[%s8861_s2] sm:$0xff]  ;;  %5119 = vset.pattern.permute.xlu2 %v8891_v3  ;;  %5118 = vset.pattern.permute.xlu1 %v8891_v3  ;;  %v506_v10 = vld [vmem:[%s8861_s2 + $0x18] sm:$0xff]  ;;  %v504_v11 = vld [vmem:[%s8861_s2 + $0x8] sm:$0xff]  ;;  %v8877_v14 = vmov 3   ;;  %v8885_v17 = vmov 6   ;;  %s5298_s25 = smov 111  }
   0xd   : > { %5117 = vset.pattern.permute.xlu0 %v8891_v3  ;;  %644 = vperm.xlu2 %5119, %v5426_v0   ;;  %s9420_s19 = smov (!%p485_p3, %s5002_s19), 1  ;;  %v499_v9 = vld [vmem:[%s8860_s1] sm:$0xff]  ;;  %v500_v12 = vld [vmem:[%s8860_s1 + $0x8] sm:$0xff]  ;;  %v5473_v13 = vld [vmem:[%s8862_s3 + $0x18] sm:$0xff]  ;;  %v8889_v21 = vmov 1   ;;  %v8875_v23 = vmov 4  }
   0xe   : > { %519 = vperm.xlu1 %5118, %v505_v1   ;;  %509 = vperm.xlu0 %5117, %v503_v2   ;;  %s5065_s26 = sshll.u32 %s9420_s19, 5  ;;  %v501_v15 = vld [vmem:[%s8860_s1 + $0x10] sm:$0xff]  ;;  %v502_v18 = vld [vmem:[%s8860_s1 + $0x18] sm:$0xff]  ;;  %v5503_v19 = vld [vmem:[%s8873_s14 + $0x1] ss:$8 sm:$0x3] }
   0xf   : > { %s5444_s29 = scalar_lea.vmem %s8859_s0, %s5065_s26  ;;  %v5489_v16 = vld [vmem:[%s8862_s3 + $0x10] sm:$0xff]  ;;  %v8881_v20 = vperm.slane %v5503_v19, 0  ;;  %v8882_v22 = vperm.slane %v5503_v19, 1  ;;  %v8879_v24 = vmov 7   ;;  %s5302_s26 = smov 112   ;;  %vm835_vm1 = vcmask 785408  }
  0x10   : > { %v497_v4 = vld [vmem:[%s5444_s29 + $0x10] sm:$0xff]  ;;  %v498_v5 = vld [vmem:[%s5444_s29 + $0x18] sm:$0xff]  ;;  %v495_v6 = vld [vmem:[%s5444_s29] sm:$0xff]  ;;  %s5303_s27 = smov 96   ;;  %s5306_s16 = smov 127   ;;  %vm738_vm2 = vcmask 916480  }
  0x11   : > { %554 = vmatpush.msra.mxu0 %v497_v4  ;;  %583 = vmatpush.msra.mxu1 %v498_v5  ;;  %v496_v7 = vld [vmem:[%s5444_s29 + $0x8] sm:$0xff]  ;;  %s5308_s21 = smov 113   ;;  %s5309_s22 = smov 126   ;;  %vm1417_vm3 = vcmask 924672   ;;  %vm1843_vm4 = vcmask 654336   ;;  %vm1940_vm5 = vcmask 523264  }
  0x12   : > { %5067 = vmatpush.msra.mxu3 %v497_v4  ;;  %s5312_s20 = smov 80   ;;  %s5319_s28 = smov 95   ;;  %vm2414_vm6 = vcmask 777216   ;;  %vm3395_vm7 = vcmask 793600   ;;  %vm3902_vm8 = vcmask 801792   ;;  %vm1981_vm9 = vcmask 769024  }
  0x13   : > { %555 = vmatpush.msra.mxu0 %v495_v6  ;;  %584 = vmatpush.msra.mxu1 %v496_v7  ;;  %s5330_s23 = smov 97   ;;  %vm1155_vm10 = vcmask 1039360   ;;  %vm1470_vm11 = vcmask 1031168   ;;  %vm3448_vm12 = vcmask 1022976   ;;  %vm3955_vm13 = vcmask 1014784   ;;  %s5334_s24 = smov 17  }
  0x14   : > { %5011 = vmatmul.msk.f32.vlgmr.msra.gmra.mxu0 %vm527_vm0, %v499_v9  ;;  %5015 = vmatmul.msk.f32.vlgmr.msra.gmra.mxu1 %vm527_vm0, %v499_v9  ;;  %vm877_vm14 = vcmask 908288   ;;  %vm4072_vm15 = vcmask 138240  }
  0x15   : > { %649 = vperm.xlu2 %5119, %v5453_v8   ;;  %5068 = vmatpush.msra.mxu3 %v495_v6 }
  0x16   : > { %524 = vperm.xlu1 %5118, %v506_v10   ;;  %514 = vperm.xlu0 %5117, %v504_v11  }
  0x17   : > { %4666 = vmatpush.msrb.mxu0 %v498_v5 }
  0x19   : > { %4667 = vmatpush.msrb.mxu0 %v496_v7 }
  0x1c   : > { %5012 = vmatmul.msk.f32.gmra.mxu0 %vm527_vm0, %v500_v12  ;;  %5016 = vmatmul.msk.f32.gmra.mxu1 %vm527_vm0, %v500_v12 }
  0x1d   : > { %5120 = vset.pattern.permute.xlu2 %v8877_v14 }
  0x1e   : > { %659 = vperm.xlu1 %5118, %v5473_v13   ;;  %5121 = vset.pattern.permute.xlu0 %v8877_v14 }
  0x1f   : > { %675 = vperm.xlu2 %5120, %v5426_v0   ;;  %679 = vperm.xlu0 %5121, %v5453_v8  }
  0x24   : > { %5013 = vmatmul.msk.f32.gmra.mxu0 %vm527_vm0, %v501_v15  ;;  %5017 = vmatmul.msk.f32.gmra.mxu1 %vm527_vm0, %v501_v15 }
  0x26   : > { %5122 = vset.pattern.permute.xlu1 %v8877_v14 }
  0x27   : > { %687 = vperm.xlu2 %5120, %v5473_v13   ;;  %683 = vperm.xlu1 %5122, %v5489_v16  }
  0x28   : > { %5125 = vset.pattern.permute.xlu0 %v8885_v17 }
  0x29   : > { %780 = vperm.xlu0 %5125, %v5489_v16  }
  0x2c   : > { %5014 = vmatmul.msk.f32.gmra.mxu0 %vm527_vm0, %v502_v18  ;;  %5018 = vmatmul.msk.f32.gmra.mxu1 %vm527_vm0, %v502_v18 }
  0x2f   : > { %5124 = vset.pattern.permute.xlu2 %v8885_v17  ;;  %5123 = vset.pattern.permute.xlu1 %v8885_v17 }
  0x30   : > { %776 = vperm.xlu2 %5124, %v5453_v8   ;;  %772 = vperm.xlu1 %5123, %v5426_v0  }
  0x31   : > { %873 = vrot.lane.b32.xlu0 %v8881_v20, %s5298_s25 }
  0x32   : > { %5127 = vset.pattern.permute.xlu0 %v8889_v21 }
  0x38   : > { %5126 = vset.pattern.permute.xlu2 %v8889_v21  ;;  %784 = vperm.xlu1 %5123, %v5473_v13  }
  0x39   : > { %899 = vperm.xlu0 %5127, %v5453_v8   ;;  %895 = vperm.xlu2 %5126, %v5426_v0  }
  0x40   : > { %875 = vrot.lane.b32.xlu1 %v8882_v22, %s5298_s25  ;;  %s5315_s25 = smov 94  }
  0x41   : > { %5131 = vset.pattern.permute.xlu0 %v8875_v23  ;;  %907 = vperm.xlu2 %5126, %v5473_v13  }
  0x42   : > { %931 = vperm.xlu0 %5131, %v5489_v16   ;;  %5128 = vset.pattern.permute.xlu1 %v8889_v21 }
  0x48   : > { %903 = vperm.xlu1 %5128, %v5489_v16  }
  0x49   : > { %5130 = vset.pattern.permute.xlu2 %v8875_v23 }
  0x4a   : > { %5133 = vset.pattern.permute.xlu0 %v8879_v24  ;;  %927 = vperm.xlu2 %5130, %v5453_v8  }
  0x50   : > { %5129 = vset.pattern.permute.xlu1 %v8875_v23 }
  0x51   : > { %923 = vperm.xlu1 %5129, %v5426_v0  }
  0x52   : > { %5132 = vset.pattern.permute.xlu2 %v8879_v24 }
  0x53   : > { %999 = vperm.xlu2 %5132, %v5426_v0  }
  0x59   : > { %935 = vperm.xlu1 %5129, %v5473_v13  }
  0x61   : > { %5134 = vset.pattern.permute.xlu1 %v8879_v24 }
  0x67   : > { %v5536_v25 = vpop.permute.xlu2 %644 }
  0x68   : > { %9045 = vst [vmem:[#allocation3_spill] sm:$0xff] %v5536_v25 }
  0x6f   : > { %v5538_v26 = vpop.permute.xlu2 %649 }
  0x70   : > { %9046 = vst [vmem:[#allocation4_spill] sm:$0xff] %v5538_v26 }
  0x79   : > { %v5540_v27 = vpop.permute.xlu2 %675 }
  0x7a   : > { %v690_v28 = vmul.f32 0.0, %v5540_v27 }
  0x7c   : > { %714 = vrot.lane.b32.xlu1 %v690_v28, %s5302_s26 }
  0x80   : > { %v520_v29 = vpop.permute.xlu1 %519  ;;  %v510_v30 = vpop.permute.xlu0 %509 }
  0x81   : > { %v5544_v31 = vpop.permute.xlu2 %687 }
  0x82   : > { %v699_v53 = vmul.f32 0.0, %v5544_v31 }
  0x88   : > { %v5546_v32 = vpop.permute.xlu1 %524  ;;  %v515_v33 = vpop.permute.xlu0 %514 }
  0x8a   : > { %v5548_v34 = vpop.permute.xlu2 %776 }
  0x8b   : > { %v792_v60 = vmul.f32 0.0, %v5548_v34 }
  0x90   : > { %v5550_v35 = vpop.permute.xlu1 %659 }
  0x91   : > { %9047 = vst [vmem:[#allocation5_spill] sm:$0xff] %v5550_v35  ;;  %v5552_v36 = vpop.permute.xlu0 %679  ;;  %v557_v38 = vpop.f32.mrf.mxu0 }
  0x92   : > { %v693_v37 = vmul.f32 0.0, %v5552_v36  ;;  %v586_v39 = vpop.f32.mrf.mxu1  ;;  %v558_v12 = vadd.f32 %v557_v38, %v510_v30 }
  0x93   : > { %v587_v40 = vadd.f32 %v586_v39, %v510_v30  ;;  %v5560_v43 = vpop.permute.xlu2 %895 }
  0x94   : > { %720 = vrot.lane.b32.xlu1 %v693_v37, %s5302_s26 }
  0x95   : > { %v5556_v41 = vmax.f32 %v587_v40, 0.0 }
  0x97   : > { %9048 = vst [vmem:[#allocation6_spill] sm:$0xff] %v5556_v41  ;;  %v692_v42 = vmul.f32 %v5540_v27, %v5556_v41 }
  0x99   : > { %v5562_v44 = vpop.permute.xlu1 %683  ;;  %718 = vrot.lane.b32.xlu0 %v692_v42, %s5302_s26  ;;  %v560_v48 = vpop.f32.mrf.mxu0 }
  0x9a   : > { %v696_v45 = vmul.f32 0.0, %v5562_v44  ;;  %v589_v46 = vpop.f32.mrf.mxu1  ;;  %v561_v50 = vadd.f32 %v560_v48, %v515_v33 }
  0x9b   : > { %v590_v47 = vadd.f32 %v589_v46, %v515_v33  ;;  %v5573_v54 = vpop.permute.xlu2 %907  ;;  %v781_v63 = vpop.permute.xlu0 %780  ;;  %v5604_v33 = vmax.f32 %v558_v12, 0.0 }
  0x9c   : > { %726 = vrot.lane.b32.xlu1 %v696_v45, %s5302_s26  ;;  %v5575_v56 = vmax.f32 %v561_v50, 0.0  ;;  %v795_v4 = vmul.f32 0.0, %v781_v63 }
  0x9d   : > { %v5567_v49 = vmax.f32 %v590_v47, 0.0  ;;  %9050 = vst [vmem:[#allocation8_spill] sm:$0xff] %v5604_v33  ;;  %v691_v40 = vmul.f32 %v5540_v27, %v5604_v33 }
  0x9e   : > { %v790_v57 = vmul.f32 %v5548_v34, %v5575_v56 }
  0x9f   : > { %v695_v51 = vmul.f32 %v5552_v36, %v5567_v49  ;;  %v791_v50 = vmul.f32 %v5548_v34, %v5567_v49 }
  0xa1   : > { %724 = vrot.lane.b32.xlu0 %v695_v51, %s5302_s26  ;;  %v563_v7 = vpop.f32.mrf.mxu0 }
  0xa2   : > { %v773_v52 = vpop.permute.xlu1 %772  ;;  %v592_v61 = vpop.f32.mrf.mxu1  ;;  %v564_v9 = vadd.f32 %v563_v7, %v520_v29 }
  0xa3   : > { %v789_v55 = vmul.f32 0.0, %v773_v52  ;;  %v788_v59 = vmul.f32 %v773_v52, %v5556_v41  ;;  %v593_v1 = vadd.f32 %v592_v61, %v520_v29  ;;  %v5614_v42 = vpop.permute.xlu0 %873  ;;  %v787_v27 = vmul.f32 %v773_v52, %v5604_v33 }
  0xa4   : > { %732 = vrot.lane.b32.xlu1 %v699_v53, %s5302_s26  ;;  %v928_v62 = vpop.permute.xlu2 %927  ;;  %v5601_v18 = vmax.f32 %v564_v9, 0.0  ;;  %9051 = vst [vmem:[#allocation9_spill] sm:$0xff] %v5614_v42 }
  0xa5   : > { %815 = vrot.lane.b32.xlu2 %v789_v55, %s5303_s27  ;;  %v941_v2 = vmul.f32 %v928_v62, %v5567_v49  ;;  %v5592_v6 = vmax.f32 %v593_v1, 0.0  ;;  %v940_v61 = vmul.f32 %v928_v62, %v5575_v56 }
  0xa6   : > { %v793_v29 = vmul.f32 %v781_v63, %v5601_v18 }
  0xa7   : > { %v698_v10 = vmul.f32 %v5562_v44, %v5592_v6  ;;  %v794_v52 = vmul.f32 %v781_v63, %v5592_v6 }
  0xa9   : > { %817 = vrot.lane.b32.xlu0 %v790_v57, %s5303_s27  ;;  %v566_v45 = vpop.f32.mrf.mxu0 }
  0xaa   : > { %v5581_v58 = vpop.permute.xlu1 %784  ;;  %v595_v28 = vpop.f32.mrf.mxu1  ;;  %v567_v46 = vadd.f32 %v566_v45, %v5546_v32 }
  0xab   : > { %v798_v15 = vmul.f32 0.0, %v5581_v58  ;;  %v596_v37 = vadd.f32 %v595_v28, %v5546_v32  ;;  %v5629_v51 = vpop.permute.xlu0 %899 }
  0xac   : > { %813 = vrot.lane.b32.xlu1 %v788_v59, %s5303_s27  ;;  %v5623_v48 = vmax.f32 %v567_v46, 0.0  ;;  %v694_v59 = vmul.f32 %v5552_v36, %v5575_v56  ;;  %v697_v36 = vmul.f32 %v5562_v44, %v5601_v18 }
  0xad   : > { %821 = vrot.lane.b32.xlu2 %v792_v60, %s5303_s27  ;;  %v5611_v30 = vmax.f32 %v596_v37, 0.0  ;;  %v1000_v1 = vpop.permute.xlu2 %999 }
  0xae   : > { %9052 = vst [vmem:[#allocation10_spill] sm:$0xff] %v5623_v48  ;;  %v796_v32 = vmul.f32 %v5581_v58, %v5623_v48  ;;  %v1014_v7 = vmul.f32 %v1000_v1, %v5604_v33  ;;  %v1015_v12 = vmul.f32 %v1000_v1, %v5556_v41 }
  0xaf   : > { %v701_v47 = vmul.f32 %v5544_v31, %v5611_v30  ;;  %v797_v63 = vmul.f32 %v5581_v58, %v5611_v30  ;;  %v700_v58 = vmul.f32 %v5544_v31, %v5623_v48 }
  0xb1   : > { %960 = vrot.lane.b32.xlu0 %v941_v2, %s5302_s26  ;;  %v1016_v2 = vmul.f32 0.0, %v1000_v1 }
  0xb2   : > { %v5589_v5 = vpop.permute.xlu1 %875 }
  0xb3   : > { %9049 = vst [vmem:[#allocation7_spill] sm:$0xff] %v5589_v5 }
  0xb4   : > { %v932_v57 = vpop.permute.xlu0 %931 }
  0xb5   : > { %827 = vrot.lane.b32.xlu2 %v795_v4, %s5303_s27  ;;  %v942_v60 = vmul.f32 %v932_v57, %v5601_v18  ;;  %v943_v62 = vmul.f32 %v932_v57, %v5592_v6 }
  0xb9   : > { %730 = vrot.lane.b32.xlu0 %v698_v10, %s5302_s26 }
  0xba   : > { %v5597_v11 = vpop.permute.xlu1 %903 }
  0xbd   : > { %833 = vrot.lane.b32.xlu2 %v798_v15, %s5303_s27 }
  0xc1   : > { %823 = vrot.lane.b32.xlu0 %v793_v29, %s5303_s27 }
  0xc3   : > { %v924_v39 = vpop.permute.xlu1 %923 }
  0xc4   : > { %v939_v38 = vmul.f32 %v924_v39, %v5556_v41  ;;  %v938_v53 = vmul.f32 %v924_v39, %v5604_v33 }
  0xc5   : > { %716 = vrot.lane.b32.xlu2 %v691_v40, %s5302_s26 }
  0xc6   : > { %956 = vrot.lane.b32.xlu1 %v939_v38, %s5302_s26 }
  0xc9   : > { %736 = vrot.lane.b32.xlu0 %v701_v47, %s5302_s26 }
  0xcb   : > { %v936_v55 = vpop.permute.xlu1 %935 }
  0xcc   : > { %v944_v34 = vmul.f32 %v936_v55, %v5623_v48  ;;  %v945_v4 = vmul.f32 %v936_v55, %v5611_v30 }
  0xcd   : > { %811 = vrot.lane.b32.xlu2 %v787_v27, %s5303_s27 }
  0xce   : > { %819 = vrot.lane.b32.xlu1 %v791_v50, %s5303_s27 }
  0xd1   : > { %829 = vrot.lane.b32.xlu0 %v796_v32, %s5303_s27 }
  0xd5   : > { %954 = vrot.lane.b32.xlu2 %v938_v53, %s5302_s26 }
  0xd6   : > { %825 = vrot.lane.b32.xlu1 %v794_v52, %s5303_s27 }
  0xd9   : > { %966 = vrot.lane.b32.xlu0 %v944_v34, %s5302_s26 }
  0xdd   : > { %722 = vrot.lane.b32.xlu2 %v694_v59, %s5302_s26 }
  0xde   : > { %962 = vrot.lane.b32.xlu1 %v942_v60, %s5302_s26 }
  0xe1   : > { %1003 = vperm.xlu0 %5133, %v5453_v8  }
  0xe5   : > { %958 = vrot.lane.b32.xlu2 %v940_v61, %s5302_s26 }
  0xe6   : > { %831 = vrot.lane.b32.xlu1 %v797_v63, %s5303_s27 }
  0xe9   : > { %1042 = vrot.lane.b32.xlu0 %v1016_v2, %s5303_s27 }
  0xed   : > { %728 = vrot.lane.b32.xlu2 %v697_v36, %s5302_s26 }
  0xee   : > { %968 = vrot.lane.b32.xlu1 %v945_v4, %s5302_s26  ;;  %v5670_v10 = vpop.permute.xlu1 %714 }
  0xef   : > { %9055 = vst [vmem:[#allocation13_spill] sm:$0xff] %v5670_v10 }
  0xf5   : > { %964 = vrot.lane.b32.xlu2 %v943_v62, %s5302_s26 }
  0xf6   : > { %1007 = vperm.xlu1 %5134, %v5489_v16  }
  0xfd   : > { %734 = vrot.lane.b32.xlu2 %v700_v58, %s5302_s26 }
  0xfe   : > { %1038 = vrot.lane.b32.xlu1 %v1014_v7, %s5303_s27  ;;  %v8883_v7 = vmov 2  }
  0xff   : > { %v5665_v44 = vpop.permute.xlu2 %815  ;;  %5135 = vset.pattern.permute.xlu0 %v8883_v7  ;;  %5136 = vset.pattern.permute.xlu1 %v8883_v7 }
 0x100   : > { %9053 = vst [vmem:[#allocation11_spill] sm:$0xff] %v5665_v44 }
 0x105   : > { %1011 = vperm.xlu2 %5132, %v5473_v13  }
 0x106   : > { %v5678_v28 = vpop.permute.xlu1 %720 }
 0x107   : > { %v5668_v9 = vpop.permute.xlu2 %821  ;;  %9058 = vst [vmem:[#allocation16_spill] sm:$0xff] %v5678_v28 }
 0x108   : > { %9054 = vst [vmem:[#allocation12_spill] sm:$0xff] %v5668_v9 }
 0x10b   : > { %v5673_v15 = vpop.permute.xlu0 %718 }
 0x10c   : > { %9056 = vst [vmem:[#allocation14_spill] sm:$0xff] %v5673_v15 }
 0x10d   : > { %1040 = vrot.lane.b32.xlu2 %v1015_v12, %s5303_s27 }
 0x10e   : > { %v5684_v39 = vpop.permute.xlu1 %726  ;;  %5137 = vset.pattern.permute.xlu2 %v8883_v7 }
 0x10f   : > { %v5676_v31 = vpop.permute.xlu2 %827  ;;  %9061 = vst [vmem:[#allocation19_spill] sm:$0xff] %v5684_v39 }
 0x110   : > { %9057 = vst [vmem:[#allocation15_spill] sm:$0xff] %v5676_v31 }
 0x113   : > { %v5680_v37 = vpop.permute.xlu0 %724 }
 0x114   : > { %9059 = vst [vmem:[#allocation17_spill] sm:$0xff] %v5680_v37 }
 0x116   : > { %v5692_v46 = vpop.permute.xlu1 %732 }
 0x117   : > { %v5682_v29 = vpop.permute.xlu2 %833  ;;  %9064 = vst [vmem:[#allocation22_spill] sm:$0xff] %v5692_v46 }
 0x118   : > { %9060 = vst [vmem:[#allocation18_spill] sm:$0xff] %v5682_v29 }
 0x11b   : > { %v5686_v40 = vpop.permute.xlu0 %817 }
 0x11c   : > { %9062 = vst [vmem:[#allocation20_spill] sm:$0xff] %v5686_v40 }
 0x11e   : > { %v5698_v50 = vpop.permute.xlu1 %813 }
 0x11f   : > { %v5688_v38 = vpop.permute.xlu2 %716  ;;  %9067 = vst [vmem:[#allocation25_spill] sm:$0xff] %v5698_v50 }
 0x120   : > { %9063 = vst [vmem:[#allocation21_spill] sm:$0xff] %v5688_v38 }
 0x123   : > { %v5690_v45 = vpop.permute.xlu0 %960 }
 0x127   : > { %v5694_v47 = vpop.permute.xlu2 %811 }
 0x128   : > { %9065 = vst [vmem:[#allocation23_spill] sm:$0xff] %v5694_v47 }
 0x12b   : > { %v5696_v27 = vpop.permute.xlu0 %730 }
 0x12c   : > { %9066 = vst [vmem:[#allocation24_spill] sm:$0xff] %v5696_v27 }
 0x12f   : > { %v5700_v32 = vpop.permute.xlu2 %954 }
 0x133   : > { %v5702_v53 = vpop.permute.xlu0 %823 }
 0x134   : > { %9068 = vst [vmem:[#allocation26_spill] sm:$0xff] %v5702_v53 }
 0x137   : > { %v5706_v55 = vpop.permute.xlu2 %722 }
 0x138   : > { %v5704_v52 = vpop.permute.xlu1 %956  ;;  %9069 = vst [vmem:[#allocation27_spill] sm:$0xff] %v5706_v55 }
 0x13b   : > { %v5708_v34 = vpop.permute.xlu0 %736 }
 0x13c   : > { %9070 = vst [vmem:[#allocation28_spill] sm:$0xff] %v5708_v34 }
 0x13f   : > { %v5714_v60 = vpop.permute.xlu2 %958 }
 0x140   : > { %v5710_v57 = vpop.permute.xlu1 %819 }
 0x141   : > { %9071 = vst [vmem:[#allocation29_spill] sm:$0xff] %v5710_v57 }
 0x143   : > { %v5712_v59 = vpop.permute.xlu0 %829 }
 0x144   : > { %9072 = vst [vmem:[#allocation30_spill] sm:$0xff] %v5712_v59 }
 0x147   : > { %v5720_v1 = vpop.permute.xlu2 %728 }
 0x148   : > { %v5716_v61 = vpop.permute.xlu1 %825  ;;  %9074 = vst [vmem:[#allocation32_spill] sm:$0xff] %v5720_v1 }
 0x149   : > { %9073 = vst [vmem:[#allocation31_spill] sm:$0xff] %v5716_v61 }
 0x14b   : > { %v5718_v63 = vpop.permute.xlu0 %966 }
 0x14f   : > { %v5734_v23 = vpop.permute.xlu2 %964 }
 0x150   : > { %v5722_v2 = vpop.permute.xlu1 %962 }
 0x153   : > { %v1004_v36 = vpop.permute.xlu0 %1003 }
 0x154   : > { %v1019_v4 = vmul.f32 0.0, %v1004_v36  ;;  %v1017_v62 = vmul.f32 %v1004_v36, %v5575_v56  ;;  %v1018_v58 = vmul.f32 %v1004_v36, %v5567_v49 }
 0x156   : > { %1048 = vrot.lane.b32.xlu0 %v1019_v4, %s5303_s27  ;;  %1044 = vrot.lane.b32.xlu1 %v1017_v62, %s5303_s27 }
 0x157   : > { %1046 = vrot.lane.b32.xlu2 %v1018_v58, %s5303_s27  ;;  %v5738_v36 = vpop.permute.xlu2 %734 }
 0x158   : > { %v5732_v12 = vpop.permute.xlu1 %831  ;;  %9076 = vst [vmem:[#allocation34_spill] sm:$0xff] %v5738_v36 }
 0x159   : > { %9075 = vst [vmem:[#allocation33_spill] sm:$0xff] %v5732_v12 }
 0x15f   : > { %v1012_v4 = vpop.permute.xlu2 %1011 }
 0x160   : > { %v5736_v14 = vpop.permute.xlu1 %968  ;;  %v1023_v62 = vmul.f32 %v1012_v4, %v5623_v48  ;;  %v1025_v58 = vmul.f32 0.0, %v1012_v4  ;;  %v1024_v17 = vmul.f32 %v1012_v4, %v5611_v30 }
 0x168   : > { %v1008_v24 = vpop.permute.xlu1 %1007 }
 0x169   : > { %v1022_v20 = vmul.f32 0.0, %v1008_v24  ;;  %v1020_v22 = vmul.f32 %v1008_v24, %v5601_v18  ;;  %v1021_v7 = vmul.f32 %v1008_v24, %v5592_v6 }
 0x16b   : > { %1054 = vrot.lane.b32.xlu0 %v1022_v20, %s5303_s27  ;;  %1050 = vrot.lane.b32.xlu1 %v1020_v22, %s5303_s27  ;;  %v5753_v20 = vld [vmem:[%s8873_s14 + $0x2] ss:$8 sm:$0x3] }
 0x16c   : > { %1052 = vrot.lane.b32.xlu2 %v1021_v7, %s5303_s27  ;;  %9077 = vst [vmem:[#allocation35_spill] sm:$0xff] %v5753_v20  ;;  %v8888_v22 = vperm.slane %v5753_v20, 0  ;;  %v8887_v24 = vperm.slane %v5753_v20, 1  ;;  %v5774_v7 = vpop.permute.xlu2 %1040 }
 0x173   : > { %1056 = vrot.lane.b32.xlu1 %v1023_v62, %s5303_s27  ;;  %1060 = vrot.lane.b32.xlu0 %v1025_v58, %s5303_s27  ;;  %v1043_v58 = vpop.permute.xlu0 %1042 }
 0x174   : > { %1058 = vrot.lane.b32.xlu2 %v1024_v17, %s5303_s27  ;;  %v8894_v17 = vmov 5  }
 0x17b   : > { %1099 = vrot.lane.b32.xlu1 %v8888_v22, %s5302_s26  ;;  %1189 = vperm.xlu0 %5135, %v5426_v0  }
 0x17c   : > { %1101 = vrot.lane.b32.xlu2 %v8887_v24, %s5302_s26  ;;  %v1039_v24 = vpop.permute.xlu1 %1038 }
 0x183   : > { %1193 = vperm.xlu1 %5136, %v5453_v8   ;;  %5139 = vset.pattern.permute.xlu0 %v8894_v17 }
 0x184   : > { %1197 = vperm.xlu2 %5137, %v5489_v16   ;;  %1221 = vperm.xlu0 %5139, %v5453_v8  }
 0x18b   : > { %1201 = vperm.xlu1 %5136, %v5473_v13  }
 0x18c   : > { %5138 = vset.pattern.permute.xlu2 %v8894_v17 }
 0x18d   : > { %1217 = vperm.xlu2 %5138, %v5426_v0  }
 0x193   : > { %5140 = vset.pattern.permute.xlu1 %v8894_v17 }
 0x194   : > { %1225 = vperm.xlu1 %5140, %v5489_v16  }
 0x195   : > { %1229 = vperm.xlu2 %5138, %v5473_v13  }
 0x1b1   : > { %v5776_v4 = vpop.permute.xlu2 %1046 }
 0x1c6   : > { %v5778_v62 = vpop.permute.xlu2 %1052 }
 0x1c8   : > { %v1049_v21 = vpop.permute.xlu0 %1048  ;;  %v5782_v3 = vpop.permute.xlu1 %1044 }
 0x1ce   : > { %v5780_v22 = vpop.permute.xlu2 %1058 }
 0x1d6   : > { %v5784_v50 = vpop.permute.xlu2 %1101 }
 0x1dd   : > { %v1055_v17 = vpop.permute.xlu0 %1054  ;;  %v5786_v44 = vpop.permute.xlu1 %1050 }
 0x1de   : > { %v5788_v15 = vpop.permute.xlu2 %1197 }
 0x1e5   : > { %v5790_v9 = vpop.permute.xlu1 %1056  ;;  %v5792_v57 = vpop.permute.xlu0 %1060 }
 0x1e7   : > { %v1218_v37 = vpop.permute.xlu2 %1217 }
 0x1e8   : > { %v1233_v47 = vmul.f32 %v1218_v37, %v5556_v41  ;;  %v1232_v25 = vmul.f32 %v1218_v37, %v5604_v33  ;;  %v1234_v10 = vmul.f32 0.0, %v1218_v37  ;;  %v912_v37 = vmul.f32 %v5560_v43, %v5556_v41 }
 0x1ea   : > { %1258 = vrot.lane.b32.xlu2 %v1233_v47, %s5302_s26  ;;  %1256 = vrot.lane.b32.xlu1 %v1232_v25, %s5302_s26  ;;  %v910_v25 = vmul.f32 0.0, %v5560_v43  ;;  %v988_v47 = vadd.f32 %v5704_v52, %v912_v37 }
 0x1eb   : > { %1260 = vrot.lane.b32.xlu0 %v1234_v10, %s5302_s26  ;;  %v1063_v10 = vsel %vm835_vm1, %v5774_v7, %v1043_v58  ;;  %v1065_v58 = vsel %vm835_vm1, %v5776_v4, %v1049_v21  ;;  %v970_v21 = vsel %vm738_vm2, %v5700_v32, %v5704_v52 }
 0x1ec   : > { %v986_v61 = vadd.f32 %v5700_v32, %v910_v25 }
 0x1ed   : > { %v5799_v38 = vpop.permute.xlu1 %1099  ;;  %v5801_v40 = vpop.permute.xlu0 %1189 }
 0x1ee   : > { %v1082_v29 = vadd.f32 %v1039_v24, %v986_v61 }
 0x1f5   : > { %v5803_v26 = vpop.permute.xlu1 %1193 }
 0x1f6   : > { %v1222_v28 = vpop.permute.xlu0 %1221 }
 0x1f7   : > { %v1236_v55 = vmul.f32 %v1222_v28, %v5567_v49  ;;  %v1235_v5 = vmul.f32 %v1222_v28, %v5575_v56  ;;  %v1237_v31 = vmul.f32 0.0, %v1222_v28  ;;  %v1084_v28 = vadd.f32 %v1063_v10, %v988_v47 }
 0x1f8   : > { %v918_v47 = vmul.f32 %v5597_v11, %v5592_v6 }
 0x1f9   : > { %1264 = vrot.lane.b32.xlu2 %v1236_v55, %s5302_s26  ;;  %1262 = vrot.lane.b32.xlu1 %v1235_v5, %s5302_s26  ;;  %v1109_v12 = vmul.f32 %v5784_v50, %v1084_v28  ;;  %v1107_v55 = vmul.f32 %v5799_v38, %v1082_v29  ;;  %v915_v5 = vmul.f32 %v5629_v51, %v5567_v49 }
 0x1fa   : > { %1266 = vrot.lane.b32.xlu0 %v1237_v31, %s5302_s26  ;;  %v913_v31 = vmul.f32 0.0, %v5629_v51 }
 0x1fb   : > { %v991_v37 = vadd.f32 %v5690_v45, %v915_v5 }
 0x1fc   : > { %v989_v61 = vadd.f32 %v5714_v60, %v913_v31  ;;  %v911_v31 = vmul.f32 %v5560_v43, %v5604_v33 }
 0x1fd   : > { %v5817_v27 = vpop.permute.xlu1 %1201  ;;  %v1087_v25 = vadd.f32 %v1065_v58, %v991_v37  ;;  %v994_v58 = vadd.f32 %v5734_v23, %v918_v47  ;;  %v916_v37 = vmul.f32 0.0, %v5597_v11 }
 0x1fe   : > { %v1085_v29 = vadd.f32 %v5782_v3, %v989_v61  ;;  %v1062_v61 = vsel %vm835_vm1, %v1039_v24, %v5774_v7  ;;  %v987_v32 = vadd.f32 %v970_v21, %v911_v31  ;;  %v921_v7 = vmul.f32 %v5573_v54, %v5611_v30 }
 0x1ff   : > { %v992_v43 = vadd.f32 %v5722_v2, %v916_v37  ;;  %v1069_v21 = vsel %vm835_vm1, %v5780_v22, %v5792_v57 }
 0x200   : > { %v1110_v5 = vmul.f32 %v5799_v38, %v1085_v29  ;;  %v1083_v29 = vadd.f32 %v1062_v61, %v987_v32  ;;  %v997_v31 = vadd.f32 %v5736_v14, %v921_v7 }
 0x201   : > { %1135 = vrot.lane.b32.xlu2 %v1109_v12, %s5306_s16  ;;  %v1112_v12 = vmul.f32 %v5784_v50, %v1087_v25  ;;  %v1103_v25 = vsel %vm738_vm2, %v5799_v38, %v5784_v50  ;;  %v1088_v24 = vadd.f32 %v5786_v44, %v992_v43  ;;  %v972_v43 = vsel %vm738_vm2, %v5722_v2, %v5734_v23 }
 0x202   : > { %1131 = vrot.lane.b32.xlu0 %v1107_v55, %s5306_s16  ;;  %v1067_v55 = vsel %vm835_vm1, %v5778_v62, %v1055_v17  ;;  %v8910_v17 = vmov 8   ;;  %v920_v2 = vmul.f32 %v5573_v54, %v5623_v48 }
 0x203   : > { %v1090_v52 = vadd.f32 %v1067_v55, %v994_v58  ;;  %5142 = vset.pattern.permute.xlu2 %v8910_v17  ;;  %5143 = vset.pattern.permute.xlu0 %v8910_v17  ;;  %v1113_v55 = vmul.f32 %v5799_v38, %v1088_v24  ;;  %v919_v58 = vmul.f32 0.0, %v5573_v54 }
 0x204   : > { %5141 = vset.pattern.permute.xlu1 %v8910_v17 }
 0x205   : > { %v1115_v47 = vmul.f32 %v5784_v50, %v1090_v52  ;;  %v995_v37 = vadd.f32 %v5718_v63, %v919_v58 }
 0x206   : > { %v1226_v10 = vpop.permute.xlu1 %1225 }
 0x207   : > { %v1238_v28 = vmul.f32 %v1226_v10, %v5601_v18  ;;  %v1239_v7 = vmul.f32 %v1226_v10, %v5592_v6 }
 0x209   : > { %1141 = vrot.lane.b32.xlu2 %v1112_v12, %s5306_s16  ;;  %1268 = vrot.lane.b32.xlu1 %v1238_v28, %s5302_s26  ;;  %v1108_v12 = vmul.f32 %v1103_v25, %v1083_v29  ;;  %v971_v28 = vsel %vm738_vm2, %v5714_v60, %v5690_v45  ;;  %v1064_v45 = vsel %vm835_vm1, %v5782_v3, %v5776_v4 }
 0x20a   : > { %1137 = vrot.lane.b32.xlu0 %v1110_v5, %s5306_s16  ;;  %v914_v5 = vmul.f32 %v5629_v51, %v5575_v56  ;;  %v1093_v60 = vadd.f32 %v1069_v21, %v997_v31  ;;  %v1091_v51 = vadd.f32 %v5790_v9, %v995_v37  ;;  %v917_v3 = vmul.f32 %v5597_v11, %v5601_v18 }
 0x20b   : > { %v1066_v4 = vsel %vm835_vm1, %v5786_v44, %v5778_v62  ;;  %v1240_v11 = vmul.f32 0.0, %v1226_v10  ;;  %v1068_v44 = vsel %vm835_vm1, %v5790_v9, %v5780_v22  ;;  %v9078_v9 = vmov 0  }
 0x20c   : > { %v990_v57 = vadd.f32 %v971_v28, %v914_v5  ;;  %v1118_v32 = vmul.f32 %v5784_v50, %v1093_v60  ;;  %v1116_v29 = vmul.f32 %v5799_v38, %v1091_v51  ;;  %v993_v50 = vadd.f32 %v972_v43, %v917_v3 }
 0x20d   : > { %v973_v38 = vsel %vm738_vm2, %v5718_v63, %v5736_v14  ;;  %v9079_v22 = vmov 5  }
 0x20e   : > { %v1086_v61 = vadd.f32 %v1064_v45, %v990_v57  ;;  %v1089_v24 = vadd.f32 %v1066_v4, %v993_v50  ;;  %v996_v62 = vadd.f32 %v973_v38, %v920_v2 }
 0x210   : > { %v1111_v52 = vmul.f32 %v1103_v25, %v1086_v61  ;;  %v1114_v23 = vmul.f32 %v1103_v25, %v1089_v24 }
 0x211   : > { %1147 = vrot.lane.b32.xlu2 %v1115_v47, %s5306_s16  ;;  %1133 = vrot.lane.b32.xlu1 %v1108_v12, %s5306_s16  ;;  %v1230_v47 = vpop.permute.xlu2 %1229  ;;  %v1092_v12 = vadd.f32 %v1068_v44, %v996_v62 }
 0x212   : > { %1143 = vrot.lane.b32.xlu0 %v1113_v55, %s5306_s16  ;;  %v1242_v14 = vmul.f32 %v1230_v47, %v5611_v30  ;;  %v1243_v63 = vmul.f32 0.0, %v1230_v47  ;;  %v1241_v54 = vmul.f32 %v1230_v47, %v5623_v48 }
 0x213   : > { %v1117_v28 = vmul.f32 %v1103_v25, %v1092_v12 }
 0x219   : > { %1153 = vrot.lane.b32.xlu2 %v1118_v32, %s5306_s16  ;;  %1139 = vrot.lane.b32.xlu1 %v1111_v52, %s5306_s16 }
 0x21a   : > { %1149 = vrot.lane.b32.xlu0 %v1116_v29, %s5306_s16 }
 0x221   : > { %1270 = vrot.lane.b32.xlu2 %v1239_v7, %s5302_s26  ;;  %1145 = vrot.lane.b32.xlu1 %v1114_v23, %s5306_s16 }
 0x222   : > { %1272 = vrot.lane.b32.xlu0 %v1240_v11, %s5302_s26 }
 0x229   : > { %1151 = vrot.lane.b32.xlu1 %v1117_v28, %s5306_s16  ;;  %1276 = vrot.lane.b32.xlu2 %v1242_v14, %s5302_s26  ;;  %v5982_v14 = vld [vmem:[%s8873_s14 + $0x3] ss:$8 sm:$0x3] }
 0x22a   : > { %1278 = vrot.lane.b32.xlu0 %v1243_v63, %s5302_s26  ;;  %9092 = vst [vmem:[#allocation48_spill] sm:$0xff] %v5982_v14  ;;  %v8909_v63 = vperm.slane %v5982_v14, 0 }
 0x231   : > { %1317 = vperm.xlu2 %5142, %v5453_v8   ;;  %1274 = vrot.lane.b32.xlu1 %v1241_v54, %s5302_s26 }
 0x232   : > { %1321 = vperm.xlu0 %5143, %v5489_v16  }
 0x239   : > { %1313 = vperm.xlu1 %5141, %v5426_v0   ;;  %5144 = vset.pattern.permute.xlu2 %v9078_v9 }
 0x23a   : > { %5147 = vset.pattern.permute.xlu0 %v9079_v22 }
 0x241   : > { %1325 = vperm.xlu1 %5141, %v5473_v13  }
 0x244   : > { %v5918_v10 = vpop.permute.xlu2 %1258 }
 0x249   : > { %5145 = vset.pattern.permute.xlu1 %v9078_v9 }
 0x253   : > { %v5920_v25 = vpop.permute.xlu2 %1264 }
 0x25b   : > { %v5922_v21 = vpop.permute.xlu2 %1135 }
 0x25c   : > { %9080 = vst [vmem:[#allocation36_spill] sm:$0xff] %v5922_v21  ;;  %v5928_v16 = vpop.permute.xlu1 %1256 }
 0x25d   : > { %v5926_v55 = vpop.permute.xlu0 %1260 }
 0x263   : > { %v5924_v8 = vpop.permute.xlu2 %1141 }
 0x264   : > { %9081 = vst [vmem:[#allocation37_spill] sm:$0xff] %v5924_v8 }
 0x26b   : > { %v5930_v0 = vpop.permute.xlu2 %1147  ;;  %v5934_v31 = vpop.permute.xlu1 %1262 }
 0x26c   : > { %9082 = vst [vmem:[#allocation38_spill] sm:$0xff] %v5930_v0  ;;  %v5932_v5 = vpop.permute.xlu0 %1266 }
 0x273   : > { %v5936_v13 = vpop.permute.xlu2 %1153 }
 0x274   : > { %9083 = vst [vmem:[#allocation39_spill] sm:$0xff] %v5936_v13  ;;  %v5938_v58 = vpop.permute.xlu0 %1131 }
 0x275   : > { %9084 = vst [vmem:[#allocation40_spill] sm:$0xff] %v5938_v58 }
 0x27b   : > { %v5940_v45 = vpop.permute.xlu1 %1268  ;;  %v5942_v57 = vpop.permute.xlu2 %1270 }
 0x27c   : > { %v5944_v60 = vpop.permute.xlu0 %1137 }
 0x27d   : > { %9085 = vst [vmem:[#allocation41_spill] sm:$0xff] %v5944_v60 }
 0x283   : > { %v5946_v37 = vpop.permute.xlu1 %1133  ;;  %v5948_v61 = vpop.permute.xlu2 %1276 }
 0x284   : > { %9086 = vst [vmem:[#allocation42_spill] sm:$0xff] %v5946_v37  ;;  %v5950_v51 = vpop.permute.xlu0 %1143  ;;  %v1281_v37 = vsel %vm738_vm2, %v5918_v10, %v5926_v55 }
 0x285   : > { %9087 = vst [vmem:[#allocation43_spill] sm:$0xff] %v5950_v51 }
 0x28b   : > { %v5952_v32 = vpop.permute.xlu1 %1139  ;;  %v1318_v52 = vpop.permute.xlu2 %1317 }
 0x28c   : > { %9088 = vst [vmem:[#allocation44_spill] sm:$0xff] %v5952_v32  ;;  %v5954_v43 = vpop.permute.xlu0 %1149  ;;  %v1331_v29 = vmul.f32 %v1318_v52, %v5575_v56  ;;  %v1332_v12 = vmul.f32 %v1318_v52, %v5567_v49 }
 0x28d   : > { %9089 = vst [vmem:[#allocation45_spill] sm:$0xff] %v5954_v43 }
 0x28e   : > { %1358 = vrot.lane.b32.xlu0 %v1331_v29, %s5303_s27  ;;  %v1333_v29 = vmul.f32 0.0, %v1318_v52 }
 0x293   : > { %v5958_v3 = vpop.permute.xlu1 %1145 }
 0x294   : > { %9090 = vst [vmem:[#allocation46_spill] sm:$0xff] %v5958_v3  ;;  %v5960_v4 = vpop.permute.xlu0 %1272 }
 0x29b   : > { %v5962_v50 = vpop.permute.xlu1 %1151 }
 0x29c   : > { %9091 = vst [vmem:[#allocation47_spill] sm:$0xff] %v5962_v50  ;;  %v5964_v24 = vpop.permute.xlu0 %1278 }
 0x2a3   : > { %v5966_v7 = vpop.permute.xlu1 %1274 }
 0x2a4   : > { %v1322_v23 = vpop.permute.xlu0 %1321 }
 0x2a5   : > { %v1334_v38 = vmul.f32 %v1322_v23, %v5601_v18  ;;  %v1335_v54 = vmul.f32 %v1322_v23, %v5592_v6 }
 0x2a7   : > { %1364 = vrot.lane.b32.xlu0 %v1334_v38, %s5303_s27 }
 0x2ab   : > { %v1314_v11 = vpop.permute.xlu1 %1313 }
 0x2ac   : > { %v1329_v2 = vmul.f32 %v1314_v11, %v5556_v41  ;;  %v1328_v44 = vmul.f32 %v1314_v11, %v5604_v33  ;;  %v1330_v47 = vmul.f32 0.0, %v1314_v11  ;;  %v1336_v11 = vmul.f32 0.0, %v1322_v23 }
 0x2ae   : > { %1354 = vrot.lane.b32.xlu1 %v1329_v2, %s5303_s27  ;;  %1352 = vrot.lane.b32.xlu2 %v1328_v44, %s5303_s27  ;;  %v8912_v2 = vperm.slane %v5982_v14, 1 }
 0x2b3   : > { %v1326_v62 = vpop.permute.xlu1 %1325 }
 0x2b4   : > { %v1337_v28 = vmul.f32 %v1326_v62, %v5623_v48  ;;  %v1338_v38 = vmul.f32 %v1326_v62, %v5611_v30  ;;  %v1339_v44 = vmul.f32 0.0, %v1326_v62 }
 0x2b6   : > { %1356 = vrot.lane.b32.xlu2 %v1330_v47, %s5303_s27  ;;  %1360 = vrot.lane.b32.xlu1 %v1332_v12, %s5303_s27 }
 0x2b7   : > { %1370 = vrot.lane.b32.xlu0 %v1337_v28, %s5303_s27 }
 0x2be   : > { %1366 = vrot.lane.b32.xlu1 %v1335_v54, %s5303_s27  ;;  %1362 = vrot.lane.b32.xlu2 %v1333_v29, %s5303_s27  ;;  %v1204_v29 = vmul.f32 0.0, %v5801_v40 }
 0x2bf   : > { %1413 = vrot.lane.b32.xlu0 %v8909_v63, %s5308_s21 }
 0x2c6   : > { %1372 = vrot.lane.b32.xlu1 %v1338_v38, %s5303_s27  ;;  %1368 = vrot.lane.b32.xlu2 %v1336_v11, %s5303_s27  ;;  %v1300_v38 = vadd.f32 %v5928_v16, %v1204_v29 }
 0x2ce   : > { %1415 = vrot.lane.b32.xlu1 %v8912_v2, %s5308_s21  ;;  %1374 = vrot.lane.b32.xlu2 %v1339_v44, %s5303_s27  ;;  %v1207_v2 = vmul.f32 0.0, %v5803_v26  ;;  %s5314_s21 = smov 64  }
 0x2d0   : > { %v1303_v21 = vadd.f32 %v5934_v31, %v1207_v2  ;;  %v1210_v2 = vmul.f32 0.0, %v5788_v15 }
 0x2d2   : > { %v1306_v32 = vadd.f32 %v5940_v45, %v1210_v2 }
 0x300   : > { %v1359_v52 = vpop.permute.xlu0 %1358 }
 0x301   : > { %v1399_v8 = vadd.f32 %v1359_v52, %v1303_v21 }
 0x308   : > { %v1353_v23 = vpop.permute.xlu2 %1352 }
 0x309   : > { %v1396_v11 = vadd.f32 %v1353_v23, %v1300_v38  ;;  %v1280_v38 = vsel %vm738_vm2, %v5928_v16, %v5918_v10 }
 0x310   : > { %v1357_v44 = vpop.permute.xlu2 %1356 }
 0x318   : > { %v1363_v10 = vpop.permute.xlu2 %1362 }
 0x319   : > { %v5997_v12 = vpop.permute.xlu0 %1364 }
 0x31a   : > { %v1402_v0 = vadd.f32 %v5997_v12, %v1306_v32  ;;  %v1213_v32 = vmul.f32 0.0, %v5817_v27 }
 0x320   : > { %v1355_v47 = vpop.permute.xlu1 %1354  ;;  %v1369_v2 = vpop.permute.xlu2 %1368 }
 0x321   : > { %v1377_v21 = vsel %vm835_vm1, %v1355_v47, %v1357_v44  ;;  %v1376_v55 = vsel %vm835_vm1, %v1353_v23, %v1355_v47  ;;  %v1283_v44 = vsel %vm738_vm2, %v5920_v25, %v5932_v5  ;;  %v1282_v47 = vsel %vm738_vm2, %v5934_v31, %v5920_v25 }
 0x322   : > { %v1209_v23 = vmul.f32 %v5803_v26, %v5567_v49  ;;  %v1309_v31 = vadd.f32 %v5966_v7, %v1213_v32 }
 0x328   : > { %v1361_v28 = vpop.permute.xlu1 %1360 }
 0x329   : > { %v5999_v54 = vpop.permute.xlu0 %1370  ;;  %v1378_v5 = vsel %vm835_vm1, %v1359_v52, %v1361_v28  ;;  %v1212_v52 = vmul.f32 %v5788_v15, %v5592_v6 }
 0x330   : > { %v1367_v63 = vpop.permute.xlu1 %1366 }
 0x331   : > { %v1414_v62 = vpop.permute.xlu0 %1413 }
 0x332   : > { %v1422_v17 = vmul.f32 %v1414_v62, %v1396_v11  ;;  %v1425_v29 = vmul.f32 %v1414_v62, %v1399_v8  ;;  %v1206_v11 = vmul.f32 %v5801_v40, %v5556_v41 }
 0x334   : > { %1446 = vrot.lane.b32.xlu2 %v1422_v17, %s5309_s22  ;;  %v1205_v17 = vmul.f32 %v5801_v40, %v5604_v33  ;;  %v1302_v60 = vadd.f32 %v1281_v37, %v1206_v11 }
 0x336   : > { %v1301_v8 = vadd.f32 %v1280_v38, %v1205_v17  ;;  %v1398_v16 = vadd.f32 %v1377_v21, %v1302_v60  ;;  %v1208_v60 = vmul.f32 %v5803_v26, %v5575_v56  ;;  %v1379_v38 = vsel %vm835_vm1, %v1361_v28, %v1363_v10 }
 0x337   : > { %v1405_v17 = vadd.f32 %v5999_v54, %v1309_v31  ;;  %v1285_v21 = vsel %vm738_vm2, %v5942_v57, %v5960_v4  ;;  %v1284_v10 = vsel %vm738_vm2, %v5940_v45, %v5942_v57  ;;  %v1211_v28 = vmul.f32 %v5788_v15, %v5601_v18 }
 0x338   : > { %v6006_v58 = vpop.permute.xlu1 %1372  ;;  %v1397_v13 = vadd.f32 %v1376_v55, %v1301_v8  ;;  %v1304_v25 = vadd.f32 %v1282_v47, %v1208_v60  ;;  %v1308_v4 = vadd.f32 %v1285_v21, %v1212_v52  ;;  %v1287_v15 = vsel %vm738_vm2, %v5948_v61, %v5964_v24 }
 0x339   : > { %v1431_v55 = vmul.f32 %v1414_v62, %v1405_v17  ;;  %v1215_v47 = vmul.f32 %v5817_v27, %v5611_v30  ;;  %v1382_v32 = vsel %vm835_vm1, %v5999_v54, %v6006_v58  ;;  %v6111_v54 = vld [vmem:[%s8864_s5 + $0x10] sm:$0xff] }
 0x33a   : > { %v1400_v11 = vadd.f32 %v1378_v5, %v1304_v25  ;;  %v1505_v25 = vld [vmem:[%s8863_s4 + $0x10] sm:$0xff] }
 0x33b   : > { %v1311_v24 = vadd.f32 %v1287_v15, %v1215_v47 }
 0x33c   : > { %1452 = vrot.lane.b32.xlu2 %v1425_v29, %s5309_s22  ;;  %v1428_v29 = vmul.f32 %v1414_v62, %v1402_v0  ;;  %v1305_v0 = vadd.f32 %v1283_v44, %v1209_v23  ;;  %v1503_v44 = vld [vmem:[%s8863_s4] sm:$0xff]  ;;  %v1214_v23 = vmul.f32 %v5817_v27, %v5623_v48 }
 0x340   : > { %v1416_v34 = vpop.permute.xlu1 %1415 }
 0x341   : > { %v1424_v40 = vmul.f32 %v1416_v34, %v1398_v16  ;;  %v1418_v51 = vsel %vm1417_vm3, %v1414_v62, %v1416_v34  ;;  %v1381_v16 = vsel %vm835_vm1, %v1367_v63, %v1369_v2  ;;  %v1380_v62 = vsel %vm835_vm1, %v5997_v12, %v1367_v63  ;;  %v1375_v12 = vpop.permute.xlu2 %1374 }
 0x342   : > { %v1423_v37 = vmul.f32 %v1418_v51, %v1397_v13  ;;  %v1401_v13 = vadd.f32 %v1379_v38, %v1305_v0  ;;  %v1426_v8 = vmul.f32 %v1418_v51, %v1400_v11  ;;  %v1404_v45 = vadd.f32 %v1381_v16, %v1308_v4 }
 0x343   : > { %1450 = vrot.lane.b32.xlu1 %v1424_v40, %s5309_s22  ;;  %v1307_v40 = vadd.f32 %v1284_v10, %v1211_v28  ;;  %v1286_v63 = vsel %vm738_vm2, %v5966_v7, %v5948_v61  ;;  %v1383_v60 = vsel %vm835_vm1, %v6006_v58, %v1375_v12  ;;  %v1506_v7 = vld [vmem:[%s8863_s4 + $0x18] sm:$0xff]  ;;  %v6089_v58 = vld [vmem:[%s8864_s5 + $0x8] sm:$0xff] }
 0x344   : > { %1458 = vrot.lane.b32.xlu2 %v1428_v29, %s5309_s22  ;;  %1448 = vrot.lane.b32.xlu0 %v1423_v37, %s5309_s22  ;;  %v1427_v26 = vmul.f32 %v1416_v34, %v1401_v13  ;;  %v1430_v29 = vmul.f32 %v1416_v34, %v1404_v45  ;;  %v1310_v38 = vadd.f32 %v1286_v63, %v1214_v23  ;;  %v5310_v63 = vmov 10  }
 0x345   : > { %v1403_v57 = vadd.f32 %v1380_v62, %v1307_v40  ;;  %v1407_v0 = vadd.f32 %v1383_v60, %v1311_v24 }
 0x346   : > { %v1406_v61 = vadd.f32 %v1382_v32, %v1310_v38 }
 0x347   : > { %v1429_v37 = vmul.f32 %v1418_v51, %v1403_v57  ;;  %v1433_v5 = vmul.f32 %v1416_v34, %v1407_v0  ;;  %v6096_v34 = vld [vmem:[%s8864_s5] sm:$0xff] }
 0x348   : > { %v1432_v27 = vmul.f32 %v1418_v51, %v1406_v61  ;;  %v6104_v51 = vld [vmem:[%s8864_s5 + $0x18] sm:$0xff] }
 0x34b   : > { %1456 = vrot.lane.b32.xlu1 %v1427_v26, %s5309_s22 }
 0x34c   : > { %1464 = vrot.lane.b32.xlu2 %v1431_v55, %s5309_s22  ;;  %1454 = vrot.lane.b32.xlu0 %v1426_v8, %s5309_s22 }
 0x353   : > { %1462 = vrot.lane.b32.xlu1 %v1430_v29, %s5309_s22 }
 0x354   : > { %1509 = vperm.xlu2 %5144, %v1503_v44   ;;  %1460 = vrot.lane.b32.xlu0 %v1429_v37, %s5309_s22 }
 0x35b   : > { %1468 = vrot.lane.b32.xlu1 %v1433_v5, %s5309_s22 }
 0x35c   : > { %1524 = vperm.xlu2 %5144, %v1506_v7   ;;  %1466 = vrot.lane.b32.xlu0 %v1432_v27, %s5309_s22 }
 0x363   : > { %1519 = vperm.xlu1 %5145, %v1505_v25  }
 0x364   : > { %1562 = vperm.xlu2 %5144, %v6089_v58   ;;  %1592 = vperm.xlu0 %5147, %v6089_v58  }
 0x36b   : > { %1557 = vperm.xlu1 %5145, %v6096_v34  }
 0x36c   : > { %5146 = vset.pattern.permute.xlu2 %v9079_v22  ;;  %5151 = vset.pattern.permute.xlu0 %v5310_v63 }
 0x36d   : > { %1588 = vperm.xlu2 %5146, %v6096_v34  }
 0x373   : > { %1572 = vperm.xlu1 %5145, %v6104_v51  }
 0x375   : > { %1600 = vperm.xlu2 %5146, %v6104_v51  }
 0x37b   : > { %5148 = vset.pattern.permute.xlu1 %v9079_v22 }
 0x37c   : > { %1596 = vperm.xlu1 %5148, %v6111_v54  }
 0x37d   : > { %5150 = vset.pattern.permute.xlu2 %v5310_v63 }
 0x384   : > { %5149 = vset.pattern.permute.xlu1 %v5310_v63  ;;  %v5311_v63 = vmov 15  }
 0x38e   : > { %v6115_v31 = vpop.permute.xlu2 %1446 }
 0x38f   : > { %9093 = vst [vmem:[#allocation49_spill] sm:$0xff] %v6115_v31 }
 0x396   : > { %v6117_v13 = vpop.permute.xlu2 %1452 }
 0x397   : > { %9094 = vst [vmem:[#allocation50_spill] sm:$0xff] %v6117_v13 }
 0x39e   : > { %v6119_v11 = vpop.permute.xlu2 %1458 }
 0x39f   : > { %9095 = vst [vmem:[#allocation51_spill] sm:$0xff] %v6119_v11 }
 0x3a6   : > { %v6121_v17 = vpop.permute.xlu2 %1464 }
 0x3a7   : > { %9096 = vst [vmem:[#allocation52_spill] sm:$0xff] %v6121_v17 }
 0x3ae   : > { %v6123_v2 = vpop.permute.xlu2 %1509 }
 0x3af   : > { %9097 = vst [vmem:[#allocation53_spill] sm:$0xff] %v6123_v2 }
 0x3b5   : > { %v6125_v26 = vpop.permute.xlu1 %1450 }
 0x3b6   : > { %9098 = vst [vmem:[#allocation54_spill] sm:$0xff] %v6125_v26  ;;  %v6127_v21 = vpop.permute.xlu2 %1524  ;;  %v6129_v55 = vpop.permute.xlu0 %1448 }
 0x3b7   : > { %9099 = vst [vmem:[#allocation55_spill] sm:$0xff] %v6127_v21 }
 0x3b8   : > { %9100 = vst [vmem:[#allocation56_spill] sm:$0xff] %v6129_v55 }
 0x3bd   : > { %v6131_v8 = vpop.permute.xlu1 %1456 }
 0x3be   : > { %9101 = vst [vmem:[#allocation57_spill] sm:$0xff] %v6131_v8  ;;  %v6133_v22 = vpop.permute.xlu2 %1562  ;;  %v6135_v10 = vpop.permute.xlu0 %1454 }
 0x3bf   : > { %9102 = vst [vmem:[#allocation58_spill] sm:$0xff] %v6133_v22 }
 0x3c0   : > { %9103 = vst [vmem:[#allocation59_spill] sm:$0xff] %v6135_v10 }
 0x3c5   : > { %v6137_v52 = vpop.permute.xlu1 %1462 }
 0x3c6   : > { %9104 = vst [vmem:[#allocation60_spill] sm:$0xff] %v6137_v52  ;;  %v6139_v28 = vpop.permute.xlu0 %1460  ;;  %v5313_v52 = vmov 20  }
 0x3c7   : > { %9105 = vst [vmem:[#allocation61_spill] sm:$0xff] %v6139_v28  ;;  %v1589_v16 = vpop.permute.xlu2 %1588 }
 0x3c8   : > { %v1603_v4 = vmul.f32 0.0, %v1589_v16  ;;  %v1604_v62 = vmul.f32 %v1589_v16, %v5604_v33  ;;  %v1605_v40 = vmul.f32 %v1589_v16, %v5556_v41 }
 0x3ca   : > { %1631 = vrot.lane.b32.xlu0 %v1605_v40, %s5302_s26  ;;  %1629 = vrot.lane.b32.xlu2 %v1604_v62, %s5302_s26 }
 0x3cb   : > { %1627 = vrot.lane.b32.xlu1 %v1603_v4, %s5302_s26 }
 0x3cd   : > { %v6146_v45 = vpop.permute.xlu1 %1468 }
 0x3ce   : > { %9106 = vst [vmem:[#allocation62_spill] sm:$0xff] %v6146_v45  ;;  %v6148_v57 = vpop.permute.xlu0 %1466 }
 0x3cf   : > { %9107 = vst [vmem:[#allocation63_spill] sm:$0xff] %v6148_v57  ;;  %v1601_v0 = vpop.permute.xlu2 %1600 }
 0x3d0   : > { %v1613_v61 = vmul.f32 %v1601_v0, %v5623_v48  ;;  %v1614_v7 = vmul.f32 %v1601_v0, %v5611_v30  ;;  %v1612_v5 = vmul.f32 0.0, %v1601_v0 }
 0x3d5   : > { %v6150_v44 = vpop.permute.xlu1 %1519 }
 0x3d6   : > { %9108 = vst [vmem:[#allocation64_spill] sm:$0xff] %v6150_v44  ;;  %v1593_v29 = vpop.permute.xlu0 %1592 }
 0x3d7   : > { %v1606_v15 = vmul.f32 0.0, %v1593_v29  ;;  %v1607_v37 = vmul.f32 %v1593_v29, %v5575_v56  ;;  %v1608_v47 = vmul.f32 %v1593_v29, %v5567_v49 }
 0x3d9   : > { %1637 = vrot.lane.b32.xlu0 %v1608_v47, %s5302_s26  ;;  %1635 = vrot.lane.b32.xlu2 %v1607_v37, %s5302_s26 }
 0x3da   : > { %1633 = vrot.lane.b32.xlu1 %v1606_v15, %s5302_s26 }
 0x3dd   : > { %v6157_v12 = vpop.permute.xlu1 %1557 }
 0x3de   : > { %9109 = vst [vmem:[#allocation65_spill] sm:$0xff] %v6157_v12 }
 0x3e5   : > { %v6159_v23 = vpop.permute.xlu1 %1572 }
 0x3e6   : > { %9110 = vst [vmem:[#allocation66_spill] sm:$0xff] %v6159_v23 }
 0x3ee   : > { %v1597_v60 = vpop.permute.xlu1 %1596 }
 0x3ef   : > { %v1609_v24 = vmul.f32 0.0, %v1597_v60  ;;  %v1610_v32 = vmul.f32 %v1597_v60, %v5601_v18  ;;  %v1611_v38 = vmul.f32 %v1597_v60, %v5592_v6 }
 0x3f1   : > { %1643 = vrot.lane.b32.xlu0 %v1611_v38, %s5302_s26  ;;  %1641 = vrot.lane.b32.xlu2 %v1610_v32, %s5302_s26 }
 0x3f2   : > { %1639 = vrot.lane.b32.xlu1 %v1609_v24, %s5302_s26 }
 0x3f9   : > { %1649 = vrot.lane.b32.xlu0 %v1614_v7, %s5302_s26  ;;  %1647 = vrot.lane.b32.xlu2 %v1613_v61, %s5302_s26 }
 0x3fa   : > { %1645 = vrot.lane.b32.xlu1 %v1612_v5, %s5302_s26 }
 0x401   : > { %1692 = vperm.xlu0 %5151, %v6111_v54   ;;  %1688 = vperm.xlu2 %5150, %v6089_v58  }
 0x402   : > { %1684 = vperm.xlu1 %5149, %v6096_v34  }
 0x409   : > { %5152 = vset.pattern.permute.xlu0 %v5311_v63  ;;  %5154 = vset.pattern.permute.xlu2 %v5311_v63 }
 0x40a   : > { %1696 = vperm.xlu1 %5149, %v6104_v51  }
 0x412   : > { %5153 = vset.pattern.permute.xlu1 %v5311_v63 }
 0x424   : > { %v6175_v27 = vpop.permute.xlu2 %1629 }
 0x425   : > { %9111 = vst [vmem:[#allocation67_spill] sm:$0xff] %v6175_v27 }
 0x433   : > { %v6177_v25 = vpop.permute.xlu2 %1635 }
 0x434   : > { %9112 = vst [vmem:[#allocation68_spill] sm:$0xff] %v6177_v25 }
 0x43c   : > { %v6181_v4 = vpop.permute.xlu0 %1631 }
 0x43d   : > { %9114 = vst [vmem:[#allocation70_spill] sm:$0xff] %v6181_v4  ;;  %v6185_v40 = vpop.permute.xlu1 %1627 }
 0x43e   : > { %9116 = vst [vmem:[#allocation72_spill] sm:$0xff] %v6185_v40  ;;  %v5317_v40 = vmov 16  }
 0x44b   : > { %v6179_v16 = vpop.permute.xlu2 %1641  ;;  %v6187_v29 = vpop.permute.xlu0 %1637 }
 0x44c   : > { %9113 = vst [vmem:[#allocation69_spill] sm:$0xff] %v6179_v16  ;;  %v6189_v37 = vpop.permute.xlu1 %1633 }
 0x44d   : > { %9117 = vst [vmem:[#allocation73_spill] sm:$0xff] %v6187_v29 }
 0x44e   : > { %9118 = vst [vmem:[#allocation74_spill] sm:$0xff] %v6189_v37 }
 0x453   : > { %v6183_v62 = vpop.permute.xlu2 %1647 }
 0x454   : > { %9115 = vst [vmem:[#allocation71_spill] sm:$0xff] %v6183_v62 }
 0x45b   : > { %v1689_v15 = vpop.permute.xlu2 %1688 }
 0x45c   : > { %v1702_v47 = vmul.f32 0.0, %v1689_v15  ;;  %v1703_v63 = vmul.f32 %v1689_v15, %v5575_v56  ;;  %v1704_v31 = vmul.f32 %v1689_v15, %v5567_v49 }
 0x45e   : > { %1729 = vrot.lane.b32.xlu0 %v1702_v47, %s5303_s27 }
 0x463   : > { %v6192_v60 = vpop.permute.xlu0 %1643 }
 0x464   : > { %9119 = vst [vmem:[#allocation75_spill] sm:$0xff] %v6192_v60  ;;  %v6194_v24 = vpop.permute.xlu1 %1639 }
 0x465   : > { %9120 = vst [vmem:[#allocation76_spill] sm:$0xff] %v6194_v24 }
 0x46b   : > { %v6196_v32 = vpop.permute.xlu0 %1649 }
 0x46c   : > { %9121 = vst [vmem:[#allocation77_spill] sm:$0xff] %v6196_v32  ;;  %v6198_v38 = vpop.permute.xlu1 %1645 }
 0x46d   : > { %9122 = vst [vmem:[#allocation78_spill] sm:$0xff] %v6198_v38 }
 0x473   : > { %v1693_v0 = vpop.permute.xlu0 %1692 }
 0x474   : > { %v1685_v61 = vpop.permute.xlu1 %1684  ;;  %v1705_v7 = vmul.f32 0.0, %v1693_v0 }
 0x475   : > { %v1699_v5 = vmul.f32 0.0, %v1685_v61  ;;  %v1700_v26 = vmul.f32 %v1685_v61, %v5604_v33  ;;  %v1701_v8 = vmul.f32 %v1685_v61, %v5556_v41 }
 0x476   : > { %1735 = vrot.lane.b32.xlu0 %v1705_v7, %s5303_s27  ;;  %v1706_v7 = vmul.f32 %v1693_v0, %v5601_v18 }
 0x477   : > { %1725 = vrot.lane.b32.xlu1 %v1700_v26, %s5303_s27  ;;  %1723 = vrot.lane.b32.xlu2 %v1699_v5, %s5303_s27  ;;  %v1707_v26 = vmul.f32 %v1693_v0, %v5592_v6 }
 0x47c   : > { %v1697_v47 = vpop.permute.xlu1 %1696 }
 0x47d   : > { %v1708_v2 = vmul.f32 0.0, %v1697_v47  ;;  %v1709_v61 = vmul.f32 %v1697_v47, %v5623_v48 }
 0x47f   : > { %1727 = vrot.lane.b32.xlu2 %v1701_v8, %s5303_s27  ;;  %1731 = vrot.lane.b32.xlu1 %v1703_v63, %s5303_s27 }
 0x480   : > { %1741 = vrot.lane.b32.xlu0 %v1708_v2, %s5303_s27  ;;  %v1710_v2 = vmul.f32 %v1697_v47, %v5611_v30 }
 0x487   : > { %1733 = vrot.lane.b32.xlu2 %v1704_v31, %s5303_s27  ;;  %1737 = vrot.lane.b32.xlu1 %v1706_v7, %s5303_s27 }
 0x488   : > { %1780 = vperm.xlu0 %5152, %v6096_v34  }
 0x48f   : > { %1739 = vrot.lane.b32.xlu2 %v1707_v26, %s5303_s27  ;;  %1743 = vrot.lane.b32.xlu1 %v1709_v61, %s5303_s27 }
 0x490   : > { %5156 = vset.pattern.permute.xlu0 %v5313_v52 }
 0x497   : > { %1745 = vrot.lane.b32.xlu2 %v1710_v2, %s5303_s27  ;;  %1784 = vperm.xlu1 %5153, %v6089_v58  }
 0x49f   : > { %1788 = vperm.xlu2 %5154, %v6111_v54   ;;  %1792 = vperm.xlu1 %5153, %v6104_v51  }
 0x4a7   : > { %5155 = vset.pattern.permute.xlu2 %v5313_v52  ;;  %5157 = vset.pattern.permute.xlu1 %v5313_v52 }
 0x4d0   : > { %v6225_v8 = vpop.permute.xlu0 %1729 }
 0x4d1   : > { %v6223_v31 = vpop.permute.xlu2 %1723  ;;  %9124 = vst [vmem:[#allocation80_spill] sm:$0xff] %v6225_v8 }
 0x4d2   : > { %9123 = vst [vmem:[#allocation79_spill] sm:$0xff] %v6223_v31  ;;  %v5316_v31 = vmov 11  }
 0x4d9   : > { %v6227_v15 = vpop.permute.xlu2 %1727 }
 0x4da   : > { %9125 = vst [vmem:[#allocation81_spill] sm:$0xff] %v6227_v15 }
 0x4e1   : > { %v6233_v63 = vpop.permute.xlu2 %1733 }
 0x4e2   : > { %9128 = vst [vmem:[#allocation84_spill] sm:$0xff] %v6233_v63 }
 0x4e8   : > { %v6229_v0 = vpop.permute.xlu0 %1735 }
 0x4e9   : > { %9126 = vst [vmem:[#allocation82_spill] sm:$0xff] %v6229_v0  ;;  %v6231_v5 = vpop.permute.xlu1 %1725  ;;  %v6241_v2 = vpop.permute.xlu2 %1739 }
 0x4ea   : > { %9127 = vst [vmem:[#allocation83_spill] sm:$0xff] %v6231_v5 }
 0x4eb   : > { %9132 = vst [vmem:[#allocation88_spill] sm:$0xff] %v6241_v2 }
 0x4f1   : > { %v6235_v47 = vpop.permute.xlu1 %1731  ;;  %v6250_v44 = vpop.permute.xlu2 %1745 }
 0x4f2   : > { %9129 = vst [vmem:[#allocation85_spill] sm:$0xff] %v6235_v47  ;;  %v6237_v7 = vpop.permute.xlu0 %1741 }
 0x4f3   : > { %9130 = vst [vmem:[#allocation86_spill] sm:$0xff] %v6237_v7 }
 0x4f4   : > { %9134 = vst [vmem:[#allocation90_spill] sm:$0xff] %v6250_v44 }
 0x4f9   : > { %v6239_v26 = vpop.permute.xlu1 %1737 }
 0x4fa   : > { %9131 = vst [vmem:[#allocation87_spill] sm:$0xff] %v6239_v26  ;;  %v1781_v61 = vpop.permute.xlu0 %1780 }
 0x4fb   : > { %v1795_v55 = vmul.f32 %v1781_v61, %v5604_v33  ;;  %v1796_v13 = vmul.f32 %v1781_v61, %v5556_v41  ;;  %v1797_v10 = vmul.f32 0.0, %v1781_v61 }
 0x4fd   : > { %1821 = vrot.lane.b32.xlu0 %v1796_v13, %s5312_s20  ;;  %1819 = vrot.lane.b32.xlu2 %v1795_v55, %s5312_s20  ;;  %v1789_v13 = vpop.permute.xlu2 %1788 }
 0x4fe   : > { %1823 = vrot.lane.b32.xlu1 %v1797_v10, %s5312_s20  ;;  %v1803_v55 = vmul.f32 0.0, %v1789_v13  ;;  %v1801_v10 = vmul.f32 %v1789_v13, %v5601_v18  ;;  %v1802_v52 = vmul.f32 %v1789_v13, %v5592_v6 }
 0x501   : > { %v6248_v45 = vpop.permute.xlu1 %1743 }
 0x502   : > { %9133 = vst [vmem:[#allocation89_spill] sm:$0xff] %v6248_v45 }
 0x509   : > { %v1785_v11 = vpop.permute.xlu1 %1784 }
 0x50a   : > { %v1798_v28 = vmul.f32 %v1785_v11, %v5575_v56  ;;  %v1799_v61 = vmul.f32 %v1785_v11, %v5567_v49  ;;  %v1800_v21 = vmul.f32 0.0, %v1785_v11 }
 0x50c   : > { %1827 = vrot.lane.b32.xlu0 %v1799_v61, %s5312_s20  ;;  %1825 = vrot.lane.b32.xlu2 %v1798_v28, %s5312_s20 }
 0x50d   : > { %1829 = vrot.lane.b32.xlu1 %v1800_v21, %s5312_s20  ;;  %v9135_v21 = vmov 1  }
 0x511   : > { %v1793_v3 = vpop.permute.xlu1 %1792 }
 0x512   : > { %v1804_v11 = vmul.f32 %v1793_v3, %v5623_v48  ;;  %v1805_v61 = vmul.f32 %v1793_v3, %v5611_v30  ;;  %v1806_v28 = vmul.f32 0.0, %v1793_v3 }
 0x514   : > { %1833 = vrot.lane.b32.xlu0 %v1802_v52, %s5312_s20  ;;  %1831 = vrot.lane.b32.xlu2 %v1801_v10, %s5312_s20 }
 0x515   : > { %1835 = vrot.lane.b32.xlu1 %v1803_v55, %s5312_s20 }
 0x51c   : > { %1839 = vrot.lane.b32.xlu0 %v1805_v61, %s5312_s20  ;;  %1837 = vrot.lane.b32.xlu2 %v1804_v11, %s5312_s20 }
 0x51d   : > { %1841 = vrot.lane.b32.xlu1 %v1806_v28, %s5312_s20 }
 0x524   : > { %1881 = vperm.xlu0 %5156, %v6089_v58   ;;  %1877 = vperm.xlu2 %5155, %v6096_v34  }
 0x525   : > { %1885 = vperm.xlu1 %5157, %v6111_v54  }
 0x52c   : > { %1889 = vperm.xlu2 %5155, %v6104_v51   ;;  %5158 = vset.pattern.permute.xlu0 %v9135_v21 }
 0x52d   : > { %5159 = vset.pattern.permute.xlu1 %v9135_v21 }
 0x534   : > { %5160 = vset.pattern.permute.xlu2 %v9135_v21 }
 0x557   : > { %v6274_v3 = vpop.permute.xlu2 %1819 }
 0x558   : > { %9136 = vst [vmem:[#allocation91_spill] sm:$0xff] %v6274_v3 }
 0x566   : > { %v6276_v13 = vpop.permute.xlu2 %1825 }
 0x567   : > { %9137 = vst [vmem:[#allocation92_spill] sm:$0xff] %v6276_v13 }
 0x56e   : > { %v6278_v55 = vpop.permute.xlu2 %1831 }
 0x56f   : > { %9138 = vst [vmem:[#allocation93_spill] sm:$0xff] %v6278_v55  ;;  %v6280_v10 = vpop.permute.xlu0 %1821 }
 0x570   : > { %9139 = vst [vmem:[#allocation94_spill] sm:$0xff] %v6280_v10  ;;  %v6284_v11 = vpop.permute.xlu1 %1823 }
 0x571   : > { %9141 = vst [vmem:[#allocation96_spill] sm:$0xff] %v6284_v11 }
 0x576   : > { %v6282_v52 = vpop.permute.xlu2 %1837 }
 0x577   : > { %9140 = vst [vmem:[#allocation95_spill] sm:$0xff] %v6282_v52  ;;  %v5318_v52 = vmov 21  }
 0x57e   : > { %v6286_v61 = vpop.permute.xlu0 %1827  ;;  %v1878_v28 = vpop.permute.xlu2 %1877 }
 0x57f   : > { %9142 = vst [vmem:[#allocation97_spill] sm:$0xff] %v6286_v61  ;;  %v6288_v17 = vpop.permute.xlu1 %1829  ;;  %v1892_v57 = vmul.f32 %v1878_v28, %v5604_v33  ;;  %v1893_v21 = vmul.f32 %v1878_v28, %v5556_v41  ;;  %v1894_v53 = vmul.f32 0.0, %v1878_v28 }
 0x580   : > { %9143 = vst [vmem:[#allocation98_spill] sm:$0xff] %v6288_v17 }
 0x581   : > { %1918 = vrot.lane.b32.xlu2 %v1893_v21, %s5314_s21  ;;  %1916 = vrot.lane.b32.xlu1 %v1892_v57, %s5314_s21 }
 0x582   : > { %1920 = vrot.lane.b32.xlu0 %v1894_v53, %s5314_s21 }
 0x586   : > { %v6295_v42 = vpop.permute.xlu0 %1833  ;;  %v1890_v36 = vpop.permute.xlu2 %1889 }
 0x587   : > { %9144 = vst [vmem:[#allocation99_spill] sm:$0xff] %v6295_v42  ;;  %v6297_v43 = vpop.permute.xlu1 %1835 }
 0x588   : > { %9145 = vst [vmem:[#allocation100_spill] sm:$0xff] %v6297_v43 }
 0x58e   : > { %v6299_v50 = vpop.permute.xlu0 %1839 }
 0x58f   : > { %9146 = vst [vmem:[#allocation101_spill] sm:$0xff] %v6299_v50  ;;  %v6301_v59 = vpop.permute.xlu1 %1841 }
 0x590   : > { %9147 = vst [vmem:[#allocation102_spill] sm:$0xff] %v6301_v59 }
 0x596   : > { %v1882_v39 = vpop.permute.xlu0 %1881 }
 0x597   : > { %v1895_v1 = vmul.f32 %v1882_v39, %v5575_v56  ;;  %v1896_v28 = vmul.f32 %v1882_v39, %v5567_v49  ;;  %v1897_v35 = vmul.f32 0.0, %v1882_v39  ;;  %v1886_v53 = vpop.permute.xlu1 %1885  ;;  %v1901_v39 = vmul.f32 %v1890_v36, %v5623_v48 }
 0x598   : > { %v1900_v57 = vmul.f32 0.0, %v1886_v53  ;;  %v1898_v21 = vmul.f32 %v1886_v53, %v5601_v18  ;;  %v1899_v46 = vmul.f32 %v1886_v53, %v5592_v6 }
 0x599   : > { %1924 = vrot.lane.b32.xlu2 %v1896_v28, %s5314_s21  ;;  %1922 = vrot.lane.b32.xlu1 %v1895_v1, %s5314_s21  ;;  %v1902_v28 = vmul.f32 %v1890_v36, %v5611_v30  ;;  %v1903_v1 = vmul.f32 0.0, %v1890_v36  ;;  %v9148_v36 = vmov 6  }
 0x59a   : > { %1926 = vrot.lane.b32.xlu0 %v1897_v35, %s5314_s21  ;;  %v1973_v35 = vld [vmem:[%s8873_s14] ss:$8 sm:$0x3] }
 0x59b   : > { %v1975_v53 = vperm.slane %v1973_v35, 0 }
 0x5a1   : > { %1930 = vrot.lane.b32.xlu2 %v1899_v46, %s5314_s21  ;;  %1928 = vrot.lane.b32.xlu1 %v1898_v21, %s5314_s21  ;;  %v1976_v46 = vperm.slane %v1973_v35, 1 }
 0x5a2   : > { %1932 = vrot.lane.b32.xlu0 %v1900_v57, %s5314_s21 }
 0x5a9   : > { %1936 = vrot.lane.b32.xlu2 %v1902_v28, %s5314_s21  ;;  %1934 = vrot.lane.b32.xlu1 %v1901_v39, %s5314_s21 }
 0x5aa   : > { %1938 = vrot.lane.b32.xlu0 %v1903_v1, %s5314_s21 }
 0x5b1   : > { %1979 = vrot.lane.b32.xlu2 %v1976_v46, %s5315_s25  ;;  %1977 = vrot.lane.b32.xlu1 %v1975_v53, %s5315_s25  ;;  %s5331_s25 = smov 98  }
 0x5b2   : > { %1999 = vperm.xlu0 %5158, %v6096_v34  }
 0x5b9   : > { %2007 = vperm.xlu2 %5160, %v6111_v54   ;;  %2003 = vperm.xlu1 %5159, %v6089_v58  }
 0x5ba   : > { %5162 = vset.pattern.permute.xlu0 %v9148_v36 }
 0x5bb   : > { %2031 = vperm.xlu0 %5162, %v6089_v58  }
 0x5c1   : > { %5161 = vset.pattern.permute.xlu2 %v9148_v36  ;;  %2011 = vperm.xlu1 %5159, %v6104_v51  }
 0x5c2   : > { %2027 = vperm.xlu2 %5161, %v6096_v34  }
 0x5c3   : > { %5166 = vset.pattern.permute.xlu0 %v5316_v31 }
 0x5c9   : > { %5163 = vset.pattern.permute.xlu1 %v9148_v36 }
 0x5ca   : > { %2039 = vperm.xlu2 %5161, %v6104_v51   ;;  %2035 = vperm.xlu1 %5163, %v6111_v54  }
 0x5d2   : > { %5165 = vset.pattern.permute.xlu2 %v5316_v31  ;;  %5164 = vset.pattern.permute.xlu1 %v5316_v31 }
 0x5db   : > { %v6332_v57 = vpop.permute.xlu2 %1918 }
 0x5dc   : > { %9149 = vst [vmem:[#allocation103_spill] sm:$0xff] %v6332_v57 }
 0x5f3   : > { %v6334_v21 = vpop.permute.xlu2 %1924  ;;  %v6338_v28 = vpop.permute.xlu1 %1916 }
 0x5f4   : > { %9150 = vst [vmem:[#allocation104_spill] sm:$0xff] %v6334_v21  ;;  %v6342_v35 = vpop.permute.xlu0 %1920 }
 0x5f5   : > { %9152 = vst [vmem:[#allocation106_spill] sm:$0xff] %v6338_v28 }
 0x5f6   : > { %9154 = vst [vmem:[#allocation108_spill] sm:$0xff] %v6342_v35 }
 0x5fb   : > { %v6336_v39 = vpop.permute.xlu2 %1930 }
 0x5fc   : > { %9151 = vst [vmem:[#allocation105_spill] sm:$0xff] %v6336_v39 }
 0x603   : > { %v6340_v1 = vpop.permute.xlu2 %1936 }
 0x604   : > { %9153 = vst [vmem:[#allocation107_spill] sm:$0xff] %v6340_v1 }
 0x60b   : > { %v6344_v46 = vpop.permute.xlu1 %1922  ;;  %v6346_v53 = vpop.permute.xlu2 %1979 }
 0x60c   : > { %9155 = vst [vmem:[#allocation109_spill] sm:$0xff] %v6344_v46  ;;  %v6348_v36 = vpop.permute.xlu0 %1926 }
 0x60d   : > { %9156 = vst [vmem:[#allocation110_spill] sm:$0xff] %v6346_v53 }
 0x60e   : > { %9157 = vst [vmem:[#allocation111_spill] sm:$0xff] %v6348_v36 }
 0x613   : > { %v6350_v3 = vpop.permute.xlu1 %1928  ;;  %v6352_v10 = vpop.permute.xlu2 %2007 }
 0x614   : > { %9158 = vst [vmem:[#allocation112_spill] sm:$0xff] %v6350_v3  ;;  %v6354_v57 = vpop.permute.xlu0 %1932 }
 0x615   : > { %9159 = vst [vmem:[#allocation113_spill] sm:$0xff] %v6354_v57 }
 0x61b   : > { %v6356_v11 = vpop.permute.xlu1 %1934 }
 0x61c   : > { %9160 = vst [vmem:[#allocation114_spill] sm:$0xff] %v6356_v11  ;;  %v6358_v15 = vpop.permute.xlu0 %1938  ;;  %v2028_v28 = vpop.permute.xlu2 %2027 }
 0x61d   : > { %9161 = vst [vmem:[#allocation115_spill] sm:$0xff] %v6358_v15  ;;  %v2042_v21 = vmul.f32 0.0, %v2028_v28  ;;  %v2043_v35 = vmul.f32 %v2028_v28, %v5604_v33  ;;  %v2044_v46 = vmul.f32 %v2028_v28, %v5556_v41 }
 0x61f   : > { %2068 = vrot.lane.b32.xlu2 %v2043_v35, %s5302_s26  ;;  %2066 = vrot.lane.b32.xlu1 %v2042_v21, %s5302_s26 }
 0x620   : > { %2070 = vrot.lane.b32.xlu0 %v2044_v46, %s5302_s26 }
 0x623   : > { %v6365_v36 = vpop.permute.xlu1 %1977 }
 0x624   : > { %9162 = vst [vmem:[#allocation116_spill] sm:$0xff] %v6365_v36  ;;  %v6367_v13 = vpop.permute.xlu0 %1999 }
 0x62b   : > { %v6369_v5 = vpop.permute.xlu1 %2003 }
 0x62c   : > { %v2019_v16 = vmul.f32 %v6369_v5, %v5567_v49 }
 0x62d   : > { %v2032_v61 = vpop.permute.xlu0 %2031 }
 0x62e   : > { %v2045_v17 = vmul.f32 0.0, %v2032_v61  ;;  %v2046_v28 = vmul.f32 %v2032_v61, %v5575_v56  ;;  %v2047_v35 = vmul.f32 %v2032_v61, %v5567_v49  ;;  %v2040_v61 = vpop.permute.xlu2 %2039 }
 0x630   : > { %2076 = vrot.lane.b32.xlu0 %v2047_v35, %s5302_s26  ;;  %2074 = vrot.lane.b32.xlu2 %v2046_v28, %s5302_s26  ;;  %v2052_v35 = vmul.f32 %v2040_v61, %v5623_v48  ;;  %v2053_v28 = vmul.f32 %v2040_v61, %v5611_v30 }
 0x631   : > { %2072 = vrot.lane.b32.xlu1 %v2045_v17, %s5302_s26  ;;  %v2051_v17 = vmul.f32 0.0, %v2040_v61 }
 0x633   : > { %v6376_v21 = vpop.permute.xlu1 %2011 }
 0x63c   : > { %v2036_v46 = vpop.permute.xlu1 %2035 }
 0x63d   : > { %v2048_v63 = vmul.f32 0.0, %v2036_v46  ;;  %v2049_v31 = vmul.f32 %v2036_v46, %v5601_v18  ;;  %v2050_v8 = vmul.f32 %v2036_v46, %v5592_v6 }
 0x63f   : > { %2082 = vrot.lane.b32.xlu0 %v2050_v8, %s5302_s26  ;;  %2080 = vrot.lane.b32.xlu2 %v2049_v31, %s5302_s26 }
 0x640   : > { %2078 = vrot.lane.b32.xlu1 %v2048_v63, %s5302_s26 }
 0x647   : > { %2088 = vrot.lane.b32.xlu0 %v2053_v28, %s5302_s26  ;;  %2086 = vrot.lane.b32.xlu2 %v2052_v35, %s5302_s26 }
 0x648   : > { %2084 = vrot.lane.b32.xlu1 %v2051_v17, %s5302_s26 }
 0x64f   : > { %2131 = vperm.xlu0 %5166, %v6111_v54   ;;  %2127 = vperm.xlu2 %5165, %v6089_v58  }
 0x650   : > { %2123 = vperm.xlu1 %5164, %v6096_v34  }
 0x657   : > { %5167 = vset.pattern.permute.xlu0 %v5317_v40  ;;  %5169 = vset.pattern.permute.xlu2 %v5317_v40 }
 0x658   : > { %2135 = vperm.xlu1 %5164, %v6104_v51  }
 0x660   : > { %5168 = vset.pattern.permute.xlu1 %v5317_v40 }
 0x679   : > { %v6392_v8 = vpop.permute.xlu2 %2068 }
 0x68a   : > { %v6394_v63 = vpop.permute.xlu2 %2074 }
 0x691   : > { %v6402_v35 = vpop.permute.xlu1 %2066 }
 0x692   : > { %v6398_v31 = vpop.permute.xlu0 %2070 }
 0x699   : > { %v6396_v46 = vpop.permute.xlu2 %2080 }
 0x6a1   : > { %v6400_v61 = vpop.permute.xlu2 %2086 }
 0x6a2   : > { %v6404_v28 = vpop.permute.xlu0 %2076 }
 0x6a3   : > { %v6406_v47 = vpop.permute.xlu1 %2072  ;;  %v2115_v14 = vadd.f32 %v6404_v28, %v2019_v16  ;;  %v2022_v16 = vmul.f32 %v6352_v10, %v5592_v6 }
 0x6a9   : > { %v2128_v17 = vpop.permute.xlu2 %2127 }
 0x6aa   : > { %v2141_v4 = vmul.f32 0.0, %v2128_v17  ;;  %v2142_v40 = vmul.f32 %v2128_v17, %v5575_v56  ;;  %v2143_v11 = vmul.f32 %v2128_v17, %v5567_v49 }
 0x6ac   : > { %2168 = vrot.lane.b32.xlu0 %v2141_v4, %s5303_s27 }
 0x6b1   : > { %v6409_v27 = vpop.permute.xlu0 %2082 }
 0x6b2   : > { %v6411_v12 = vpop.permute.xlu1 %2078 }
 0x6b9   : > { %v6413_v37 = vpop.permute.xlu0 %2088 }
 0x6ba   : > { %v6415_v25 = vpop.permute.xlu1 %2084 }
 0x6c1   : > { %v2132_v29 = vpop.permute.xlu0 %2131 }
 0x6c2   : > { %v2144_v22 = vmul.f32 0.0, %v2132_v29  ;;  %v2124_v3 = vpop.permute.xlu1 %2123 }
 0x6c3   : > { %v2138_v36 = vmul.f32 0.0, %v2124_v3  ;;  %v2139_v53 = vmul.f32 %v2124_v3, %v5604_v33  ;;  %v2140_v39 = vmul.f32 %v2124_v3, %v5556_v41 }
 0x6c4   : > { %2174 = vrot.lane.b32.xlu0 %v2144_v22, %s5303_s27  ;;  %v2145_v22 = vmul.f32 %v2132_v29, %v5601_v18 }
 0x6c5   : > { %2164 = vrot.lane.b32.xlu1 %v2139_v53, %s5303_s27  ;;  %2162 = vrot.lane.b32.xlu2 %v2138_v36, %s5303_s27  ;;  %v2146_v53 = vmul.f32 %v2132_v29, %v5592_v6 }
 0x6ca   : > { %v2136_v4 = vpop.permute.xlu1 %2135 }
 0x6cb   : > { %v2147_v57 = vmul.f32 0.0, %v2136_v4  ;;  %v2148_v3 = vmul.f32 %v2136_v4, %v5623_v48 }
 0x6cd   : > { %2166 = vrot.lane.b32.xlu2 %v2140_v39, %s5303_s27  ;;  %2170 = vrot.lane.b32.xlu1 %v2142_v40, %s5303_s27 }
 0x6ce   : > { %2180 = vrot.lane.b32.xlu0 %v2147_v57, %s5303_s27  ;;  %v2149_v57 = vmul.f32 %v2136_v4, %v5611_v30 }
 0x6d5   : > { %2172 = vrot.lane.b32.xlu2 %v2143_v11, %s5303_s27  ;;  %2176 = vrot.lane.b32.xlu1 %v2145_v22, %s5303_s27 }
 0x6d6   : > { %2219 = vperm.xlu0 %5167, %v6096_v34  }
 0x6dd   : > { %2178 = vrot.lane.b32.xlu2 %v2146_v53, %s5303_s27  ;;  %2182 = vrot.lane.b32.xlu1 %v2148_v3, %s5303_s27 }
 0x6de   : > { %5171 = vset.pattern.permute.xlu0 %v5318_v52 }
 0x6e5   : > { %2184 = vrot.lane.b32.xlu2 %v2149_v57, %s5303_s27  ;;  %2223 = vperm.xlu1 %5168, %v6089_v58  }
 0x6ed   : > { %2227 = vperm.xlu2 %5169, %v6111_v54   ;;  %2231 = vperm.xlu1 %5168, %v6104_v51  }
 0x6f5   : > { %5170 = vset.pattern.permute.xlu2 %v5318_v52  ;;  %5172 = vset.pattern.permute.xlu1 %v5318_v52 }
 0x71e   : > { %v6442_v39 = vpop.permute.xlu0 %2168 }
 0x71f   : > { %v6440_v11 = vpop.permute.xlu2 %2162 }
 0x727   : > { %v6444_v29 = vpop.permute.xlu2 %2166 }
 0x72f   : > { %v6450_v40 = vpop.permute.xlu2 %2172 }
 0x736   : > { %v6446_v36 = vpop.permute.xlu0 %2174 }
 0x737   : > { %v6448_v17 = vpop.permute.xlu1 %2164  ;;  %v6458_v57 = vpop.permute.xlu2 %2178 }
 0x73f   : > { %v6452_v4 = vpop.permute.xlu1 %2170  ;;  %v6467_v43 = vpop.permute.xlu2 %2184 }
 0x740   : > { %v6454_v22 = vpop.permute.xlu0 %2180 }
 0x741   : > { %9163 = vst [vmem:[#allocation117_spill] sm:$0xff] %v6454_v22 }
 0x747   : > { %v6456_v53 = vpop.permute.xlu1 %2176 }
 0x748   : > { %v2220_v3 = vpop.permute.xlu0 %2219 }
 0x749   : > { %v2234_v55 = vmul.f32 %v2220_v3, %v5604_v33  ;;  %v2235_v1 = vmul.f32 %v2220_v3, %v5556_v41  ;;  %v2236_v15 = vmul.f32 0.0, %v2220_v3 }
 0x74b   : > { %2260 = vrot.lane.b32.xlu0 %v2235_v1, %s5312_s20  ;;  %2258 = vrot.lane.b32.xlu2 %v2234_v55, %s5312_s20 }
 0x74c   : > { %2262 = vrot.lane.b32.xlu1 %v2236_v15, %s5312_s20  ;;  %v2228_v15 = vpop.permute.xlu2 %2227 }
 0x74d   : > { %v2242_v55 = vmul.f32 0.0, %v2228_v15  ;;  %v2240_v52 = vmul.f32 %v2228_v15, %v5601_v18  ;;  %v2241_v1 = vmul.f32 %v2228_v15, %v5592_v6 }
 0x74f   : > { %v6465_v42 = vpop.permute.xlu1 %2182 }
 0x757   : > { %v2224_v50 = vpop.permute.xlu1 %2223 }
 0x758   : > { %v2237_v59 = vmul.f32 %v2224_v50, %v5575_v56  ;;  %v2238_v44 = vmul.f32 %v2224_v50, %v5567_v49  ;;  %v2239_v3 = vmul.f32 0.0, %v2224_v50 }
 0x75a   : > { %2266 = vrot.lane.b32.xlu0 %v2238_v44, %s5312_s20  ;;  %2264 = vrot.lane.b32.xlu2 %v2237_v59, %s5312_s20 }
 0x75b   : > { %2268 = vrot.lane.b32.xlu1 %v2239_v3, %s5312_s20  ;;  %v9164_v3 = vmov 2  }
 0x75f   : > { %v2232_v7 = vpop.permute.xlu1 %2231 }
 0x760   : > { %v2243_v50 = vmul.f32 %v2232_v7, %v5623_v48  ;;  %v2244_v44 = vmul.f32 %v2232_v7, %v5611_v30  ;;  %v2245_v59 = vmul.f32 0.0, %v2232_v7 }
 0x762   : > { %2272 = vrot.lane.b32.xlu0 %v2241_v1, %s5312_s20  ;;  %2270 = vrot.lane.b32.xlu2 %v2240_v52, %s5312_s20 }
 0x763   : > { %2274 = vrot.lane.b32.xlu1 %v2242_v55, %s5312_s20 }
 0x76a   : > { %2278 = vrot.lane.b32.xlu0 %v2244_v44, %s5312_s20  ;;  %2276 = vrot.lane.b32.xlu2 %v2243_v50, %s5312_s20 }
 0x76b   : > { %2280 = vrot.lane.b32.xlu1 %v2245_v59, %s5312_s20 }
 0x772   : > { %2319 = vperm.xlu0 %5171, %v6089_v58   ;;  %2315 = vperm.xlu2 %5170, %v6096_v34  }
 0x773   : > { %2323 = vperm.xlu1 %5172, %v6111_v54  }
 0x77a   : > { %2327 = vperm.xlu2 %5170, %v6104_v51   ;;  %5173 = vset.pattern.permute.xlu0 %v9164_v3 }
 0x77b   : > { %5174 = vset.pattern.permute.xlu1 %v9164_v3 }
 0x782   : > { %5175 = vset.pattern.permute.xlu2 %v9164_v3 }
 0x7a5   : > { %v6491_v7 = vpop.permute.xlu2 %2258 }
 0x7b4   : > { %v6493_v15 = vpop.permute.xlu2 %2264 }
 0x7bc   : > { %v6495_v55 = vpop.permute.xlu2 %2270 }
 0x7bd   : > { %v6497_v52 = vpop.permute.xlu0 %2260 }
 0x7be   : > { %v2263_v34 = vpop.permute.xlu1 %2262 }
 0x7c4   : > { %v6499_v58 = vpop.permute.xlu2 %2276 }
 0x7c5   : > { %9165 = vst [vmem:[#allocation118_spill] sm:$0xff] %v6499_v58 }
 0x7cc   : > { %v6501_v54 = vpop.permute.xlu0 %2266  ;;  %v2316_v51 = vpop.permute.xlu2 %2315 }
 0x7cd   : > { %v2269_v1 = vpop.permute.xlu1 %2268  ;;  %v2330_v50 = vmul.f32 %v2316_v51, %v5604_v33  ;;  %v2331_v44 = vmul.f32 %v2316_v51, %v5556_v41  ;;  %v2332_v59 = vmul.f32 0.0, %v2316_v51 }
 0x7ce   : > { %v2285_v20 = vsel %vm1843_vm4, %v6501_v54, %v2269_v1 }
 0x7cf   : > { %2356 = vrot.lane.b32.xlu2 %v2331_v44, %s5314_s21  ;;  %2354 = vrot.lane.b32.xlu1 %v2330_v50, %s5314_s21 }
 0x7d0   : > { %2358 = vrot.lane.b32.xlu0 %v2332_v59, %s5314_s21 }
 0x7d4   : > { %v6508_v3 = vpop.permute.xlu0 %2272  ;;  %v2328_v23 = vpop.permute.xlu2 %2327 }
 0x7d5   : > { %v2275_v45 = vpop.permute.xlu1 %2274 }
 0x7d6   : > { %v2287_v1 = vsel %vm1843_vm4, %v6508_v3, %v2275_v45  ;;  %v2090_v45 = vsel %vm738_vm2, %v6402_v35, %v6392_v8 }
 0x7dc   : > { %v6510_v0 = vpop.permute.xlu0 %2278 }
 0x7dd   : > { %v6512_v26 = vpop.permute.xlu1 %2280 }
 0x7e4   : > { %v2320_v2 = vpop.permute.xlu0 %2319 }
 0x7e5   : > { %v2333_v32 = vmul.f32 %v2320_v2, %v5575_v56  ;;  %v2334_v38 = vmul.f32 %v2320_v2, %v5567_v49  ;;  %v2335_v62 = vmul.f32 0.0, %v2320_v2  ;;  %v2324_v51 = vpop.permute.xlu1 %2323  ;;  %v2339_v2 = vmul.f32 %v2328_v23, %v5623_v48 }
 0x7e6   : > { %v2338_v50 = vmul.f32 0.0, %v2324_v51  ;;  %v2336_v44 = vmul.f32 %v2324_v51, %v5601_v18  ;;  %v2337_v59 = vmul.f32 %v2324_v51, %v5592_v6  ;;  %v9167_v51 = vperm.slane %v5503_v19, 0 }
 0x7e7   : > { %2362 = vrot.lane.b32.xlu2 %v2334_v38, %s5314_s21  ;;  %2360 = vrot.lane.b32.xlu1 %v2333_v32, %s5314_s21  ;;  %v2340_v38 = vmul.f32 %v2328_v23, %v5611_v30  ;;  %v2341_v32 = vmul.f32 0.0, %v2328_v23  ;;  %v2016_v23 = vmul.f32 %v6367_v13, %v5556_v41 }
 0x7e8   : > { %2364 = vrot.lane.b32.xlu0 %v2335_v62, %s5314_s21  ;;  %v9166_v62 = vperm.slane %v5503_v19, 1  ;;  %v2283_v19 = vsel %vm1843_vm4, %v6497_v52, %v2263_v34  ;;  %v2211_v34 = vadd.f32 %v6450_v40, %v2115_v14 }
 0x7ef   : > { %2368 = vrot.lane.b32.xlu2 %v2337_v59, %s5314_s21  ;;  %2366 = vrot.lane.b32.xlu1 %v2336_v44, %s5314_s21 }
 0x7f0   : > { %2370 = vrot.lane.b32.xlu0 %v2338_v50, %s5314_s21 }
 0x7f7   : > { %2374 = vrot.lane.b32.xlu2 %v2340_v38, %s5314_s21  ;;  %2372 = vrot.lane.b32.xlu1 %v2339_v2, %s5314_s21 }
 0x7f8   : > { %2376 = vrot.lane.b32.xlu0 %v2341_v32, %s5314_s21  ;;  %v2112_v32 = vadd.f32 %v6398_v31, %v2016_v23 }
 0x7ff   : > { %2412 = vrot.lane.b32.xlu2 %v9166_v62, %s5319_s28  ;;  %2410 = vrot.lane.b32.xlu1 %v9167_v51, %s5319_s28  ;;  %v2208_v62 = vadd.f32 %v6444_v29, %v2112_v32  ;;  %v2307_v32 = vadd.f32 %v2285_v20, %v2211_v34 }
 0x801   : > { %v2304_v60 = vadd.f32 %v2283_v19, %v2208_v62  ;;  %v2118_v19 = vadd.f32 %v6409_v27, %v2022_v16 }
 0x803   : > { %v2214_v14 = vadd.f32 %v6458_v57, %v2118_v19  ;;  %v2186_v19 = vsel %vm835_vm1, %v6440_v11, %v6448_v17 }
 0x829   : > { %v2357_v50 = vpop.permute.xlu2 %2356 }
 0x841   : > { %v6533_v44 = vpop.permute.xlu2 %2362  ;;  %v6539_v38 = vpop.permute.xlu1 %2354 }
 0x842   : > { %v2359_v24 = vpop.permute.xlu0 %2358 }
 0x843   : > { %v2379_v51 = vsel %vm1940_vm5, %v2357_v50, %v2359_v24 }
 0x844   : > { %v2400_v9 = vadd.f32 %v2379_v51, %v2304_v60 }
 0x849   : > { %v6535_v59 = vpop.permute.xlu2 %2368 }
 0x851   : > { %v6541_v2 = vpop.permute.xlu2 %2374 }
 0x859   : > { %v6553_v23 = vpop.permute.xlu1 %2360  ;;  %v2413_v41 = vpop.permute.xlu2 %2412 }
 0x85a   : > { %v2365_v58 = vpop.permute.xlu0 %2364  ;;  %v2421_v22 = vmul.f32 %v2413_v41, %v2400_v9 }
 0x85b   : > { %v2381_v24 = vsel %vm1940_vm5, %v6533_v44, %v2365_v58  ;;  %v2310_v58 = vadd.f32 %v2287_v1, %v2214_v14  ;;  %v2289_v1 = vsel %vm1843_vm4, %v6510_v0, %v6512_v26  ;;  %v2282_v26 = vsel %vm1843_vm4, %v6491_v7, %v6497_v52 }
 0x85c   : > { %2447 = vrot.lane.b32.xlu2 %v2421_v22, %s5306_s16  ;;  %v2403_v60 = vadd.f32 %v2381_v24, %v2307_v32  ;;  %v2025_v22 = vmul.f32 %v6376_v21, %v5611_v30  ;;  %v2091_v24 = vsel %vm738_vm2, %v6392_v8, %v6398_v31  ;;  %v2014_v32 = vmul.f32 0.0, %v6367_v13 }
 0x85d   : > { %v2187_v8 = vsel %vm835_vm1, %v6448_v17, %v6444_v29  ;;  %v2092_v29 = vsel %vm738_vm2, %v6406_v47, %v6394_v63  ;;  %v2093_v52 = vsel %vm738_vm2, %v6394_v63, %v6404_v28 }
 0x85e   : > { %v2424_v51 = vmul.f32 %v2413_v41, %v2403_v60  ;;  %v2121_v16 = vadd.f32 %v6413_v37, %v2025_v22  ;;  %v2015_v60 = vmul.f32 %v6367_v13, %v5604_v33  ;;  %v2110_v14 = vadd.f32 %v2090_v45, %v2014_v32 }
 0x860   : > { %v2217_v31 = vadd.f32 %v6467_v43, %v2121_v16  ;;  %v2111_v13 = vadd.f32 %v2091_v24, %v2015_v60  ;;  %v2206_v11 = vadd.f32 %v2186_v19, %v2110_v14  ;;  %v2017_v24 = vmul.f32 0.0, %v6369_v5 }
 0x861   : > { %v6564_v62 = vpop.permute.xlu1 %2366  ;;  %v2018_v60 = vmul.f32 %v6369_v5, %v5575_v56 }
 0x862   : > { %v2371_v9 = vpop.permute.xlu0 %2370  ;;  %v2207_v22 = vadd.f32 %v2187_v8, %v2111_v13  ;;  %v2302_v17 = vadd.f32 %v6491_v7, %v2206_v11  ;;  %v2113_v47 = vadd.f32 %v2092_v29, %v2017_v24  ;;  %v2188_v7 = vsel %vm835_vm1, %v6442_v39, %v6452_v4 }
 0x863   : > { %v2383_v20 = vsel %vm1940_vm5, %v6535_v59, %v2371_v9  ;;  %v2097_v29 = vsel %vm738_vm2, %v6400_v61, %v6413_v37 }
 0x864   : > { %2453 = vrot.lane.b32.xlu2 %v2424_v51, %s5306_s16  ;;  %v2406_v34 = vadd.f32 %v2383_v20, %v2310_v58  ;;  %v2313_v58 = vadd.f32 %v2289_v1, %v2217_v31  ;;  %v2303_v32 = vadd.f32 %v2282_v26, %v2207_v22  ;;  %v2398_v16 = vadd.f32 %v6539_v38, %v2302_v17 }
 0x865   : > { %v2189_v1 = vsel %vm835_vm1, %v6452_v4, %v6450_v40  ;;  %v2209_v5 = vadd.f32 %v2188_v7, %v2113_v47  ;;  %v2284_v31 = vsel %vm1843_vm4, %v6493_v15, %v6501_v54  ;;  %v2094_v4 = vsel %vm738_vm2, %v6411_v12, %v6396_v46  ;;  %v6690_v7 = vld [vmem:[%s8864_s5] sm:$0xff] }
 0x866   : > { %v2427_v9 = vmul.f32 %v2413_v41, %v2406_v34  ;;  %v2378_v34 = vsel %vm1940_vm5, %v6539_v38, %v2357_v50  ;;  %v2114_v38 = vadd.f32 %v2093_v52, %v2018_v60  ;;  %v2095_v54 = vsel %vm738_vm2, %v6396_v46, %v6409_v27 }
 0x867   : > { %v2399_v50 = vadd.f32 %v2378_v34, %v2303_v32  ;;  %v2305_v40 = vadd.f32 %v6493_v15, %v2209_v5  ;;  %v2021_v15 = vmul.f32 %v6352_v10, %v5601_v18  ;;  %v2191_v12 = vsel %vm835_vm1, %v6456_v53, %v6458_v57 }
 0x868   : > { %v2210_v39 = vadd.f32 %v2189_v1, %v2114_v38  ;;  %v2382_v57 = vsel %vm1940_vm5, %v6564_v62, %v6535_v59  ;;  %v2023_v17 = vmul.f32 0.0, %v6376_v21  ;;  %v6704_v38 = vld [vmem:[%s8864_s5 + $0x18] sm:$0xff] }
 0x869   : > { %v6588_v35 = vpop.permute.xlu1 %2372  ;;  %v2401_v13 = vadd.f32 %v6553_v23, %v2305_v40  ;;  %v2117_v27 = vadd.f32 %v2095_v54, %v2021_v15 }
 0x86a   : > { %v2377_v51 = vpop.permute.xlu0 %2376 }
 0x86b   : > { %v2385_v20 = vsel %vm1940_vm5, %v6541_v2, %v2377_v51  ;;  %v2020_v51 = vmul.f32 0.0, %v6352_v10  ;;  %v6657_v10 = vld [vmem:[%s8864_s5 + $0x10] sm:$0xff] }
 0x86c   : > { %2459 = vrot.lane.b32.xlu2 %v2427_v9, %s5306_s16  ;;  %v2409_v45 = vadd.f32 %v2385_v20, %v2313_v58  ;;  %v2306_v9 = vadd.f32 %v2284_v31, %v2210_v39  ;;  %9168 = vst [vmem:[#allocation119_spill] sm:$0xff] %v6657_v10 }
 0x86d   : > { %v2116_v11 = vadd.f32 %v2094_v4, %v2020_v51 }
 0x86e   : > { %v2430_v14 = vmul.f32 %v2413_v41, %v2409_v45  ;;  %v9169_v45 = vld [vmem:[#allocation117_spill] sm:$0xff] }
 0x86f   : > { %v2192_v59 = vsel %vm835_vm1, %v9169_v45, %v6465_v42 }
 0x871   : > { %v6616_v19 = vpop.permute.xlu1 %2410 }
 0x872   : > { %v2419_v63 = vmul.f32 %v6616_v19, %v2398_v16  ;;  %v2415_v28 = vsel %vm2414_vm6, %v6616_v19, %v2413_v41  ;;  %v2380_v41 = vsel %vm1940_vm5, %v6553_v23, %v6533_v44  ;;  %v2190_v44 = vsel %vm835_vm1, %v6446_v36, %v6456_v53 }
 0x873   : > { %v2420_v8 = vmul.f32 %v2415_v28, %v2399_v50  ;;  %v2402_v20 = vadd.f32 %v2380_v41, %v2306_v9  ;;  %v2422_v26 = vmul.f32 %v6616_v19, %v2401_v13  ;;  %v2212_v58 = vadd.f32 %v2190_v44, %v2116_v11  ;;  %v9177_v41 = vld [vmem:[#allocation6_spill] sm:$0xff] }
 0x874   : > { %2443 = vrot.lane.b32.xlu0 %v2419_v63, %s5306_s16  ;;  %2465 = vrot.lane.b32.xlu2 %v2430_v14, %s5306_s16  ;;  %v2286_v23 = vsel %vm1843_vm4, %v6495_v55, %v6508_v3  ;;  %v2213_v36 = vadd.f32 %v2191_v12, %v2117_v27  ;;  %v2096_v3 = vsel %vm738_vm2, %v6415_v25, %v6400_v61  ;;  %v5320_v12 = vmov 12  }
 0x875   : > { %2445 = vrot.lane.b32.xlu1 %v2420_v8, %s5306_s16  ;;  %v2423_v46 = vmul.f32 %v2415_v28, %v2402_v20  ;;  %v2308_v53 = vadd.f32 %v6495_v55, %v2212_v58  ;;  %v2024_v55 = vmul.f32 %v6376_v21, %v5623_v48  ;;  %v2119_v32 = vadd.f32 %v2096_v3, %v2023_v17 }
 0x876   : > { %v2309_v22 = vadd.f32 %v2286_v23, %v2213_v36  ;;  %v2193_v25 = vsel %vm835_vm1, %v6465_v42, %v6467_v43  ;;  %v9171_v21 = vmov 7   ;;  %v2384_v43 = vsel %vm1940_vm5, %v6588_v35, %v6541_v2  ;;  %v6712_v2 = vld [vmem:[%s8864_s5 + $0x8] sm:$0xff] }
 0x877   : > { %v2404_v34 = vadd.f32 %v6564_v62, %v2308_v53  ;;  %v2120_v37 = vadd.f32 %v2097_v29, %v2024_v55  ;;  %v2215_v16 = vadd.f32 %v2192_v59, %v2119_v32  ;;  %v9170_v62 = vld [vmem:[#allocation118_spill] sm:$0xff]  ;;  %9172 = vst [vmem:[#allocation117_spill] sm:$0xff] %v6712_v2 }
 0x878   : > { %v2405_v24 = vadd.f32 %v2382_v57, %v2309_v22  ;;  %v2288_v60 = vsel %vm1843_vm4, %v9170_v62, %v6510_v0 }
 0x879   : > { %v2425_v52 = vmul.f32 %v6616_v19, %v2404_v34  ;;  %v2216_v47 = vadd.f32 %v2193_v25, %v2120_v37  ;;  %v2311_v42 = vadd.f32 %v9170_v62, %v2215_v16 }
 0x87a   : > { %v2426_v61 = vmul.f32 %v2415_v28, %v2405_v24 }
 0x87b   : > { %v2312_v0 = vadd.f32 %v2288_v60, %v2216_v47  ;;  %v2407_v50 = vadd.f32 %v6588_v35, %v2311_v42 }
 0x87c   : > { %2449 = vrot.lane.b32.xlu0 %v2422_v26, %s5306_s16  ;;  %2508 = vperm.xlu2 %5175, %v6657_v10  }
 0x87d   : > { %2451 = vrot.lane.b32.xlu1 %v2423_v46, %s5306_s16  ;;  %v2408_v1 = vadd.f32 %v2384_v43, %v2312_v0  ;;  %v2428_v14 = vmul.f32 %v6616_v19, %v2407_v50 }
 0x87f   : > { %v2429_v63 = vmul.f32 %v2415_v28, %v2408_v1 }
 0x884   : > { %2455 = vrot.lane.b32.xlu0 %v2425_v52, %s5306_s16  ;;  %5176 = vset.pattern.permute.xlu2 %v9171_v21 }
 0x885   : > { %2528 = vperm.xlu2 %5176, %v6690_v7   ;;  %2457 = vrot.lane.b32.xlu1 %v2426_v61, %s5306_s16 }
 0x88c   : > { %2461 = vrot.lane.b32.xlu0 %v2428_v14, %s5306_s16 }
 0x88d   : > { %2540 = vperm.xlu2 %5176, %v6704_v38   ;;  %2463 = vrot.lane.b32.xlu1 %v2429_v63, %s5306_s16 }
 0x894   : > { %2500 = vperm.xlu0 %5173, %v6690_v7  }
 0x895   : > { %2504 = vperm.xlu1 %5174, %v6712_v2   ;;  %5180 = vset.pattern.permute.xlu2 %v5320_v12 }
 0x89c   : > { %5177 = vset.pattern.permute.xlu0 %v9171_v21 }
 0x89d   : > { %2532 = vperm.xlu0 %5177, %v6712_v2   ;;  %2512 = vperm.xlu1 %5174, %v6704_v38  }
 0x8a5   : > { %5178 = vset.pattern.permute.xlu1 %v9171_v21  ;;  %5181 = vset.pattern.permute.xlu0 %v5320_v12  ;;  %v5321_v21 = vmov 17  }
 0x8a6   : > { %2536 = vperm.xlu1 %5178, %v6657_v10  }
 0x8ae   : > { %5179 = vset.pattern.permute.xlu1 %v5320_v12 }
 0x8b6   : > { %v6720_v35 = vpop.permute.xlu2 %2447 }
 0x8b7   : > { %9173 = vst [vmem:[#allocation118_spill] sm:$0xff] %v6720_v35 }
 0x8be   : > { %v6722_v19 = vpop.permute.xlu2 %2453 }
 0x8bf   : > { %9174 = vst [vmem:[#allocation120_spill] sm:$0xff] %v6722_v19 }
 0x8c6   : > { %v6724_v28 = vpop.permute.xlu2 %2459 }
 0x8c7   : > { %9175 = vst [vmem:[#allocation121_spill] sm:$0xff] %v6724_v28 }
 0x8ce   : > { %v6726_v8 = vpop.permute.xlu2 %2465 }
 0x8cf   : > { %9176 = vst [vmem:[#allocation122_spill] sm:$0xff] %v6726_v8 }
 0x8d6   : > { %v6728_v5 = vpop.permute.xlu2 %2508 }
 0x8df   : > { %v2529_v31 = vpop.permute.xlu2 %2528 }
 0x8e0   : > { %v2543_v39 = vmul.f32 0.0, %v2529_v31  ;;  %v2544_v40 = vmul.f32 %v2529_v31, %v5604_v33  ;;  %v2545_v4 = vmul.f32 %v2529_v31, %v9177_v41 }
 0x8e2   : > { %2571 = vrot.lane.b32.xlu0 %v2545_v4, %s5302_s26  ;;  %2569 = vrot.lane.b32.xlu2 %v2544_v40, %s5302_s26 }
 0x8e3   : > { %2567 = vrot.lane.b32.xlu1 %v2543_v39, %s5302_s26 }
 0x8e6   : > { %v6735_v9 = vpop.permute.xlu0 %2443 }
 0x8e7   : > { %9178 = vst [vmem:[#allocation123_spill] sm:$0xff] %v6735_v9  ;;  %v6737_v54 = vpop.permute.xlu1 %2445  ;;  %v2541_v17 = vpop.permute.xlu2 %2540 }
 0x8e8   : > { %9179 = vst [vmem:[#allocation124_spill] sm:$0xff] %v6737_v54  ;;  %v2553_v34 = vmul.f32 %v2541_v17, %v5623_v48  ;;  %v2554_v55 = vmul.f32 %v2541_v17, %v5611_v30  ;;  %v2552_v45 = vmul.f32 0.0, %v2541_v17 }
 0x8ee   : > { %v6739_v51 = vpop.permute.xlu0 %2449 }
 0x8ef   : > { %9180 = vst [vmem:[#allocation125_spill] sm:$0xff] %v6739_v51  ;;  %v6741_v13 = vpop.permute.xlu1 %2451 }
 0x8f0   : > { %9181 = vst [vmem:[#allocation126_spill] sm:$0xff] %v6741_v13 }
 0x8f6   : > { %v6743_v15 = vpop.permute.xlu0 %2455 }
 0x8f7   : > { %9182 = vst [vmem:[#allocation127_spill] sm:$0xff] %v6743_v15  ;;  %v6745_v44 = vpop.permute.xlu1 %2457 }
 0x8f8   : > { %9183 = vst [vmem:[#allocation128_spill] sm:$0xff] %v6745_v44 }
 0x8fe   : > { %v6747_v20 = vpop.permute.xlu0 %2461 }
 0x8ff   : > { %9184 = vst [vmem:[#allocation129_spill] sm:$0xff] %v6747_v20  ;;  %v6749_v11 = vpop.permute.xlu1 %2463 }
 0x900   : > { %9185 = vst [vmem:[#allocation130_spill] sm:$0xff] %v6749_v11 }
 0x906   : > { %v6751_v26 = vpop.permute.xlu0 %2500 }
 0x907   : > { %v6753_v27 = vpop.permute.xlu1 %2504 }
 0x908   : > { %v2518_v44 = vmul.f32 0.0, %v6753_v27 }
 0x90f   : > { %v2533_v46 = vpop.permute.xlu0 %2532  ;;  %v6755_v58 = vpop.permute.xlu1 %2512 }
 0x910   : > { %v2546_v23 = vmul.f32 0.0, %v2533_v46  ;;  %v2547_v36 = vmul.f32 %v2533_v46, %v5575_v56  ;;  %v2548_v53 = vmul.f32 %v2533_v46, %v5567_v49 }
 0x912   : > { %2577 = vrot.lane.b32.xlu0 %v2548_v53, %s5302_s26  ;;  %2575 = vrot.lane.b32.xlu2 %v2547_v36, %s5302_s26 }
 0x913   : > { %2573 = vrot.lane.b32.xlu1 %v2546_v23, %s5302_s26 }
 0x918   : > { %v2537_v57 = vpop.permute.xlu1 %2536 }
 0x919   : > { %v2549_v3 = vmul.f32 0.0, %v2537_v57  ;;  %v2550_v22 = vmul.f32 %v2537_v57, %v5601_v18  ;;  %v2551_v29 = vmul.f32 %v2537_v57, %v5592_v6 }
 0x91b   : > { %2583 = vrot.lane.b32.xlu0 %v2551_v29, %s5302_s26  ;;  %2581 = vrot.lane.b32.xlu2 %v2550_v22, %s5302_s26 }
 0x91c   : > { %2579 = vrot.lane.b32.xlu1 %v2549_v3, %s5302_s26 }
 0x923   : > { %2589 = vrot.lane.b32.xlu0 %v2554_v55, %s5302_s26  ;;  %2587 = vrot.lane.b32.xlu2 %v2553_v34, %s5302_s26  ;;  %v5322_v55 = vmov 22  }
 0x924   : > { %2585 = vrot.lane.b32.xlu1 %v2552_v45, %s5302_s26 }
 0x92b   : > { %2632 = vperm.xlu0 %5181, %v6657_v10   ;;  %2628 = vperm.xlu2 %5180, %v6712_v2  }
 0x92c   : > { %2624 = vperm.xlu1 %5179, %v6690_v7  }
 0x933   : > { %5183 = vset.pattern.permute.xlu0 %v5321_v21  ;;  %5182 = vset.pattern.permute.xlu2 %v5321_v21 }
 0x934   : > { %2636 = vperm.xlu1 %5179, %v6704_v38  }
 0x93c   : > { %v6776_v59 = vpop.permute.xlu2 %2569  ;;  %5184 = vset.pattern.permute.xlu1 %v5321_v21 }
 0x954   : > { %v6786_v37 = vpop.permute.xlu0 %2571 }
 0x955   : > { %v6782_v25 = vpop.permute.xlu1 %2567 }
 0x96c   : > { %v6778_v24 = vpop.permute.xlu2 %2575 }
 0x975   : > { %v6780_v32 = vpop.permute.xlu2 %2581 }
 0x97d   : > { %v6784_v52 = vpop.permute.xlu2 %2587 }
 0x984   : > { %v6790_v62 = vpop.permute.xlu0 %2577 }
 0x985   : > { %v6788_v61 = vpop.permute.xlu1 %2573  ;;  %v2629_v16 = vpop.permute.xlu2 %2628 }
 0x986   : > { %v2642_v60 = vmul.f32 %v2629_v16, %v5567_v49  ;;  %v2641_v39 = vmul.f32 %v2629_v16, %v5575_v56 }
 0x988   : > { %2661 = vrot.lane.b32.xlu0 %v2642_v60, %s5303_s27 }
 0x98d   : > { %v6796_v42 = vpop.permute.xlu0 %2583 }
 0x98e   : > { %v6794_v47 = vpop.permute.xlu1 %2579 }
 0x995   : > { %v6800_v0 = vpop.permute.xlu0 %2589 }
 0x996   : > { %v6798_v43 = vpop.permute.xlu1 %2585 }
 0x99d   : > { %v2633_v63 = vpop.permute.xlu0 %2632 }
 0x99e   : > { %v2625_v50 = vpop.permute.xlu1 %2624  ;;  %v2643_v40 = vmul.f32 %v2633_v63, %v5601_v18  ;;  %v2644_v12 = vmul.f32 %v2633_v63, %v5592_v6 }
 0x99f   : > { %v2639_v1 = vmul.f32 %v2625_v50, %v5604_v33  ;;  %v2640_v14 = vmul.f32 %v2625_v50, %v9177_v41 }
 0x9a1   : > { %2657 = vrot.lane.b32.xlu1 %v2640_v14, %s5303_s27  ;;  %2655 = vrot.lane.b32.xlu2 %v2639_v1, %s5303_s27 }
 0x9a6   : > { %v2637_v31 = vpop.permute.xlu1 %2636 }
 0x9a7   : > { %v2645_v4 = vmul.f32 %v2637_v31, %v5623_v48  ;;  %v2646_v46 = vmul.f32 %v2637_v31, %v5611_v30 }
 0x9a9   : > { %2663 = vrot.lane.b32.xlu1 %v2643_v40, %s5303_s27  ;;  %2659 = vrot.lane.b32.xlu2 %v2641_v39, %s5303_s27 }
 0x9aa   : > { %2667 = vrot.lane.b32.xlu0 %v2645_v4, %s5303_s27 }
 0x9b1   : > { %2665 = vrot.lane.b32.xlu2 %v2644_v12, %s5303_s27  ;;  %2669 = vrot.lane.b32.xlu1 %v2646_v46, %s5303_s27 }
 0x9b2   : > { %2704 = vperm.xlu0 %5183, %v6712_v2  }
 0x9b9   : > { %2700 = vperm.xlu2 %5182, %v6690_v7   ;;  %2708 = vperm.xlu1 %5184, %v6657_v10  }
 0x9ba   : > { %5187 = vset.pattern.permute.xlu0 %v5322_v55 }
 0x9c1   : > { %2712 = vperm.xlu2 %5182, %v6704_v38   ;;  %5185 = vset.pattern.permute.xlu1 %v5322_v55 }
 0x9c9   : > { %5186 = vset.pattern.permute.xlu2 %v5322_v55 }
 0x9fa   : > { %v6828_v22 = vpop.permute.xlu0 %2661 }
 0x9fb   : > { %v6820_v23 = vpop.permute.xlu2 %2655 }
 0xa03   : > { %v6822_v36 = vpop.permute.xlu2 %2659 }
 0xa0b   : > { %v6824_v53 = vpop.permute.xlu2 %2665 }
 0xa13   : > { %v2701_v57 = vpop.permute.xlu2 %2700  ;;  %v6826_v3 = vpop.permute.xlu1 %2657 }
 0xa14   : > { %v2715_v29 = vmul.f32 %v2701_v57, %v5604_v33  ;;  %v2716_v17 = vmul.f32 %v2701_v57, %v9177_v41  ;;  %v2717_v34 = vmul.f32 0.0, %v2701_v57 }
 0xa16   : > { %2741 = vrot.lane.b32.xlu2 %v2716_v17, %s5312_s20  ;;  %2739 = vrot.lane.b32.xlu1 %v2715_v29, %s5312_s20  ;;  %v9186_v29 = vmov 3  }
 0xa17   : > { %2743 = vrot.lane.b32.xlu0 %v2717_v34, %s5312_s20 }
 0xa1b   : > { %v6835_v45 = vpop.permute.xlu1 %2663  ;;  %v2713_v4 = vpop.permute.xlu2 %2712 }
 0xa1c   : > { %v6837_v16 = vpop.permute.xlu0 %2667  ;;  %v2724_v12 = vmul.f32 %v2713_v4, %v5623_v48  ;;  %v2725_v46 = vmul.f32 %v2713_v4, %v5611_v30  ;;  %v2726_v57 = vmul.f32 0.0, %v2713_v4 }
 0xa23   : > { %v6839_v60 = vpop.permute.xlu1 %2669 }
 0xa24   : > { %v2705_v21 = vpop.permute.xlu0 %2704 }
 0xa25   : > { %v2718_v50 = vmul.f32 %v2705_v21, %v5575_v56  ;;  %v2719_v1 = vmul.f32 %v2705_v21, %v5567_v49  ;;  %v2720_v14 = vmul.f32 0.0, %v2705_v21 }
 0xa27   : > { %2747 = vrot.lane.b32.xlu2 %v2719_v1, %s5312_s20  ;;  %2745 = vrot.lane.b32.xlu1 %v2718_v50, %s5312_s20 }
 0xa28   : > { %2749 = vrot.lane.b32.xlu0 %v2720_v14, %s5312_s20 }
 0xa2b   : > { %v2709_v63 = vpop.permute.xlu1 %2708 }
 0xa2c   : > { %v2721_v31 = vmul.f32 %v2709_v63, %v5601_v18  ;;  %v2722_v39 = vmul.f32 %v2709_v63, %v5592_v6  ;;  %v2723_v40 = vmul.f32 0.0, %v2709_v63 }
 0xa2f   : > { %2753 = vrot.lane.b32.xlu2 %v2722_v39, %s5312_s20  ;;  %2751 = vrot.lane.b32.xlu1 %v2721_v31, %s5312_s20 }
 0xa30   : > { %2755 = vrot.lane.b32.xlu0 %v2723_v40, %s5312_s20 }
 0xa37   : > { %2759 = vrot.lane.b32.xlu2 %v2725_v46, %s5312_s20  ;;  %2757 = vrot.lane.b32.xlu1 %v2724_v12, %s5312_s20 }
 0xa38   : > { %2761 = vrot.lane.b32.xlu0 %v2726_v57, %s5312_s20 }
 0xa3f   : > { %2800 = vperm.xlu2 %5186, %v6712_v2   ;;  %2796 = vperm.xlu1 %5185, %v6690_v7  }
 0xa40   : > { %2804 = vperm.xlu0 %5187, %v6657_v10  }
 0xa47   : > { %2808 = vperm.xlu1 %5185, %v6704_v38   ;;  %5188 = vset.pattern.permute.xlu2 %v9186_v29 }
 0xa48   : > { %5189 = vset.pattern.permute.xlu0 %v9186_v29 }
 0xa4f   : > { %5190 = vset.pattern.permute.xlu1 %v9186_v29 }
 0xa70   : > { %v6863_v17 = vpop.permute.xlu2 %2741 }
 0xa81   : > { %v6865_v34 = vpop.permute.xlu2 %2747 }
 0xa88   : > { %v6869_v21 = vpop.permute.xlu1 %2739 }
 0xa89   : > { %v6867_v55 = vpop.permute.xlu2 %2753  ;;  %v6873_v1 = vpop.permute.xlu0 %2743 }
 0xa91   : > { %v6871_v50 = vpop.permute.xlu2 %2759 }
 0xa99   : > { %v2801_v14 = vpop.permute.xlu2 %2800  ;;  %v6875_v63 = vpop.permute.xlu1 %2745 }
 0xa9a   : > { %v6877_v31 = vpop.permute.xlu0 %2749  ;;  %v2814_v39 = vmul.f32 %v2801_v14, %v5575_v56  ;;  %v2815_v19 = vmul.f32 %v2801_v14, %v5567_v49  ;;  %v2816_v28 = vmul.f32 0.0, %v2801_v14  ;;  %v2591_v14 = vsel %vm738_vm2, %v6782_v25, %v6776_v59 }
 0xa9c   : > { %2841 = vrot.lane.b32.xlu0 %v2814_v39, %s5314_s21 }
 0xaa1   : > { %v6881_v40 = vpop.permute.xlu1 %2751 }
 0xaa2   : > { %v6883_v4 = vpop.permute.xlu0 %2755 }
 0xaa9   : > { %v6885_v12 = vpop.permute.xlu1 %2757 }
 0xaaa   : > { %v6887_v46 = vpop.permute.xlu0 %2761 }
 0xab1   : > { %v2797_v57 = vpop.permute.xlu1 %2796 }
 0xab2   : > { %v2805_v29 = vpop.permute.xlu0 %2804  ;;  %v2811_v35 = vmul.f32 %v2797_v57, %v5604_v33  ;;  %v2812_v9 = vmul.f32 %v2797_v57, %v9177_v41  ;;  %v2813_v51 = vmul.f32 0.0, %v2797_v57 }
 0xab3   : > { %v2817_v54 = vmul.f32 %v2805_v29, %v5601_v18  ;;  %v2818_v15 = vmul.f32 %v2805_v29, %v5592_v6 }
 0xab4   : > { %2837 = vrot.lane.b32.xlu1 %v2812_v9, %s5314_s21  ;;  %2835 = vrot.lane.b32.xlu2 %v2811_v35, %s5314_s21  ;;  %v9187_v35 = vld [vmem:[#allocation35_spill] sm:$0xff] }
 0xab5   : > { %2847 = vrot.lane.b32.xlu0 %v2817_v54, %s5314_s21  ;;  %v9188_v9 = vperm.slane %v9187_v35, 0  ;;  %v2819_v54 = vmul.f32 0.0, %v2805_v29  ;;  %v2515_v29 = vmul.f32 0.0, %v6751_v26 }
 0xab9   : > { %v2809_v39 = vpop.permute.xlu1 %2808 }
 0xaba   : > { %v2820_v13 = vmul.f32 %v2809_v39, %v5623_v48  ;;  %v2821_v57 = vmul.f32 %v2809_v39, %v5611_v30 }
 0xabc   : > { %2843 = vrot.lane.b32.xlu1 %v2815_v19, %s5314_s21  ;;  %2839 = vrot.lane.b32.xlu2 %v2813_v51, %s5314_s21  ;;  %v2822_v19 = vmul.f32 0.0, %v2809_v39  ;;  %v9189_v51 = vperm.slane %v9187_v35, 1 }
 0xabd   : > { %2853 = vrot.lane.b32.xlu0 %v2820_v13, %s5314_s21 }
 0xac4   : > { %2849 = vrot.lane.b32.xlu1 %v2818_v15, %s5314_s21  ;;  %2845 = vrot.lane.b32.xlu2 %v2816_v28, %s5314_s21 }
 0xac5   : > { %2891 = vrot.lane.b32.xlu0 %v9188_v9, %s5303_s27 }
 0xacc   : > { %2851 = vrot.lane.b32.xlu2 %v2819_v54, %s5314_s21  ;;  %2855 = vrot.lane.b32.xlu1 %v2821_v57, %s5314_s21  ;;  %v2611_v54 = vadd.f32 %v2591_v14, %v2515_v29 }
 0xace   : > { %v2687_v57 = vadd.f32 %v6820_v23, %v2611_v54 }
 0xad4   : > { %2893 = vrot.lane.b32.xlu1 %v9189_v51, %s5303_s27  ;;  %2857 = vrot.lane.b32.xlu2 %v2822_v19, %s5314_s21  ;;  %v2783_v19 = vadd.f32 %v6869_v21, %v2687_v57  ;;  %v2593_v51 = vsel %vm738_vm2, %v6788_v61, %v6778_v24  ;;  %v2517_v61 = vmul.f32 %v6751_v26, %v9177_v41 }
 0xad5   : > { %v2614_v11 = vadd.f32 %v2593_v51, %v2518_v44  ;;  %v2592_v57 = vsel %vm738_vm2, %v6776_v59, %v6786_v37  ;;  %v2595_v44 = vsel %vm738_vm2, %v6794_v47, %v6780_v32  ;;  %v2764_v47 = vsel %vm1843_vm4, %v6863_v17, %v6873_v1 }
 0xad6   : > { %v2613_v51 = vadd.f32 %v6786_v37, %v2517_v61  ;;  %v2520_v1 = vmul.f32 %v6753_v27, %v5567_v49 }
 0xad7   : > { %v2690_v14 = vadd.f32 %v6822_v36, %v2614_v11  ;;  %v2521_v11 = vmul.f32 0.0, %v6728_v5 }
 0xad9   : > { %v2786_v54 = vadd.f32 %v6875_v63, %v2690_v14  ;;  %v2671_v14 = vsel %vm835_vm1, %v6820_v23, %v6826_v3  ;;  %v2617_v41 = vadd.f32 %v2595_v44, %v2521_v11 }
 0xadb   : > { %v2693_v37 = vadd.f32 %v6835_v45, %v2617_v41  ;;  %v2519_v41 = vmul.f32 %v6753_v27, %v5575_v56  ;;  %v2672_v27 = vsel %vm835_vm1, %v6822_v36, %v6828_v22  ;;  %v2765_v36 = vsel %vm1843_vm4, %v6875_v63, %v6865_v34 }
 0xadc   : > { %v2523_v63 = vmul.f32 %v6728_v5, %v5592_v6 }
 0xb0e   : > { %v6913_v13 = vpop.permute.xlu0 %2841  ;;  %v2836_v35 = vpop.permute.xlu2 %2835 }
 0xb0f   : > { %v2879_v8 = vadd.f32 %v2836_v35, %v2783_v19 }
 0xb16   : > { %v2840_v29 = vpop.permute.xlu2 %2839 }
 0xb26   : > { %v2838_v28 = vpop.permute.xlu1 %2837 }
 0xb27   : > { %v6915_v15 = vpop.permute.xlu0 %2847  ;;  %v2860_v61 = vsel %vm1940_vm5, %v2838_v28, %v2840_v29 }
 0xb2e   : > { %v6921_v9 = vpop.permute.xlu1 %2843 }
 0xb2f   : > { %v6923_v39 = vpop.permute.xlu0 %2853 }
 0xb36   : > { %v6931_v25 = vpop.permute.xlu1 %2849 }
 0xb37   : > { %v6933_v20 = vpop.permute.xlu0 %2891 }
 0xb38   : > { %v2899_v2 = vmul.f32 %v6933_v20, %v2879_v8  ;;  %v2516_v8 = vmul.f32 %v6751_v26, %v5604_v33  ;;  %v2689_v33 = vadd.f32 %v6826_v3, %v2613_v51  ;;  %v2594_v3 = vsel %vm738_vm2, %v6778_v24, %v6790_v62 }
 0xb39   : > { %v2766_v51 = vsel %vm1843_vm4, %v6865_v34, %v6877_v31 }
 0xb3a   : > { %2923 = vrot.lane.b32.xlu2 %v2899_v2, %s5309_s22  ;;  %v2882_v2 = vadd.f32 %v6913_v13, %v2786_v54  ;;  %v2612_v59 = vadd.f32 %v2592_v57, %v2516_v8  ;;  %v2763_v54 = vsel %vm1843_vm4, %v6869_v21, %v6863_v17  ;;  %v2785_v23 = vadd.f32 %v2764_v47, %v2689_v33  ;;  %v2846_v33 = vpop.permute.xlu2 %2845 }
 0xb3b   : > { %v2859_v57 = vsel %vm1940_vm5, %v2836_v35, %v2838_v28  ;;  %v2789_v17 = vadd.f32 %v6881_v40, %v2693_v37  ;;  %v2597_v21 = vsel %vm738_vm2, %v6798_v43, %v6784_v52  ;;  %v2616_v28 = vadd.f32 %v6790_v62, %v2520_v1 }
 0xb3c   : > { %v2902_v26 = vmul.f32 %v6933_v20, %v2882_v2  ;;  %v2688_v10 = vadd.f32 %v2671_v14, %v2612_v59  ;;  %v2881_v29 = vadd.f32 %v2860_v61, %v2785_v23  ;;  %v2524_v35 = vmul.f32 0.0, %v6755_v58 }
 0xb3d   : > { %v2885_v8 = vadd.f32 %v6915_v15, %v2789_v17  ;;  %v2692_v47 = vadd.f32 %v6828_v22, %v2616_v28  ;;  %v2862_v37 = vsel %vm1940_vm5, %v6921_v9, %v2846_v33  ;;  %v2861_v22 = vsel %vm1940_vm5, %v6913_v13, %v6921_v9 }
 0xb3e   : > { %v6951_v19 = vpop.permute.xlu1 %2855  ;;  %v2784_v44 = vadd.f32 %v2763_v54, %v2688_v10  ;;  %v2615_v10 = vadd.f32 %v2594_v3, %v2519_v41  ;;  %v2620_v62 = vadd.f32 %v2597_v21, %v2524_v35  ;;  %v2596_v23 = vsel %vm738_vm2, %v6780_v32, %v6796_v42 }
 0xb3f   : > { %v2905_v14 = vmul.f32 %v6933_v20, %v2885_v8  ;;  %v2788_v31 = vadd.f32 %v2766_v51, %v2692_v47  ;;  %v2522_v1 = vmul.f32 %v6728_v5, %v5601_v18  ;;  %v2619_v17 = vadd.f32 %v6796_v42, %v2523_v63 }
 0xb40   : > { %v2880_v11 = vadd.f32 %v2859_v57, %v2784_v44  ;;  %v2696_v54 = vadd.f32 %v6837_v16, %v2620_v62  ;;  %v2673_v13 = vsel %vm835_vm1, %v6835_v45, %v6824_v53  ;;  %v2768_v32 = vsel %vm1843_vm4, %v6867_v55, %v6883_v4 }
 0xb41   : > { %v2884_v57 = vadd.f32 %v2862_v37, %v2788_v31  ;;  %v2618_v21 = vadd.f32 %v2596_v23, %v2522_v1  ;;  %v2767_v42 = vsel %vm1843_vm4, %v6881_v40, %v6867_v55  ;;  %v2526_v35 = vmul.f32 %v6755_v58, %v5611_v30 }
 0xb42   : > { %2929 = vrot.lane.b32.xlu2 %v2902_v26, %s5309_s22  ;;  %v2691_v26 = vadd.f32 %v2672_v27, %v2615_v10  ;;  %v2792_v34 = vadd.f32 %v6885_v12, %v2696_v54  ;;  %v2852_v9 = vpop.permute.xlu2 %2851  ;;  %v2598_v55 = vsel %vm738_vm2, %v6784_v52, %v6800_v0  ;;  %v2525_v8 = vmul.f32 %v6755_v58, %v5623_v48  ;;  %v9192_v54 = vld [vmem:[#allocation117_spill] sm:$0xff] }
 0xb43   : > { %v2694_v45 = vadd.f32 %v2673_v13, %v2618_v21  ;;  %v2864_v28 = vsel %vm1940_vm5, %v6931_v25, %v2852_v9  ;;  %v2622_v10 = vadd.f32 %v6800_v0, %v2526_v35  ;;  %v2674_v27 = vsel %vm835_vm1, %v6837_v16, %v6839_v60 }
 0xb44   : > { %v2787_v61 = vadd.f32 %v2765_v36, %v2691_v26  ;;  %v2888_v3 = vadd.f32 %v6923_v39, %v2792_v34  ;;  %v2769_v58 = vsel %vm1843_vm4, %v6885_v12, %v6871_v50  ;;  %v9190_v36 = vld [vmem:[#allocation119_spill] sm:$0xff]  ;;  %v9191_v26 = vmov 8  }
 0xb45   : > { %v2698_v62 = vadd.f32 %v6839_v60, %v2622_v10  ;;  %v2865_v60 = vsel %vm1940_vm5, %v6923_v39, %v6951_v19  ;;  %v5323_v13 = vmov 13  }
 0xb46   : > { %v6983_v24 = vpop.permute.xlu1 %2893  ;;  %v2883_v44 = vadd.f32 %v2861_v22, %v2787_v61  ;;  %v2908_v33 = vmul.f32 %v6933_v20, %v2888_v3 }
 0xb47   : > { %v2901_v2 = vmul.f32 %v6983_v24, %v2881_v29  ;;  %v6992_v43 = vsel %vm835_vm1, %v6933_v20, %v6983_v24  ;;  %v2904_v41 = vmul.f32 %v6983_v24, %v2884_v57  ;;  %v2695_v29 = vadd.f32 %v6824_v53, %v2619_v17 }
 0xb48   : > { %v2900_v59 = vmul.f32 %v6992_v43, %v2880_v11  ;;  %v2903_v5 = vmul.f32 %v6992_v43, %v2883_v44  ;;  %v2863_v20 = vsel %vm1940_vm5, %v6915_v15, %v6931_v25  ;;  %v2790_v53 = vadd.f32 %v2767_v42, %v2694_v45 }
 0xb49   : > { %2927 = vrot.lane.b32.xlu1 %v2901_v2, %s5309_s22  ;;  %v2791_v4 = vadd.f32 %v2768_v32, %v2695_v29  ;;  %v2621_v25 = vadd.f32 %v2598_v55, %v2525_v8  ;;  %v2770_v2 = vsel %vm1843_vm4, %v6871_v50, %v6887_v46 }
 0xb4a   : > { %2935 = vrot.lane.b32.xlu2 %v2905_v14, %s5309_s22  ;;  %2925 = vrot.lane.b32.xlu0 %v2900_v59, %s5309_s22  ;;  %v2886_v11 = vadd.f32 %v2863_v20, %v2790_v53  ;;  %v2858_v0 = vpop.permute.xlu2 %2857  ;;  %v2794_v46 = vadd.f32 %v2770_v2, %v2698_v62 }
 0xb4b   : > { %v2887_v40 = vadd.f32 %v2864_v28, %v2791_v4  ;;  %v2697_v51 = vadd.f32 %v2674_v27, %v2621_v25  ;;  %v2866_v16 = vsel %vm1940_vm5, %v6951_v19, %v2858_v0  ;;  %v9207_v4 = vld [vmem:[#allocation6_spill] sm:$0xff]  ;;  %v5324_v0 = vmov 9  }
 0xb4c   : > { %v2906_v52 = vmul.f32 %v6992_v43, %v2886_v11  ;;  %v2890_v59 = vadd.f32 %v2866_v16, %v2794_v46 }
 0xb4d   : > { %v2907_v15 = vmul.f32 %v6983_v24, %v2887_v40  ;;  %v2793_v14 = vadd.f32 %v2769_v58, %v2697_v51  ;;  %v5325_v51 = vmov 18  }
 0xb4e   : > { %v2910_v50 = vmul.f32 %v6983_v24, %v2890_v59 }
 0xb4f   : > { %v2889_v47 = vadd.f32 %v2865_v60, %v2793_v14 }
 0xb51   : > { %2933 = vrot.lane.b32.xlu1 %v2904_v41, %s5309_s22  ;;  %v2909_v12 = vmul.f32 %v6992_v43, %v2889_v47 }
 0xb52   : > { %2941 = vrot.lane.b32.xlu2 %v2908_v33, %s5309_s22  ;;  %2931 = vrot.lane.b32.xlu0 %v2903_v5, %s5309_s22  ;;  %v9206_v33 = vld [vmem:[#allocation8_spill] sm:$0xff] }
 0xb59   : > { %2939 = vrot.lane.b32.xlu1 %v2907_v15, %s5309_s22 }
 0xb5a   : > { %2980 = vperm.xlu2 %5188, %v6690_v7   ;;  %2937 = vrot.lane.b32.xlu0 %v2906_v52, %s5309_s22 }
 0xb61   : > { %2945 = vrot.lane.b32.xlu1 %v2910_v50, %s5309_s22 }
 0xb62   : > { %2992 = vperm.xlu2 %5188, %v6704_v38   ;;  %2943 = vrot.lane.b32.xlu0 %v2909_v12, %s5309_s22 }
 0xb69   : > { %2988 = vperm.xlu1 %5190, %v9190_v36  }
 0xb6a   : > { %5192 = vset.pattern.permute.xlu2 %v9191_v26  ;;  %2984 = vperm.xlu0 %5189, %v9192_v54  }
 0xb6b   : > { %3012 = vperm.xlu2 %5192, %v9192_v54  }
 0xb71   : > { %5191 = vset.pattern.permute.xlu1 %v9191_v26 }
 0xb72   : > { %3008 = vperm.xlu1 %5191, %v6690_v7   ;;  %5193 = vset.pattern.permute.xlu0 %v9191_v26 }
 0xb73   : > { %3016 = vperm.xlu0 %5193, %v9190_v36   ;;  %5196 = vset.pattern.permute.xlu2 %v5323_v13 }
 0xb7a   : > { %3020 = vperm.xlu1 %5191, %v6704_v38  }
 0xb7b   : > { %5194 = vset.pattern.permute.xlu0 %v5323_v13 }
 0xb82   : > { %5195 = vset.pattern.permute.xlu1 %v5323_v13 }
 0xb94   : > { %v7085_v39 = vpop.permute.xlu2 %2923 }
 0xb95   : > { %9193 = vst [vmem:[#allocation35_spill] sm:$0xff] %v7085_v39 }
 0xb9c   : > { %v7087_v19 = vpop.permute.xlu2 %2929 }
 0xb9d   : > { %9194 = vst [vmem:[#allocation119_spill] sm:$0xff] %v7087_v19 }
 0xba4   : > { %v7089_v24 = vpop.permute.xlu2 %2935 }
 0xba5   : > { %9195 = vst [vmem:[#allocation117_spill] sm:$0xff] %v7089_v24 }
 0xbac   : > { %v7091_v43 = vpop.permute.xlu2 %2941 }
 0xbad   : > { %9196 = vst [vmem:[#allocation131_spill] sm:$0xff] %v7091_v43 }
 0xbb4   : > { %v7093_v37 = vpop.permute.xlu2 %2980 }
 0xbb5   : > { %9197 = vst [vmem:[#allocation132_spill] sm:$0xff] %v7093_v37 }
 0xbbb   : > { %v7095_v31 = vpop.permute.xlu1 %2927 }
 0xbbc   : > { %9198 = vst [vmem:[#allocation133_spill] sm:$0xff] %v7095_v31  ;;  %v7097_v22 = vpop.permute.xlu2 %2992  ;;  %v7099_v61 = vpop.permute.xlu0 %2925 }
 0xbbd   : > { %9199 = vst [vmem:[#allocation134_spill] sm:$0xff] %v7099_v61 }
 0xbc3   : > { %v7101_v34 = vpop.permute.xlu1 %2933 }
 0xbc4   : > { %9200 = vst [vmem:[#allocation135_spill] sm:$0xff] %v7101_v34  ;;  %v7103_v63 = vpop.permute.xlu0 %2931 }
 0xbc5   : > { %9201 = vst [vmem:[#allocation136_spill] sm:$0xff] %v7103_v63  ;;  %v3013_v23 = vpop.permute.xlu2 %3012  ;;  %v9219_v63 = vld [vmem:[#allocation48_spill] sm:$0xff] }
 0xbc6   : > { %v3026_v57 = vmul.f32 0.0, %v3013_v23  ;;  %v3027_v28 = vmul.f32 %v3013_v23, %v5575_v56  ;;  %v3028_v35 = vmul.f32 %v3013_v23, %v5567_v49 }
 0xbc8   : > { %3053 = vrot.lane.b32.xlu0 %v3026_v57, %s5302_s26 }
 0xbcb   : > { %v7106_v1 = vpop.permute.xlu1 %2939 }
 0xbcc   : > { %9202 = vst [vmem:[#allocation137_spill] sm:$0xff] %v7106_v1  ;;  %v7108_v3 = vpop.permute.xlu0 %2937  ;;  %v9220_v1 = vperm.slane %v9219_v63, 0 }
 0xbcd   : > { %9203 = vst [vmem:[#allocation138_spill] sm:$0xff] %v7108_v3 }
 0xbd3   : > { %v7110_v44 = vpop.permute.xlu1 %2945 }
 0xbd4   : > { %9204 = vst [vmem:[#allocation139_spill] sm:$0xff] %v7110_v44  ;;  %v7112_v17 = vpop.permute.xlu0 %2943 }
 0xbd5   : > { %9205 = vst [vmem:[#allocation140_spill] sm:$0xff] %v7112_v17 }
 0xbdb   : > { %v7114_v9 = vpop.permute.xlu1 %2988 }
 0xbdc   : > { %v7116_v41 = vpop.permute.xlu0 %2984 }
 0xbe4   : > { %v3009_v21 = vpop.permute.xlu1 %3008 }
 0xbe5   : > { %v3023_v32 = vmul.f32 0.0, %v3009_v21  ;;  %v3024_v5 = vmul.f32 %v3009_v21, %v9206_v33  ;;  %v3017_v29 = vpop.permute.xlu0 %3016  ;;  %v3025_v20 = vmul.f32 %v3009_v21, %v9207_v4 }
 0xbe6   : > { %v3029_v42 = vmul.f32 0.0, %v3017_v29  ;;  %v3030_v55 = vmul.f32 %v3017_v29, %v5601_v18  ;;  %v3031_v40 = vmul.f32 %v3017_v29, %v5592_v6  ;;  %v5326_v29 = vmov 14  }
 0xbe7   : > { %3049 = vrot.lane.b32.xlu1 %v3024_v5, %s5302_s26  ;;  %3047 = vrot.lane.b32.xlu2 %v3023_v32, %s5302_s26 }
 0xbe8   : > { %3059 = vrot.lane.b32.xlu0 %v3029_v42, %s5302_s26  ;;  %v5327_v42 = vmov 23  }
 0xbec   : > { %v3021_v45 = vpop.permute.xlu1 %3020 }
 0xbed   : > { %v3032_v53 = vmul.f32 0.0, %v3021_v45  ;;  %v3033_v8 = vmul.f32 %v3021_v45, %v5623_v48  ;;  %v3034_v11 = vmul.f32 %v3021_v45, %v5611_v30  ;;  %v5328_v45 = vmov 19  }
 0xbef   : > { %3055 = vrot.lane.b32.xlu1 %v3027_v28, %s5302_s26  ;;  %3051 = vrot.lane.b32.xlu2 %v3025_v20, %s5302_s26 }
 0xbf0   : > { %3065 = vrot.lane.b32.xlu0 %v3032_v53, %s5302_s26  ;;  %v5329_v53 = vmov 24  }
 0xbf7   : > { %3057 = vrot.lane.b32.xlu2 %v3028_v35, %s5302_s26  ;;  %3061 = vrot.lane.b32.xlu1 %v3030_v55, %s5302_s26  ;;  %v9213_v35 = vmov 4  }
 0xbf8   : > { %3104 = vperm.xlu0 %5194, %v6690_v7  }
 0xbff   : > { %3063 = vrot.lane.b32.xlu2 %v3031_v40, %s5302_s26  ;;  %3067 = vrot.lane.b32.xlu1 %v3033_v8, %s5302_s26 }
 0xc00   : > { %5199 = vset.pattern.permute.xlu0 %v5324_v0 }
 0xc07   : > { %3069 = vrot.lane.b32.xlu2 %v3034_v11, %s5302_s26  ;;  %3108 = vperm.xlu1 %5195, %v9192_v54  }
 0xc0f   : > { %3112 = vperm.xlu2 %5196, %v9190_v36   ;;  %3116 = vperm.xlu1 %5195, %v6704_v38  }
 0xc17   : > { %5197 = vset.pattern.permute.xlu1 %v5324_v0  ;;  %5198 = vset.pattern.permute.xlu2 %v5325_v51 }
 0xc3a   : > { %v7143_v27 = vpop.permute.xlu0 %3053 }
 0xc3b   : > { %9209 = vst [vmem:[#allocation141_spill] sm:$0xff] %v7143_v27 }
 0xc41   : > { %v7141_v10 = vpop.permute.xlu2 %3047 }
 0xc42   : > { %9208 = vst [vmem:[#allocation8_spill] sm:$0xff] %v7141_v10 }
 0xc49   : > { %v7145_v15 = vpop.permute.xlu2 %3051 }
 0xc4a   : > { %9210 = vst [vmem:[#allocation142_spill] sm:$0xff] %v7145_v15 }
 0xc51   : > { %v7151_v52 = vpop.permute.xlu2 %3057 }
 0xc59   : > { %v7147_v25 = vpop.permute.xlu1 %3049  ;;  %v7159_v60 = vpop.permute.xlu2 %3063 }
 0xc5a   : > { %9211 = vst [vmem:[#allocation143_spill] sm:$0xff] %v7147_v25  ;;  %v7149_v2 = vpop.permute.xlu0 %3059 }
 0xc61   : > { %v7153_v62 = vpop.permute.xlu1 %3055  ;;  %v7168_v12 = vpop.permute.xlu2 %3069 }
 0xc62   : > { %9212 = vst [vmem:[#allocation144_spill] sm:$0xff] %v7153_v62  ;;  %v7155_v58 = vpop.permute.xlu0 %3065  ;;  %v3004_v62 = vmul.f32 0.0, %v7097_v22 }
 0xc69   : > { %v7157_v16 = vpop.permute.xlu1 %3061  ;;  %v7175_v21 = vpop.permute.xlu2 %3112 }
 0xc6a   : > { %v3105_v46 = vpop.permute.xlu0 %3104  ;;  %v3125_v32 = vmul.f32 %v7175_v21, %v5601_v18  ;;  %v3126_v5 = vmul.f32 %v7175_v21, %v5592_v6 }
 0xc6b   : > { %v3119_v14 = vmul.f32 %v3105_v46, %v9206_v33  ;;  %v3120_v59 = vmul.f32 %v3105_v46, %v9207_v4  ;;  %v3121_v47 = vmul.f32 0.0, %v3105_v46 }
 0xc6d   : > { %3145 = vrot.lane.b32.xlu0 %v3120_v59, %s5303_s27  ;;  %3143 = vrot.lane.b32.xlu2 %v3119_v14, %s5303_s27 }
 0xc6e   : > { %3147 = vrot.lane.b32.xlu1 %v3121_v47, %s5303_s27 }
 0xc71   : > { %v7166_v50 = vpop.permute.xlu1 %3067 }
 0xc79   : > { %v3109_v26 = vpop.permute.xlu1 %3108 }
 0xc7a   : > { %v3122_v23 = vmul.f32 %v3109_v26, %v5575_v56  ;;  %v3123_v57 = vmul.f32 %v3109_v26, %v5567_v49  ;;  %v3124_v13 = vmul.f32 0.0, %v3109_v26 }
 0xc7c   : > { %3151 = vrot.lane.b32.xlu0 %v3123_v57, %s5303_s27  ;;  %3149 = vrot.lane.b32.xlu2 %v3122_v23, %s5303_s27 }
 0xc7d   : > { %3153 = vrot.lane.b32.xlu1 %v3124_v13, %s5303_s27 }
 0xc81   : > { %v3117_v28 = vpop.permute.xlu1 %3116 }
 0xc82   : > { %v3128_v20 = vmul.f32 %v3117_v28, %v5623_v48  ;;  %v3129_v8 = vmul.f32 %v3117_v28, %v5611_v30  ;;  %v3130_v11 = vmul.f32 0.0, %v3117_v28 }
 0xc84   : > { %3157 = vrot.lane.b32.xlu0 %v3126_v5, %s5303_s27  ;;  %3155 = vrot.lane.b32.xlu2 %v3125_v32, %s5303_s27  ;;  %v3127_v32 = vmul.f32 0.0, %v7175_v21 }
 0xc85   : > { %3522 = vperm.xlu1 %5197, %v6704_v38  }
 0xc8c   : > { %3518 = vperm.xlu0 %5199, %v9190_v36   ;;  %3212 = vperm.xlu2 %5198, %v6704_v38  }
 0xc8d   : > { %5200 = vset.pattern.permute.xlu1 %v5326_v29 }
 0xc8e   : > { %3618 = vperm.xlu1 %5200, %v6704_v38  }
 0xc94   : > { %5203 = vset.pattern.permute.xlu0 %v5326_v29  ;;  %3208 = vperm.xlu2 %5198, %v9190_v36  }
 0xc95   : > { %3614 = vperm.xlu0 %5203, %v9190_v36  }
 0xc96   : > { %5201 = vset.pattern.permute.xlu1 %v5327_v42 }
 0xc97   : > { %3308 = vperm.xlu1 %5201, %v6704_v38  }
 0xc9c   : > { %5202 = vset.pattern.permute.xlu2 %v5324_v0 }
 0xc9d   : > { %3610 = vperm.xlu0 %5203, %v9192_v54   ;;  %3514 = vperm.xlu2 %5202, %v9192_v54  }
 0xc9f   : > { %5204 = vset.pattern.permute.xlu1 %v5328_v45 }
 0xca0   : > { %3714 = vperm.xlu1 %5204, %v6704_v38  }
 0xca5   : > { %5210 = vset.pattern.permute.xlu0 %v5325_v51  ;;  %5205 = vset.pattern.permute.xlu2 %v5325_v51 }
 0xca6   : > { %3200 = vperm.xlu0 %5210, %v6690_v7   ;;  %3204 = vperm.xlu2 %5205, %v9192_v54  }
 0xca8   : > { %5206 = vset.pattern.permute.xlu1 %v5327_v42 }
 0xca9   : > { %3304 = vperm.xlu1 %5206, %v9190_v36  }
 0xcae   : > { %5215 = vset.pattern.permute.xlu0 %v5327_v42  ;;  %5207 = vset.pattern.permute.xlu2 %v5324_v0 }
 0xcaf   : > { %3296 = vperm.xlu0 %5215, %v6690_v7   ;;  %3510 = vperm.xlu2 %5207, %v6690_v7  }
 0xcb1   : > { %5208 = vset.pattern.permute.xlu1 %v5328_v45 }
 0xcb2   : > { %3710 = vperm.xlu1 %5208, %v9190_v36  }
 0xcb7   : > { %3161 = vrot.lane.b32.xlu0 %v3128_v20, %s5303_s27  ;;  %5209 = vset.pattern.permute.xlu2 %v5329_v53 }
 0xcb8   : > { %3810 = vperm.xlu2 %5209, %v6704_v38   ;;  %5218 = vset.pattern.permute.xlu0 %v9213_v35 }
 0xcba   : > { %5211 = vset.pattern.permute.xlu1 %v5327_v42 }
 0xcbb   : > { %3300 = vperm.xlu1 %5211, %v9192_v54  }
 0xcc0   : > { %5212 = vset.pattern.permute.xlu2 %v5326_v29  ;;  %v5281_v29 = vld [vmem:[%s8864_s5 + $0x10] sm:$0xff] }
 0xcc1   : > { %3606 = vperm.xlu2 %5212, %v6690_v7  }
 0xcc3   : > { %5213 = vset.pattern.permute.xlu1 %v5328_v45 }
 0xcc4   : > { %3706 = vperm.xlu1 %5213, %v9192_v54  }
 0xcc7   : > { %v7208_v55 = vpop.permute.xlu2 %3143 }
 0xcc8   : > { %9214 = vst [vmem:[#allocation145_spill] sm:$0xff] %v7208_v55 }
 0xcc9   : > { %5214 = vset.pattern.permute.xlu2 %v5329_v53 }
 0xcca   : > { %3806 = vperm.xlu2 %5214, %v9190_v36  }
 0xccc   : > { %3702 = vperm.xlu1 %5213, %v6690_v7  }
 0xcd2   : > { %3802 = vperm.xlu2 %5214, %v9192_v54   ;;  %v9216_v54 = vmov 0  }
 0xcd4   : > { %5216 = vset.pattern.permute.xlu1 %v5329_v53 }
 0xcd5   : > { %3798 = vperm.xlu1 %5216, %v6690_v7  }
 0xcd6   : > { %v7212_v40 = vpop.permute.xlu2 %3149 }
 0xcd7   : > { %9215 = vst [vmem:[#allocation146_spill] sm:$0xff] %v7212_v40 }
 0xcda   : > { %5217 = vset.pattern.permute.xlu2 %v9213_v35 }
 0xcdb   : > { %3494 = vperm.xlu2 %5217, %v6704_v38  }
 0xcdd   : > { %3163 = vrot.lane.b32.xlu1 %v3129_v8, %s5303_s27 }
 0xcde   : > { %v7218_v36 = vpop.permute.xlu2 %3155  ;;  %5220 = vset.pattern.permute.xlu1 %v9213_v35 }
 0xcdf   : > { %v7225_v51 = vpop.permute.xlu0 %3145 }
 0xce0   : > { %v7223_v7 = vpop.permute.xlu1 %3147  ;;  %9218 = vst [vmem:[#allocation148_spill] sm:$0xff] %v7225_v51 }
 0xce1   : > { %9217 = vst [vmem:[#allocation147_spill] sm:$0xff] %v7223_v7 }
 0xce3   : > { %3165 = vrot.lane.b32.xlu2 %v3130_v11, %s5303_s27 }
 0xce4   : > { %5221 = vset.pattern.permute.xlu2 %v9216_v54 }
 0xce6   : > { %v3213_v0 = vpop.permute.xlu2 %3212 }
 0xce7   : > { %v3224_v5 = vmul.f32 %v3213_v0, %v5623_v48  ;;  %v3226_v42 = vmul.f32 0.0, %v3213_v0  ;;  %v3225_v53 = vmul.f32 %v3213_v0, %v5611_v30 }
 0xcee   : > { %v7229_v14 = vpop.permute.xlu0 %3151  ;;  %v7231_v38 = vpop.permute.xlu2 %3208 }
 0xcef   : > { %v7227_v46 = vpop.permute.xlu1 %3153 }
 0xcf6   : > { %v7238_v57 = vpop.permute.xlu0 %3157 }
 0xcf7   : > { %v3523_v59 = vpop.permute.xlu1 %3522  ;;  %v7240_v13 = vpop.permute.xlu2 %3514 }
 0xcf8   : > { %v3534_v47 = vmul.f32 0.0, %v3523_v59  ;;  %v3535_v26 = vmul.f32 %v3523_v59, %v5623_v48  ;;  %v3536_v23 = vmul.f32 %v3523_v59, %v5611_v30 }
 0xcfa   : > { %3571 = vrot.lane.b32.xlu2 %v3536_v23, %s5302_s26  ;;  %3569 = vrot.lane.b32.xlu1 %v3535_v26, %s5302_s26 }
 0xcfb   : > { %3567 = vrot.lane.b32.xlu0 %v3534_v47, %s5302_s26 }
 0xcfe   : > { %v3519_v45 = vpop.permute.xlu0 %3518 }
 0xcff   : > { %v3531_v20 = vmul.f32 0.0, %v3519_v45  ;;  %v3532_v21 = vmul.f32 %v3519_v45, %v5601_v18  ;;  %v3533_v8 = vmul.f32 %v3519_v45, %v5592_v6  ;;  %v3222_v45 = vmul.f32 %v7231_v38, %v5592_v6 }
 0xd00   : > { %v7249_v28 = vpop.permute.xlu2 %3204  ;;  %v3619_v35 = vpop.permute.xlu1 %3618 }
 0xd01   : > { %v3630_v59 = vmul.f32 %v3619_v35, %v5623_v48  ;;  %v3631_v47 = vmul.f32 %v3619_v35, %v5611_v30  ;;  %v3632_v26 = vmul.f32 0.0, %v3619_v35 }
 0xd02   : > { %3257 = vrot.lane.b32.xlu2 %v3224_v5, %s5312_s20  ;;  %3159 = vrot.lane.b32.xlu1 %v3127_v32, %s5303_s27  ;;  %v5282_v32 = vld [vmem:[%s8864_s5 + $0x8] sm:$0xff] }
 0xd03   : > { %3490 = vperm.xlu0 %5218, %v5281_v29  }
 0xd09   : > { %v7257_v11 = vpop.permute.xlu2 %3510  ;;  %v3309_v0 = vpop.permute.xlu1 %3308 }
 0xd0a   : > { %3261 = vrot.lane.b32.xlu2 %v3226_v42, %s5312_s20  ;;  %3259 = vrot.lane.b32.xlu1 %v3225_v53, %s5312_s20  ;;  %v3221_v42 = vmul.f32 %v7231_v38, %v5601_v18  ;;  %v5283_v53 = vld [vmem:[%s8862_s3 + $0x10] sm:$0xff]  ;;  %v3320_v35 = vmul.f32 %v3309_v0, %v5623_v48 }
 0xd0b   : > { %3561 = vrot.lane.b32.xlu0 %v3531_v20, %s5302_s26 }
 0xd12   : > { %3565 = vrot.lane.b32.xlu2 %v3533_v8, %s5302_s26  ;;  %3563 = vrot.lane.b32.xlu1 %v3532_v21, %s5302_s26  ;;  %v7264_v23 = vpop.permute.xlu2 %3810  ;;  %v3715_v5 = vpop.permute.xlu1 %3714  ;;  %v3321_v21 = vmul.f32 %v3309_v0, %v5611_v30 }
 0xd13   : > { %3663 = vrot.lane.b32.xlu0 %v3630_v59, %s5303_s27  ;;  %v1504_v59 = vld [vmem:[%s8863_s4 + $0x8] sm:$0xff]  ;;  %v3822_v43 = vmul.f32 %v7264_v23, %v5623_v48  ;;  %v3823_v17 = vmul.f32 %v7264_v23, %v5611_v30 }
 0xd1a   : > { %3665 = vrot.lane.b32.xlu1 %v3631_v47, %s5303_s27  ;;  %3667 = vrot.lane.b32.xlu2 %v3632_v26, %s5303_s27  ;;  %v3528_v26 = vmul.f32 0.0, %v7240_v13 }
 0xd1b   : > { %3486 = vperm.xlu0 %5218, %v5282_v32   ;;  %v7278_v20 = vpop.permute.xlu2 %3606  ;;  %v7285_v8 = vpop.permute.xlu1 %3304  ;;  %v3529_v32 = vmul.f32 %v7240_v13, %v5575_v56 }
 0xd1c   : > { %v3621_v37 = vmul.f32 %v7278_v20, %v9206_v33  ;;  %v3622_v10 = vmul.f32 %v7278_v20, %v9207_v4 }
 0xd22   : > { %3251 = vrot.lane.b32.xlu1 %v3221_v42, %s5312_s20  ;;  %3253 = vrot.lane.b32.xlu2 %v3222_v45, %s5312_s20  ;;  %v3615_v45 = vpop.permute.xlu0 %3614 }
 0xd23   : > { %5219 = vset.pattern.permute.xlu0 %v9216_v54 }
 0xd24   : > { %654 = vperm.xlu0 %5219, %v5283_v53   ;;  %v7292_v47 = vpop.permute.xlu2 %3806  ;;  %v7297_v42 = vpop.permute.xlu1 %3710  ;;  %v3627_v53 = vmul.f32 %v3615_v45, %v5601_v18 }
 0xd25   : > { %v3723_v3 = vmul.f32 %v7297_v42, %v5601_v18  ;;  %v3724_v44 = vmul.f32 %v7297_v42, %v5592_v6 }
 0xd2a   : > { %3355 = vrot.lane.b32.xlu2 %v3321_v21, %s5314_s21  ;;  %3353 = vrot.lane.b32.xlu1 %v3320_v35, %s5314_s21  ;;  %v3628_v35 = vmul.f32 %v3615_v45, %v5592_v6 }
 0xd2c   : > { %1514 = vperm.xlu0 %5219, %v1504_v59   ;;  %v7303_v21 = vpop.permute.xlu2 %3802  ;;  %v3223_v59 = vmul.f32 0.0, %v7231_v38 }
 0xd2d   : > { %v7308_v31 = vpop.permute.xlu1 %3300 }
 0xd2e   : > { %v3314_v51 = vmul.f32 %v7308_v31, %v5575_v56  ;;  %v3315_v15 = vmul.f32 %v7308_v31, %v5567_v49 }
 0xd32   : > { %3557 = vrot.lane.b32.xlu2 %v3529_v32, %s5302_s26  ;;  %3555 = vrot.lane.b32.xlu1 %v3528_v26, %s5302_s26  ;;  %v3726_v26 = vmul.f32 %v3715_v5, %v5623_v48  ;;  %v3322_v32 = vmul.f32 0.0, %v3309_v0  ;;  %v5284_v0 = vld [vmem:[%s8864_s5] sm:$0xff] }
 0xd34   : > { %1567 = vperm.xlu0 %5219, %v5281_v29   ;;  %v3727_v29 = vmul.f32 %v3715_v5, %v5611_v30 }
 0xd35   : > { %v7313_v39 = vpop.permute.xlu2 %3494 }
 0xd36   : > { %v7318_v38 = vpop.permute.xlu1 %3706 }
 0xd37   : > { %v3720_v25 = vmul.f32 %v7318_v38, %v5575_v56 }
 0xd3a   : > { %3659 = vrot.lane.b32.xlu2 %v3628_v35, %s5303_s27  ;;  %3657 = vrot.lane.b32.xlu1 %v3627_v53, %s5303_s27  ;;  %v7320_v53 = vpop.permute.xlu0 %3610  ;;  %v3218_v35 = vmul.f32 %v7249_v28, %v5575_v56 }
 0xd3b   : > { %v3625_v24 = vmul.f32 %v7320_v53, %v5567_v49 }
 0xd3c   : > { %3255 = vrot.lane.b32.xlu0 %v3223_v59, %s5312_s20  ;;  %v3530_v59 = vmul.f32 %v7240_v13, %v5567_v49  ;;  %v3629_v13 = vmul.f32 0.0, %v3615_v45 }
 0xd3e   : > { %v7336_v61 = vpop.permute.xlu1 %3702 }
 0xd42   : > { %3761 = vrot.lane.b32.xlu2 %v3727_v29, %s5312_s20  ;;  %3759 = vrot.lane.b32.xlu1 %v3726_v26, %s5312_s20  ;;  %v7330_v26 = vpop.permute.xlu2 %3165  ;;  %v3220_v29 = vmul.f32 0.0, %v7249_v28  ;;  %v7338_v34 = vpop.permute.xlu0 %3200 }
 0xd43   : > { %v3215_v7 = vmul.f32 %v7338_v34, %v9206_v33  ;;  %v3216_v55 = vmul.f32 %v7338_v34, %v9207_v4 }
 0xd44   : > { %3357 = vrot.lane.b32.xlu0 %v3322_v32, %s5314_s21  ;;  %v3317_v32 = vmul.f32 %v7285_v8, %v5601_v18 }
 0xd47   : > { %v7347_v19 = vpop.permute.xlu1 %3798 }
 0xd48   : > { %v3814_v40 = vmul.f32 %v7347_v19, %v9207_v4  ;;  %v3815_v27 = vmul.f32 0.0, %v7347_v19 }
 0xd4a   : > { %3245 = vrot.lane.b32.xlu2 %v3218_v35, %s5312_s20  ;;  %3482 = vperm.xlu1 %5220, %v5284_v0   ;;  %v3728_v0 = vmul.f32 0.0, %v3715_v5  ;;  %v7352_v45 = vpop.permute.xlu0 %3296  ;;  %v3219_v5 = vmul.f32 %v7249_v28, %v5567_v49  ;;  %v3318_v28 = vmul.f32 %v7285_v8, %v5592_v6 }
 0xd4c   : > { %3559 = vrot.lane.b32.xlu0 %v3530_v59, %s5302_s26  ;;  %v3319_v59 = vmul.f32 0.0, %v7285_v8 }
 0xd52   : > { %3249 = vrot.lane.b32.xlu1 %v3220_v29, %s5312_s20  ;;  %3347 = vrot.lane.b32.xlu2 %v3317_v32, %s5314_s21  ;;  %v3525_v29 = vmul.f32 0.0, %v7257_v11  ;;  %v3526_v32 = vmul.f32 %v7257_v11, %v9206_v33 }
 0xd53   : > { %5222 = vset.pattern.permute.xlu1 %v9216_v54 }
 0xd54   : > { %3661 = vrot.lane.b32.xlu0 %v3629_v13, %s5303_s27  ;;  %v7344_v35 = vpop.permute.xlu2 %3571 }
 0xd5a   : > { %3391 = vrot.lane.b32.xlu2 %v9220_v1, %s5330_s23  ;;  %3351 = vrot.lane.b32.xlu1 %v3319_v59, %s5314_s21  ;;  %v7364_v1 = vpop.permute.xlu1 %3163  ;;  %v7369_v59 = vpop.permute.xlu0 %3161 }
 0xd5c   : > { %3763 = vrot.lane.b32.xlu0 %v3728_v0, %s5312_s20  ;;  %v7355_v54 = vpop.permute.xlu2 %3257  ;;  %v3624_v0 = vmul.f32 %v7320_v53, %v5575_v56 }
 0xd62   : > { %3551 = vrot.lane.b32.xlu2 %v3526_v32, %s5302_s26  ;;  %3549 = vrot.lane.b32.xlu1 %v3525_v29, %s5302_s26 }
 0xd64   : > { %3247 = vrot.lane.b32.xlu0 %v3219_v5, %s5312_s20  ;;  %v7367_v13 = vpop.permute.xlu2 %3261 }
 0xd6a   : > { %3653 = vrot.lane.b32.xlu2 %v3625_v24, %s5303_s27  ;;  %3651 = vrot.lane.b32.xlu1 %v3624_v0, %s5303_s27  ;;  %v9224_v24 = vperm.slane %v9219_v63, 1 }
 0xd6c   : > { %3349 = vrot.lane.b32.xlu0 %v3318_v28, %s5314_s21  ;;  %v7380_v29 = vpop.permute.xlu2 %3565  ;;  %v7382_v32 = vpop.permute.xlu1 %3569 }
 0xd6d   : > { %9221 = vst [vmem:[#allocation48_spill] sm:$0xff] %v7380_v29  ;;  %v7384_v5 = vpop.permute.xlu0 %3567  ;;  %v3721_v29 = vmul.f32 %v7318_v38, %v5567_v49 }
 0xd6e   : > { %9222 = vst [vmem:[#allocation149_spill] sm:$0xff] %v7382_v32 }
 0xd6f   : > { %9223 = vst [vmem:[#allocation150_spill] sm:$0xff] %v7384_v5  ;;  %v3001_v5 = vmul.f32 0.0, %v7114_v9 }
 0xd72   : > { %3755 = vrot.lane.b32.xlu2 %v3724_v44, %s5312_s20  ;;  %3753 = vrot.lane.b32.xlu1 %v3723_v3, %s5312_s20  ;;  %v3527_v44 = vmul.f32 %v7257_v11, %v9207_v4  ;;  %v3626_v11 = vmul.f32 0.0, %v7320_v53  ;;  %v3725_v53 = vmul.f32 0.0, %v7297_v42  ;;  %v3824_v42 = vmul.f32 0.0, %v7264_v23 }
 0xd73   : > { %v3217_v23 = vmul.f32 0.0, %v7338_v34  ;;  %v3316_v34 = vmul.f32 0.0, %v7308_v31  ;;  %v3623_v31 = vmul.f32 0.0, %v7278_v20 }
 0xd74   : > { %3393 = vrot.lane.b32.xlu0 %v9224_v24, %s5330_s23  ;;  %v7394_v8 = vpop.permute.xlu2 %3667  ;;  %v7396_v0 = vpop.permute.xlu1 %3159 }
 0xd75   : > { %v7398_v28 = vpop.permute.xlu0 %3490 }
 0xd76   : > { %9225 = vst [vmem:[#allocation151_spill] sm:$0xff] %v7398_v28 }
 0xd7a   : > { %3857 = vrot.lane.b32.xlu2 %v3823_v17, %s5314_s21  ;;  %3855 = vrot.lane.b32.xlu1 %v3822_v43, %s5314_s21 }
 0xd7c   : > { %3553 = vrot.lane.b32.xlu0 %v3527_v44, %s5302_s26  ;;  %v7409_v63 = vpop.permute.xlu2 %3253  ;;  %v7411_v3 = vpop.permute.xlu1 %3259 }
 0xd7d   : > { %v7413_v24 = vpop.permute.xlu0 %3561 }
 0xd7e   : > { %9226 = vst [vmem:[#allocation152_spill] sm:$0xff] %v7413_v24 }
 0xd82   : > { %3241 = vrot.lane.b32.xlu2 %v3216_v55, %s5312_s20  ;;  %3239 = vrot.lane.b32.xlu1 %v3215_v7, %s5312_s20 }
 0xd84   : > { %3655 = vrot.lane.b32.xlu0 %v3626_v11, %s5303_s27  ;;  %v7423_v43 = vpop.permute.xlu2 %3355  ;;  %v7425_v17 = vpop.permute.xlu1 %3563 }
 0xd85   : > { %9227 = vst [vmem:[#allocation153_spill] sm:$0xff] %v7425_v17  ;;  %v7427_v44 = vpop.permute.xlu0 %3663  ;;  %v3821_v17 = vmul.f32 0.0, %v7292_v47 }
 0xd86   : > { %9228 = vst [vmem:[#allocation154_spill] sm:$0xff] %v7427_v44 }
 0xd8a   : > { %3343 = vrot.lane.b32.xlu2 %v3315_v15, %s5314_s21  ;;  %3341 = vrot.lane.b32.xlu1 %v3314_v51, %s5314_s21 }
 0xd8c   : > { %3757 = vrot.lane.b32.xlu0 %v3725_v53, %s5312_s20  ;;  %v7437_v55 = vpop.permute.xlu2 %3557  ;;  %v7439_v7 = vpop.permute.xlu1 %3665 }
 0xd8d   : > { %v7441_v11 = vpop.permute.xlu0 %3486 }
 0xd92   : > { %3647 = vrot.lane.b32.xlu2 %v3622_v10, %s5303_s27  ;;  %3645 = vrot.lane.b32.xlu1 %v3621_v37, %s5303_s27 }
 0xd94   : > { %3859 = vrot.lane.b32.xlu0 %v3824_v42, %s5314_s21  ;;  %v7451_v15 = vpop.permute.xlu2 %3659  ;;  %v7453_v51 = vpop.permute.xlu1 %3251 }
 0xd95   : > { %9229 = vst [vmem:[#allocation155_spill] sm:$0xff] %v7451_v15  ;;  %v3820_v15 = vmul.f32 %v7292_v47, %v5592_v6 }
 0xd96   : > { %v7455_v53 = vpop.permute.xlu0 %654 }
 0xd97   : > { %9230 = vst [vmem:[#allocation156_spill] sm:$0xff] %v7455_v53  ;;  %v3819_v53 = vmul.f32 %v7292_v47, %v5601_v18  ;;  %v3311_v47 = vmul.f32 %v7352_v45, %v9206_v33 }
 0xd9a   : > { %3749 = vrot.lane.b32.xlu2 %v3721_v29, %s5312_s20  ;;  %3747 = vrot.lane.b32.xlu1 %v3720_v25, %s5312_s20  ;;  %v5022_v25 = vld [vmem:[%s8873_s14 + $0x4] ss:$8 sm:$0x3] }
 0xd9b   : > { %v3897_v28 = vperm.slane %v5022_v25, 1  ;;  %v3896_v24 = vperm.slane %v5022_v25, 0  ;;  %v3722_v25 = vmul.f32 0.0, %v7318_v38 }
 0xd9c   : > { %3243 = vrot.lane.b32.xlu0 %v3217_v23, %s5312_s20  ;;  %v7465_v37 = vpop.permute.xlu2 %3761  ;;  %v7467_v10 = vpop.permute.xlu1 %3353 }
 0xd9e   : > { %v7469_v42 = vpop.permute.xlu0 %1514 }
 0xd9f   : > { %9231 = vst [vmem:[#allocation157_spill] sm:$0xff] %v7469_v42 }
 0xda2   : > { %3851 = vrot.lane.b32.xlu2 %v3820_v15, %s5314_s21  ;;  %3849 = vrot.lane.b32.xlu1 %v3819_v53, %s5314_s21 }
 0xda4   : > { %3345 = vrot.lane.b32.xlu0 %v3316_v34, %s5314_s21  ;;  %v7482_v29 = vpop.permute.xlu2 %3245  ;;  %v7484_v23 = vpop.permute.xlu1 %3555 }
 0xda5   : > { %9232 = vst [vmem:[#allocation158_spill] sm:$0xff] %v7482_v29  ;;  %v3818_v29 = vmul.f32 0.0, %v7303_v21 }
 0xda6   : > { %9233 = vst [vmem:[#allocation159_spill] sm:$0xff] %v7484_v23  ;;  %v7486_v42 = vpop.permute.xlu0 %1567  ;;  %v3312_v23 = vmul.f32 %v7352_v45, %v9207_v4 }
 0xda7   : > { %9234 = vst [vmem:[#allocation160_spill] sm:$0xff] %v7486_v42  ;;  %v3313_v42 = vmul.f32 0.0, %v7352_v45  ;;  %v3717_v45 = vmul.f32 %v7336_v61, %v9206_v33 }
 0xdaa   : > { %3900 = vrot.lane.b32.xlu2 %v3897_v28, %s5331_s25  ;;  %3898 = vrot.lane.b32.xlu1 %v3896_v24, %s5331_s25 }
 0xdac   : > { %3649 = vrot.lane.b32.xlu0 %v3623_v31, %s5303_s27  ;;  %v7490_v15 = vpop.permute.xlu2 %3347  ;;  %v7492_v53 = vpop.permute.xlu1 %3657  ;;  %v3718_v31 = vmul.f32 %v7336_v61, %v9207_v4  ;;  %s5332_s27 = smov 125  }
 0xdad   : > { %9235 = vst [vmem:[#allocation161_spill] sm:$0xff] %v7492_v53  ;;  %v3719_v53 = vmul.f32 0.0, %v7336_v61 }
 0xdae   : > { %v7494_v34 = vpop.permute.xlu0 %3255 }
 0xdb2   : > { %3339 = vrot.lane.b32.xlu2 %v3313_v42, %s5314_s21  ;;  %3337 = vrot.lane.b32.xlu1 %v3312_v23, %s5314_s21 }
 0xdb4   : > { %3751 = vrot.lane.b32.xlu0 %v3722_v25, %s5312_s20  ;;  %v7503_v20 = vpop.permute.xlu2 %3391  ;;  %v7505_v28 = vpop.permute.xlu1 %3759  ;;  %v3817_v25 = vmul.f32 %v7303_v21, %v5567_v49 }
 0xdb5   : > { %9236 = vst [vmem:[#allocation162_spill] sm:$0xff] %v7505_v28 }
 0xdb6   : > { %v3358_v24 = vpop.permute.xlu0 %3357 }
 0xdb7   : > { %v3366_v32 = vsel %vm1940_vm5, %v7423_v43, %v3358_v24  ;;  %v3172_v24 = vsel %vm835_vm1, %v7238_v57, %v7396_v0 }
 0xdba   : > { %3743 = vrot.lane.b32.xlu1 %v3718_v31, %s5312_s20  ;;  %3745 = vrot.lane.b32.xlu2 %v3719_v53, %s5312_s20 }
 0xdbc   : > { %3853 = vrot.lane.b32.xlu0 %v3821_v17, %s5314_s21  ;;  %v7514_v38 = vpop.permute.xlu2 %3551  ;;  %v7516_v42 = vpop.permute.xlu1 %3482 }
 0xdbe   : > { %v7518_v23 = vpop.permute.xlu0 %3559 }
 0xdc2   : > { %3845 = vrot.lane.b32.xlu1 %v3817_v25, %s5314_s21  ;;  %3847 = vrot.lane.b32.xlu2 %v3818_v29, %s5314_s21 }
 0xdc4   : > { %3335 = vrot.lane.b32.xlu0 %v3311_v47, %s5314_s21  ;;  %v7528_v17 = vpop.permute.xlu2 %3653  ;;  %v7530_v53 = vpop.permute.xlu1 %3249 }
 0xdc5   : > { %9237 = vst [vmem:[#allocation163_spill] sm:$0xff] %v7530_v53 }
 0xdc6   : > { %v7532_v31 = vpop.permute.xlu0 %3661 }
 0xdc7   : > { %9238 = vst [vmem:[#allocation164_spill] sm:$0xff] %v7532_v31  ;;  %v3816_v31 = vmul.f32 %v7303_v21, %v5575_v56  ;;  %v3813_v21 = vmul.f32 %v7347_v19, %v9206_v33  ;;  %v3005_v19 = vmul.f32 %v7097_v22, %v5623_v48 }
 0xdca   : > { %3839 = vrot.lane.b32.xlu1 %v3814_v40, %s5314_s21  ;;  %3841 = vrot.lane.b32.xlu2 %v3815_v27, %s5314_s21 }
 0xdcc   : > { %3741 = vrot.lane.b32.xlu0 %v3717_v45, %s5312_s20  ;;  %v7542_v29 = vpop.permute.xlu2 %3755  ;;  %v7544_v25 = vpop.permute.xlu1 %3351  ;;  %v3077_v45 = vsel %vm738_vm2, %v7155_v58, %v7166_v50  ;;  %v3078_v58 = vsel %vm738_vm2, %v7166_v50, %v7168_v12  ;;  %v3075_v50 = vsel %vm738_vm2, %v7149_v2, %v7157_v16  ;;  %s5333_s20 = smov 124  }
 0xdcd   : > { %v3100_v28 = vadd.f32 %v3077_v45, %v3004_v62 }
 0xdce   : > { %v7546_v47 = vpop.permute.xlu0 %3763 }
 0xdd4   : > { %3843 = vrot.lane.b32.xlu0 %v3816_v31, %s5314_s21  ;;  %v7551_v4 = vpop.permute.xlu2 %3857  ;;  %v3550_v61 = vpop.permute.xlu1 %3549  ;;  %v3196_v31 = vadd.f32 %v7369_v59, %v3100_v28  ;;  %v3174_v28 = vsel %vm835_vm1, %v7364_v1, %v7330_v26  ;;  %v3270_v26 = vsel %vm1843_vm4, %v7411_v3, %v7367_v13 }
 0xdd5   : > { %v7555_v40 = vsel %vm738_vm2, %v3550_v61, %v7514_v38 }
 0xdd6   : > { %v7557_v27 = vpop.permute.xlu0 %3247  ;;  %v3292_v45 = vadd.f32 %v7355_v54, %v3196_v31 }
 0xdd7   : > { %9239 = vst [vmem:[#allocation165_spill] sm:$0xff] %v7557_v27  ;;  %v3006_v27 = vmul.f32 %v7097_v22, %v5611_v30  ;;  %v3101_v22 = vadd.f32 %v3078_v58, %v3005_v19  ;;  %v3365_v58 = vsel %vm1940_vm5, %v7467_v10, %v7423_v43 }
 0xdd8   : > { %v3388_v31 = vadd.f32 %v7467_v10, %v3292_v45  ;;  %v3002_v10 = vmul.f32 %v7114_v9, %v5601_v18 }
 0xdd9   : > { %v3102_v53 = vadd.f32 %v7168_v12, %v3006_v27  ;;  %v3269_v12 = vsel %vm1843_vm4, %v7355_v54, %v7411_v3  ;;  %v3097_v27 = vadd.f32 %v3075_v50, %v3001_v5  ;;  %v3003_v5 = vmul.f32 %v7114_v9, %v5592_v6 }
 0xddb   : > { %v3198_v48 = vadd.f32 %v3174_v28, %v3102_v53  ;;  %v3193_v13 = vadd.f32 %v7218_v36, %v3097_v27 }
 0xddc   : > { %3837 = vrot.lane.b32.xlu0 %v3813_v21, %s5314_s21  ;;  %v7567_v44 = vpop.permute.xlu2 %3241  ;;  %v7569_v61 = vpop.permute.xlu1 %3651 }
 0xddd   : > { %9240 = vst [vmem:[#allocation166_spill] sm:$0xff] %v7569_v61  ;;  %v7579_v62 = vsel %vm835_vm1, %v7569_v61, %v7528_v17  ;;  %v3173_v61 = vsel %vm835_vm1, %v7369_v59, %v7364_v1  ;;  %v3409_v1 = vmul.f32 %v7503_v20, %v3388_v31  ;;  %v3294_v59 = vadd.f32 %v3270_v26, %v3198_v48 }
 0xdde   : > { %v3350_v21 = vpop.permute.xlu0 %3349  ;;  %v3197_v2 = vadd.f32 %v3173_v61, %v3101_v22  ;;  %v3076_v48 = vsel %vm738_vm2, %v7157_v16, %v7159_v60  ;;  %v3289_v61 = vadd.f32 %v7453_v51, %v3193_v13  ;;  %v3099_v16 = vadd.f32 %v7159_v60, %v3003_v5 }
 0xddf   : > { %v3390_v3 = vadd.f32 %v3366_v32, %v3294_v59  ;;  %v3171_v32 = vsel %vm835_vm1, %v7218_v36, %v7238_v57  ;;  %v3098_v22 = vadd.f32 %v3076_v48, %v3002_v10  ;;  %v3268_v26 = vsel %vm1843_vm4, %v7409_v63, %v7494_v34 }
 0xde0   : > { %v3293_v19 = vadd.f32 %v3269_v12, %v3197_v2  ;;  %v3385_v0 = vadd.f32 %v7490_v15, %v3289_v61  ;;  %v3195_v60 = vadd.f32 %v3172_v24, %v3099_v16  ;;  %v3267_v36 = vsel %vm1843_vm4, %v7453_v51, %v7409_v63 }
 0xde1   : > { %v3194_v57 = vadd.f32 %v3171_v32, %v3098_v22  ;;  %v3364_v12 = vsel %vm1940_vm5, %v3350_v21, %v7544_v25  ;;  %v3363_v34 = vsel %vm1940_vm5, %v7490_v15, %v3350_v21  ;;  %v3676_v16 = vsel %vm835_vm1, %v7439_v7, %v7394_v8 }
 0xde2   : > { %v3389_v28 = vadd.f32 %v3365_v58, %v3293_v19  ;;  %v3406_v27 = vmul.f32 %v7503_v20, %v3385_v0  ;;  %v3291_v2 = vadd.f32 %v3268_v26, %v3195_v60  ;;  %v3497_v32 = vmul.f32 0.0, %v7516_v42 }
 0xde3   : > { %v3772_v22 = vsel %vm1843_vm4, %v7465_v37, %v7546_v47 }
 0xde4   : > { %3442 = vrot.lane.b32.xlu0 %v3409_v1, %s5332_s27  ;;  %v7610_v53 = vpop.permute.xlu2 %3343  ;;  %v7612_v54 = vpop.permute.xlu1 %3753  ;;  %v3290_v1 = vadd.f32 %v3267_v36, %v3194_v57  ;;  %v3387_v51 = vadd.f32 %v3364_v12, %v3291_v2  ;;  %v3593_v0 = vadd.f32 %v7555_v40, %v3497_v32  ;;  %v3576_v2 = vsel %vm738_vm2, %v7437_v55, %v7518_v23 }
 0xde5   : > { %v7622_v43 = vsel %vm1843_vm4, %v7612_v54, %v7542_v29  ;;  %v3501_v40 = vmul.f32 %v7441_v11, %v5575_v56 }
 0xde6   : > { %v7630_v45 = vpop.permute.xlu0 %3393  ;;  %v3386_v58 = vadd.f32 %v3363_v34, %v3290_v1 }
 0xde7   : > { %v7638_v50 = vsel %vm3395_vm7, %v7503_v20, %v7630_v45  ;;  %v3411_v9 = vmul.f32 %v7630_v45, %v3390_v3  ;;  %v3408_v19 = vmul.f32 %v7630_v45, %v3387_v51  ;;  %v3597_v51 = vadd.f32 %v3576_v2, %v3501_v40  ;;  %v9246_v40 = vld [vmem:[#allocation154_spill] sm:$0xff] }
 0xde8   : > { %v3410_v31 = vmul.f32 %v7638_v50, %v3389_v28  ;;  %v3407_v5 = vmul.f32 %v7638_v50, %v3386_v58  ;;  %v3508_v28 = vmul.f32 %v7313_v39, %v5611_v30 }
 0xde9   : > { %3446 = vrot.lane.b32.xlu2 %v3411_v9, %s5332_s27 }
 0xdea   : > { %3444 = vrot.lane.b32.xlu1 %v3410_v31, %s5332_s27  ;;  %v3604_v9 = vadd.f32 %v7344_v35, %v3508_v28 }
 0xdec   : > { %3436 = vrot.lane.b32.xlu0 %v3406_v27, %s5332_s27  ;;  %v7657_v59 = vpop.permute.xlu2 %3647  ;;  %v7659_v63 = vpop.permute.xlu1 %3855  ;;  %v3700_v26 = vadd.f32 %v3676_v16, %v3604_v9  ;;  %v3000_v16 = vmul.f32 %v7116_v41, %v5567_v49  ;;  %v9241_v9 = vld [vmem:[#allocation149_spill] sm:$0xff] }
 0xdee   : > { %v7661_v13 = vpop.permute.xlu0 %3553  ;;  %v3796_v57 = vadd.f32 %v3772_v22, %v3700_v26  ;;  %v3096_v32 = vadd.f32 %v7151_v52, %v3000_v16  ;;  %v3580_v26 = vsel %vm738_vm2, %v9241_v9, %v7344_v35 }
 0xdef   : > { %v3574_v25 = vsel %vm738_vm2, %v7514_v38, %v7661_v13 }
 0xdf1   : > { %3440 = vrot.lane.b32.xlu2 %v3408_v19, %s5332_s27 }
 0xdf2   : > { %3438 = vrot.lane.b32.xlu1 %v3407_v5, %s5332_s27 }
 0xdf4   : > { %v7670_v15 = vpop.permute.xlu1 %3239  ;;  %v7672_v21 = vpop.permute.xlu2 %3749 }
 0xdf5   : > { %v7677_v48 = vsel %vm1843_vm4, %v7670_v15, %v7567_v44 }
 0xdf6   : > { %v3656_v3 = vpop.permute.xlu0 %3655 }
 0xdf7   : > { %v7681_v38 = vsel %vm835_vm1, %v7528_v17, %v3656_v3  ;;  %v3498_v17 = vmul.f32 %v7516_v42, %v9206_v33 }
 0xdf9   : > { %v3594_v31 = vadd.f32 %v3574_v25, %v3498_v17  ;;  %v3693_v25 = vadd.f32 %v7579_v62, %v3597_v51  ;;  %v3170_v62 = vsel %vm835_vm1, %v7229_v14, %v7227_v46  ;;  %v9242_v17 = vld [vmem:[#allocation150_spill] sm:$0xff] }
 0xdfa   : > { %v3579_v22 = vsel %vm738_vm2, %v9242_v17, %v9241_v9 }
 0xdfc   : > { %v7683_v10 = vpop.permute.xlu1 %3341  ;;  %v7687_v61 = vpop.permute.xlu2 %3851 }
 0xdfe   : > { %v7685_v24 = vpop.permute.xlu0 %3757 }
 0xe04   : > { %v3646_v60 = vpop.permute.xlu1 %3645  ;;  %v7715_v1 = vpop.permute.xlu2 %3900 }
 0xe05   : > { %v3669_v36 = vsel %vm835_vm1, %v3646_v60, %v7657_v59  ;;  %v7704_v8 = vadd.f32 %v3646_v60, %v3593_v0  ;;  %v3506_v0 = vmul.f32 0.0, %v7313_v39  ;;  %v9244_v60 = vld [vmem:[#allocation165_spill] sm:$0xff] }
 0xe06   : > { %v7706_v12 = vadd.f32 %v3669_v36, %v3594_v31  ;;  %v3860_v27 = vpop.permute.xlu0 %3859  ;;  %v9243_v31 = vld [vmem:[#allocation163_spill] sm:$0xff] }
 0xe07   : > { %v3868_v47 = vsel %vm1940_vm5, %v7551_v4, %v3860_v27  ;;  %v3266_v36 = vsel %vm1843_vm4, %v9244_v60, %v9243_v31  ;;  %v9245_v27 = vld [vmem:[#allocation10_spill] sm:$0xff]  ;;  %v2999_v31 = vmul.f32 %v7116_v41, %v5575_v56 }
 0xe08   : > { %v3892_v34 = vadd.f32 %v3868_v47, %v3796_v57  ;;  %v3192_v57 = vadd.f32 %v3170_v62, %v3096_v32  ;;  %v3507_v46 = vmul.f32 %v7313_v39, %v9245_v27  ;;  %v3602_v47 = vadd.f32 %v3579_v22, %v3506_v0  ;;  %v9248_v39 = vld [vmem:[#allocation144_spill] sm:$0xff]  ;;  %v9249_v32 = vld [vmem:[#allocation141_spill] sm:$0xff] }
 0xe09   : > { %v3073_v9 = vsel %vm738_vm2, %v9249_v32, %v9248_v39  ;;  %v3074_v0 = vsel %vm738_vm2, %v9248_v39, %v7151_v52 }
 0xe0a   : > { %v3918_v58 = vmul.f32 %v7715_v1, %v3892_v34  ;;  %v3675_v34 = vsel %vm835_vm1, %v9246_v40, %v7439_v7  ;;  %v3603_v51 = vadd.f32 %v3580_v26, %v3507_v46  ;;  %v3698_v35 = vadd.f32 %v9246_v40, %v3602_v47  ;;  %v9250_v47 = vld [vmem:[#allocation146_spill] sm:$0xff] }
 0xe0b   : > { %v2998_v7 = vmul.f32 0.0, %v7116_v41  ;;  %v3169_v40 = vsel %vm835_vm1, %v9250_v47, %v7229_v14 }
 0xe0c   : > { %3953 = vrot.lane.b32.xlu2 %v3918_v58, %s5333_s20  ;;  %v7720_v19 = vpop.permute.xlu1 %3747  ;;  %v3288_v58 = vadd.f32 %v3266_v36, %v3192_v57  ;;  %v3699_v17 = vadd.f32 %v3675_v34, %v3603_v51  ;;  %v3095_v34 = vadd.f32 %v3074_v0, %v2999_v31  ;;  %v9253_v0 = vld [vmem:[#allocation153_spill] sm:$0xff]  ;;  %v3502_v31 = vmul.f32 %v7441_v11, %v5567_v49 }
 0xe0d   : > { %v3767_v5 = vsel %vm1843_vm4, %v7720_v19, %v7672_v21  ;;  %v3094_v46 = vadd.f32 %v3073_v9, %v2998_v7 }
 0xe0e   : > { %v7725_v3 = vadd.f32 %v3767_v5, %v3693_v25  ;;  %v7727_v28 = vpop.permute.xlu0 %3243  ;;  %v9247_v5 = vld [vmem:[#allocation162_spill] sm:$0xff] }
 0xe0f   : > { %v3771_v16 = vsel %vm1843_vm4, %v9247_v5, %v7465_v37  ;;  %v3794_v26 = vadd.f32 %v9247_v5, %v3698_v35  ;;  %v3867_v37 = vsel %vm1940_vm5, %v7659_v63, %v7551_v4  ;;  %v3190_v41 = vadd.f32 %v9250_v47, %v3094_v46  ;;  %v9252_v35 = vld [vmem:[#allocation158_spill] sm:$0xff] }
 0xe10   : > { %v3795_v36 = vadd.f32 %v3771_v16, %v3699_v17  ;;  %v3265_v5 = vsel %vm1843_vm4, %v9252_v35, %v9244_v60  ;;  %v3191_v16 = vadd.f32 %v3169_v40, %v3095_v34  ;;  %v3361_v60 = vsel %vm1940_vm5, %v7683_v10, %v7610_v53  ;;  %v9257_v34 = vld [vmem:[#allocation155_spill] sm:$0xff] }
 0xe11   : > { %v3890_v52 = vadd.f32 %v7659_v63, %v3794_v26  ;;  %v3286_v9 = vadd.f32 %v9252_v35, %v3190_v41  ;;  %v9254_v26 = vld [vmem:[#allocation152_spill] sm:$0xff]  ;;  %v3598_v40 = vadd.f32 %v7518_v23, %v3502_v31 }
 0xe12   : > { %v3891_v51 = vadd.f32 %v3867_v37, %v3795_v36  ;;  %v3577_v37 = vsel %vm738_vm2, %v9254_v26, %v9253_v0  ;;  %v9255_v36 = vld [vmem:[#allocation151_spill] sm:$0xff]  ;;  %v3770_v26 = vsel %vm1843_vm4, %v7542_v29, %v7685_v24 }
 0xe13   : > { %v3504_v47 = vmul.f32 %v9255_v36, %v5601_v18  ;;  %v3505_v35 = vmul.f32 %v9255_v36, %v5592_v6 }
 0xe14   : > { %v7747_v2 = vpop.permute.xlu1 %3849 }
 0xe16   : > { %v3346_v25 = vpop.permute.xlu0 %3345 }
 0xe17   : > { %v3362_v62 = vsel %vm1940_vm5, %v7610_v53, %v3346_v25 }
 0xe18   : > { %v3384_v22 = vadd.f32 %v3362_v62, %v3288_v58  ;;  %v9251_v58 = vld [vmem:[#allocation6_spill] sm:$0xff] }
 0xe19   : > { %v3499_v25 = vmul.f32 %v7516_v42, %v9251_v58  ;;  %v7791_v42 = vpop.permute.xlu2 %3339 }
 0xe1a   : > { %v3405_v57 = vmul.f32 %v7630_v45, %v3384_v22  ;;  %v3287_v22 = vadd.f32 %v3265_v5, %v3191_v16 }
 0xe1b   : > { %v3595_v62 = vadd.f32 %v7661_v13, %v3499_v25  ;;  %v3382_v13 = vadd.f32 %v7683_v10, %v3286_v9 }
 0xe1c   : > { %3434 = vrot.lane.b32.xlu2 %v3405_v57, %s5332_s27  ;;  %v7779_v4 = vpop.permute.xlu1 %3898  ;;  %v3383_v53 = vadd.f32 %v3361_v60, %v3287_v22  ;;  %v3503_v57 = vmul.f32 0.0, %v9255_v36 }
 0xe1d   : > { %v7787_v14 = vsel %vm3902_vm8, %v7779_v4, %v7715_v1  ;;  %v3916_v63 = vmul.f32 %v7779_v4, %v3890_v52  ;;  %v3403_v41 = vmul.f32 %v7503_v20, %v3382_v13  ;;  %v3865_v13 = vsel %vm1940_vm5, %v7747_v2, %v7687_v61 }
 0xe1e   : > { %v3650_v39 = vpop.permute.xlu0 %3649  ;;  %v3917_v32 = vmul.f32 %v7787_v14, %v3891_v51  ;;  %v3599_v52 = vadd.f32 %v3577_v37, %v3503_v57  ;;  %v9258_v51 = vld [vmem:[#allocation161_spill] sm:$0xff]  ;;  %v3404_v16 = vmul.f32 %v7638_v50, %v3383_v53  ;;  %v9260_v57 = vld [vmem:[#allocation143_spill] sm:$0xff] }
 0xe1f   : > { %v3670_v17 = vsel %vm835_vm1, %v7657_v59, %v3650_v39  ;;  %3949 = vrot.lane.b32.xlu0 %v3916_v63, %s5333_s20  ;;  %v9256_v59 = vld [vmem:[#allocation48_spill] sm:$0xff]  ;;  %v3673_v25 = vsel %vm835_vm1, %v9258_v51, %v9257_v34  ;;  %v3694_v63 = vadd.f32 %v7681_v38, %v3598_v40 }
 0xe20   : > { %v7801_v7 = vadd.f32 %v3670_v17, %v3595_v62  ;;  %3951 = vrot.lane.b32.xlu1 %v3917_v32, %s5333_s20  ;;  %v3578_v46 = vsel %vm738_vm2, %v9253_v0, %v9256_v59  ;;  %v3695_v23 = vadd.f32 %v9258_v51, %v3599_v52  ;;  %v9259_v17 = vld [vmem:[#allocation164_spill] sm:$0xff]  ;;  %v9263_v51 = vld [vmem:[#allocation142_spill] sm:$0xff] }
 0xe21   : > { %v3600_v5 = vadd.f32 %v3578_v46, %v3504_v47  ;;  %v3746_v9 = vpop.permute.xlu2 %3745  ;;  %v3674_v38 = vsel %vm835_vm1, %v9257_v34, %v9259_v17  ;;  %v9261_v46 = vld [vmem:[#allocation8_spill] sm:$0xff]  ;;  %v3072_v29 = vsel %vm738_vm2, %v9260_v57, %v9263_v51  ;;  %v3991_v17 = vld [vmem:[%s8865_s6 + $0x18] sm:$0xff] }
 0xe22   : > { %v3791_v22 = vadd.f32 %v7612_v54, %v3695_v23  ;;  %v3071_v47 = vsel %vm738_vm2, %v9261_v46, %v9260_v57  ;;  %v9262_v52 = vld [vmem:[#allocation132_spill] sm:$0xff] }
 0xe23   : > { %v3696_v32 = vadd.f32 %v3673_v25, %v3600_v5  ;;  %v2995_v34 = vmul.f32 0.0, %v9262_v52  ;;  %v9265_v5 = vld [vmem:[#allocation145_spill] sm:$0xff] }
 0xe24   : > { %v7817_v10 = vpop.permute.xlu1 %3337  ;;  %v3887_v37 = vadd.f32 %v7747_v2, %v3791_v22  ;;  %v2996_v2 = vmul.f32 %v9262_v52, %v9206_v33 }
 0xe25   : > { %v3792_v0 = vadd.f32 %v7622_v43, %v3696_v32 }
 0xe26   : > { %v3752_v62 = vpop.permute.xlu0 %3751  ;;  %v3913_v54 = vmul.f32 %v7779_v4, %v3887_v37 }
 0xe27   : > { %v3768_v39 = vsel %vm1843_vm4, %v7672_v21, %v3752_v62  ;;  %3430 = vrot.lane.b32.xlu0 %v3403_v41, %s5332_s27  ;;  %v3601_v21 = vadd.f32 %v9256_v59, %v3505_v35  ;;  %v3888_v53 = vadd.f32 %v3865_v13, %v3792_v0  ;;  %v3091_v41 = vadd.f32 %v3071_v47, %v2995_v34  ;;  %v9264_v35 = vld [vmem:[#allocation148_spill] sm:$0xff]  ;;  %v9266_v13 = vld [vmem:[#allocation147_spill] sm:$0xff] }
 0xe28   : > { %v7831_v60 = vadd.f32 %v3768_v39, %v3694_v63  ;;  %3432 = vrot.lane.b32.xlu1 %v3404_v16, %s5332_s27  ;;  %v3167_v63 = vsel %vm835_vm1, %v9265_v5, %v9264_v35  ;;  %v3092_v16 = vadd.f32 %v3072_v29, %v2996_v2  ;;  %v9268_v2 = vld [vmem:[#allocation166_spill] sm:$0xff] }
 0xe29   : > { %v3697_v31 = vadd.f32 %v3674_v38, %v3601_v21  ;;  %v3914_v43 = vmul.f32 %v7787_v14, %v3888_v53  ;;  %v3848_v62 = vpop.permute.xlu2 %3847  ;;  %v3187_v39 = vadd.f32 %v9265_v5, %v3091_v41  ;;  %v2997_v38 = vmul.f32 %v9262_v52, %v9251_v58 }
 0xe2a   : > { %v3168_v21 = vsel %vm835_vm1, %v9264_v35, %v9266_v13 }
 0xe2b   : > { %v3793_v40 = vadd.f32 %v3770_v26, %v3697_v31  ;;  %v3283_v22 = vadd.f32 %v7670_v15, %v3187_v39  ;;  %v3093_v37 = vadd.f32 %v9263_v51, %v2997_v38 }
 0xe2c   : > { %v7847_v36 = vpop.permute.xlu1 %3743 }
 0xe2d   : > { %v3189_v15 = vadd.f32 %v3168_v21, %v3093_v37  ;;  %v3766_v46 = vsel %vm1843_vm4, %v7847_v36, %v3746_v9  ;;  %v9269_v37 = vld [vmem:[#allocation160_spill] sm:$0xff] }
 0xe2e   : > { %v3854_v59 = vpop.permute.xlu0 %3853  ;;  %v3787_v52 = vadd.f32 %v3766_v46, %v7801_v7 }
 0xe2f   : > { %v3866_v24 = vsel %vm1940_vm5, %v7687_v61, %v3854_v59  ;;  %3943 = vrot.lane.b32.xlu0 %v3913_v54, %s5333_s20  ;;  %v3188_v61 = vadd.f32 %v3167_v63, %v3092_v16  ;;  %v3264_v54 = vsel %vm1843_vm4, %v7567_v44, %v7727_v28 }
 0xe30   : > { %v3889_v25 = vadd.f32 %v3866_v24, %v3793_v40  ;;  %3945 = vrot.lane.b32.xlu1 %v3914_v43, %s5333_s20  ;;  %v3285_v59 = vadd.f32 %v3264_v54, %v3189_v15  ;;  %v1582_v54 = vmul.f32 %v9269_v37, %v5601_v18 }
 0xe31   : > { %v3284_v0 = vadd.f32 %v7677_v48, %v3188_v61  ;;  %v3360_v48 = vsel %vm1940_vm5, %v7817_v10, %v7791_v42  ;;  %v3842_v43 = vpop.permute.xlu2 %3841 }
 0xe32   : > { %v3915_v23 = vmul.f32 %v7715_v1, %v3889_v25  ;;  %v3381_v28 = vadd.f32 %v3360_v48, %v3285_v59 }
 0xe34   : > { %3947 = vrot.lane.b32.xlu2 %v3915_v23, %s5333_s20  ;;  %v3846_v32 = vpop.permute.xlu1 %3845  ;;  %v3402_v24 = vmul.f32 %v7630_v45, %v3381_v28  ;;  %v9274_v28 = vld [vmem:[#allocation71_spill] sm:$0xff] }
 0xe35   : > { %v3864_v7 = vsel %vm1940_vm5, %v3846_v32, %v3848_v62 }
 0xe36   : > { %v3336_v26 = vpop.permute.xlu0 %3335  ;;  %v3886_v35 = vadd.f32 %v3864_v7, %v7831_v60 }
 0xe37   : > { %v3359_v31 = vsel %vm1940_vm5, %v3336_v26, %v7817_v10  ;;  %v3379_v53 = vadd.f32 %v3336_v26, %v3283_v22  ;;  %4009 = vperm.xlu0 %5219, %v3991_v17  }
 0xe38   : > { %v3380_v57 = vadd.f32 %v3359_v31, %v3284_v0  ;;  %v3912_v16 = vmul.f32 %v7715_v1, %v3886_v35  ;;  %v1583_v31 = vmul.f32 %v9269_v37, %v5592_v6  ;;  %v9278_v35 = vld [vmem:[#allocation87_spill] sm:$0xff] }
 0xe39   : > { %v3400_v47 = vmul.f32 %v7503_v20, %v3379_v53  ;;  %v9267_v20 = vld [vmem:[#allocation159_spill] sm:$0xff]  ;;  %v1581_v53 = vmul.f32 0.0, %v9269_v37 }
 0xe3a   : > { %v3401_v40 = vmul.f32 %v7638_v50, %v3380_v57  ;;  %v3575_v34 = vsel %vm738_vm2, %v9267_v20, %v7437_v55  ;;  %v3500_v50 = vmul.f32 0.0, %v7441_v11  ;;  %v9270_v57 = vld [vmem:[#allocation75_spill] sm:$0xff] }
 0xe3b   : > { %3424 = vrot.lane.b32.xlu1 %v3400_v47, %s5332_s27  ;;  %v1679_v15 = vadd.f32 %v9270_v57, %v1583_v31  ;;  %v9271_v47 = vld [vmem:[#allocation69_spill] sm:$0xff]  ;;  %v9287_v37 = vld [vmem:[#allocation95_spill] sm:$0xff] }
 0xe3c   : > { %3426 = vrot.lane.b32.xlu2 %v3401_v40, %s5332_s27  ;;  %v3840_v44 = vpop.permute.xlu1 %3839  ;;  %v3596_v29 = vadd.f32 %v3575_v34, %v3500_v50  ;;  %v1656_v48 = vsel %vm738_vm2, %v9271_v47, %v9270_v57  ;;  %v9272_v40 = vld [vmem:[#allocation76_spill] sm:$0xff] }
 0xe3d   : > { %v3862_v9 = vsel %vm1940_vm5, %v3840_v44, %v3842_v43  ;;  %v1655_v59 = vsel %vm738_vm2, %v9272_v40, %v9271_v47  ;;  %v9290_v40 = vld [vmem:[#allocation93_spill] sm:$0xff] }
 0xe3e   : > { %v3883_v51 = vadd.f32 %v3862_v9, %v3787_v52  ;;  %v3742_v42 = vpop.permute.xlu0 %3741  ;;  %v3692_v25 = vadd.f32 %v9268_v2, %v3596_v29  ;;  %v9273_v52 = vld [vmem:[#allocation66_spill] sm:$0xff]  ;;  %v1677_v34 = vadd.f32 %v1655_v59, %v1581_v53  ;;  %v9276_v29 = vld [vmem:[#allocation77_spill] sm:$0xff]  ;;  %v9277_v2 = vld [vmem:[#allocation88_spill] sm:$0xff] }
 0xe3f   : > { %v3765_v23 = vsel %vm1843_vm4, %v3742_v42, %v7847_v36  ;;  %v9275_v9 = vld [vmem:[#allocation78_spill] sm:$0xff]  ;;  %v1584_v50 = vmul.f32 0.0, %v9273_v52  ;;  %v9288_v53 = vld [vmem:[#allocation115_spill] sm:$0xff] }
 0xe40   : > { %v3909_v10 = vmul.f32 %v7715_v1, %v3883_v51  ;;  %v3788_v41 = vadd.f32 %v7720_v19, %v3692_v25  ;;  %v3785_v19 = vadd.f32 %v3742_v42, %v7704_v8  ;;  %v3786_v60 = vadd.f32 %v3765_v23, %v7706_v12  ;;  %v3989_v8 = vld [vmem:[%s8865_s6 + $0x8] sm:$0xff]  ;;  %v3988_v12 = vld [vmem:[%s8865_s6] sm:$0xff] }
 0xe41   : > { %v1657_v20 = vsel %vm738_vm2, %v9275_v9, %v9274_v28  ;;  %v1678_v51 = vadd.f32 %v1656_v48, %v1582_v54  ;;  %v1775_v25 = vadd.f32 %v9277_v2, %v1679_v15  ;;  %v9289_v54 = vld [vmem:[#allocation107_spill] sm:$0xff] }
 0xe42   : > { %v1948_v57 = vsel %vm1940_vm5, %v9289_v54, %v9288_v53 }
 0xe43   : > { %3428 = vrot.lane.b32.xlu1 %v3402_v24, %s5332_s27  ;;  %v1658_v24 = vsel %vm738_vm2, %v9274_v28, %v9276_v29 }
 0xe46   : > { %v3844_v55 = vpop.permute.xlu0 %3843 }
 0xe47   : > { %v3863_v5 = vsel %vm1940_vm5, %v3844_v55, %v3846_v32  ;;  %v3884_v63 = vadd.f32 %v3844_v55, %v3788_v41  ;;  %v3990_v32 = vld [vmem:[%s8865_s6 + $0x10] sm:$0xff]  ;;  %v1680_v41 = vadd.f32 %v1657_v20, %v1584_v50  ;;  %v9279_v55 = vld [vmem:[#allocation82_spill] sm:$0xff] }
 0xe48   : > { %v3885_v11 = vadd.f32 %v3863_v5, %v7725_v3  ;;  %v1751_v5 = vsel %vm835_vm1, %v9279_v55, %v9278_v35 }
 0xe49   : > { %v3910_v45 = vmul.f32 %v7779_v4, %v3884_v63  ;;  %v1752_v63 = vsel %vm835_vm1, %v9278_v35, %v9277_v2  ;;  %v9294_v2 = vld [vmem:[#allocation110_spill] sm:$0xff] }
 0xe4a   : > { %v3911_v62 = vmul.f32 %v7787_v14, %v3885_v11  ;;  %v9280_v11 = vld [vmem:[#allocation89_spill] sm:$0xff] }
 0xe4b   : > { %3937 = vrot.lane.b32.xlu2 %v3910_v45, %s5333_s20  ;;  %3941 = vrot.lane.b32.xlu1 %v3912_v16, %s5333_s20  ;;  %v9281_v16 = vld [vmem:[#allocation86_spill] sm:$0xff] }
 0xe4c   : > { %3939 = vrot.lane.b32.xlu0 %v3911_v62, %s5333_s20  ;;  %v1753_v45 = vsel %vm835_vm1, %v9281_v16, %v9280_v11  ;;  %v9282_v62 = vld [vmem:[#allocation90_spill] sm:$0xff] }
 0xe4d   : > { %v1754_v23 = vsel %vm835_vm1, %v9280_v11, %v9282_v62 }
 0xe4e   : > { %v3838_v3 = vpop.permute.xlu0 %3837 }
 0xe4f   : > { %v3861_v1 = vsel %vm1940_vm5, %v3838_v3, %v3840_v44  ;;  %v3881_v39 = vadd.f32 %v3838_v3, %v3785_v19  ;;  %v1586_v44 = vmul.f32 %v9273_v52, %v5611_v30  ;;  %v9283_v19 = vld [vmem:[#allocation102_spill] sm:$0xff] }
 0xe50   : > { %v3882_v61 = vadd.f32 %v3861_v1, %v3786_v60  ;;  %v9284_v60 = vld [vmem:[#allocation101_spill] sm:$0xff]  ;;  %v1773_v1 = vadd.f32 %v1751_v5, %v1677_v34  ;;  %v9296_v5 = vld [vmem:[#allocation112_spill] sm:$0xff] }
 0xe51   : > { %v3907_v36 = vmul.f32 %v7779_v4, %v3881_v39  ;;  %v7935_v4 = vpop.permute.xlu2 %3446  ;;  %v1682_v7 = vadd.f32 %v9276_v29, %v1586_v44  ;;  %v1851_v3 = vsel %vm1843_vm4, %v9284_v60, %v9283_v19  ;;  %v1774_v39 = vadd.f32 %v1752_v63, %v1678_v51  ;;  %v9291_v44 = vld [vmem:[#allocation114_spill] sm:$0xff]  ;;  %v9293_v29 = vld [vmem:[#allocation105_spill] sm:$0xff] }
 0xe52   : > { %v3908_v17 = vmul.f32 %v7787_v14, %v3882_v61  ;;  %v1850_v31 = vsel %vm1843_vm4, %v9287_v37, %v9284_v60  ;;  %v1947_v28 = vsel %vm1940_vm5, %v9291_v44, %v9289_v54  ;;  %v1870_v9 = vadd.f32 %v9290_v40, %v1773_v1  ;;  %v9299_v19 = vld [vmem:[#allocation122_spill] sm:$0xff] }
 0xe53   : > { %4004 = vperm.xlu2 %5221, %v3990_v32   ;;  %v1778_v32 = vadd.f32 %v9282_v62, %v1682_v7  ;;  %v1945_v63 = vsel %vm1940_vm5, %v9296_v5, %v9293_v29  ;;  %v9298_v62 = vld [vmem:[#allocation129_spill] sm:$0xff] }
 0xe54   : > { %3931 = vrot.lane.b32.xlu0 %v3907_v36, %s5333_s20  ;;  %3933 = vrot.lane.b32.xlu1 %v3908_v17, %s5333_s20  ;;  %v9285_v36 = vld [vmem:[#allocation100_spill] sm:$0xff]  ;;  %v9286_v17 = vld [vmem:[#allocation99_spill] sm:$0xff] }
 0xe55   : > { %v1848_v59 = vsel %vm1843_vm4, %v9290_v40, %v9286_v17 }
 0xe56   : > { %v7939_v38 = vpop.permute.xlu0 %3442  ;;  %v1871_v20 = vadd.f32 %v1848_v59, %v1774_v39 }
 0xe58   : > { %v1968_v1 = vadd.f32 %v1945_v63, %v1871_v20  ;;  %v9303_v20 = vld [vmem:[#allocation128_spill] sm:$0xff] }
 0xe59   : > { %v7937_v14 = vpop.permute.xlu2 %3440 }
 0xe5b   : > { %3935 = vrot.lane.b32.xlu2 %v3909_v10, %s5333_s20  ;;  %v1585_v10 = vmul.f32 %v9273_v52, %v9245_v27  ;;  %v1875_v52 = vadd.f32 %v1851_v3, %v1778_v32  ;;  %v1967_v3 = vadd.f32 %v9296_v5, %v1870_v9 }
 0xe5c   : > { %3999 = vperm.xlu0 %5219, %v3989_v8   ;;  %3994 = vperm.xlu1 %5222, %v3988_v12   ;;  %v7941_v22 = vpop.permute.xlu1 %3444  ;;  %v1849_v8 = vsel %vm1843_vm4, %v9286_v17, %v9285_v36  ;;  %v1776_v12 = vadd.f32 %v1753_v45, %v1680_v41  ;;  %v9297_v45 = vld [vmem:[#allocation130_spill] sm:$0xff]  ;;  %v9300_v36 = vld [vmem:[#allocation140_spill] sm:$0xff]  ;;  %v9301_v17 = vld [vmem:[#allocation131_spill] sm:$0xff] }
 0xe5d   : > { %v1681_v61 = vadd.f32 %v1658_v24, %v1585_v10  ;;  %v1872_v15 = vadd.f32 %v1849_v8, %v1775_v25  ;;  %v9292_v10 = vld [vmem:[#allocation113_spill] sm:$0xff]  ;;  %v1972_v7 = vadd.f32 %v1948_v57, %v1875_v52  ;;  %v9295_v25 = vld [vmem:[#allocation116_spill] sm:$0xff]  ;;  %v2474_v60 = vsel %vm1155_vm10, %v9297_v45, %v9299_v19 }
 0xe5e   : > { %v7945_v21 = vpop.permute.xlu0 %3436  ;;  %v1873_v51 = vadd.f32 %v9287_v37, %v1776_v12  ;;  %v1946_v24 = vsel %vm1940_vm5, %v9293_v29, %v9292_v10  ;;  %v8024_v41 = vsel %vm1981_vm9, %v9295_v25, %v9294_v2  ;;  %v2953_v8 = vsel %vm1470_vm11, %v9301_v17, %v9300_v36  ;;  %v9302_v12 = vld [vmem:[#allocation139_spill] sm:$0xff]  ;;  %v9305_v10 = vld [vmem:[#allocation121_spill] sm:$0xff] }
 0xe5f   : > { %v1777_v48 = vadd.f32 %v1754_v23, %v1681_v61  ;;  %v1969_v35 = vadd.f32 %v1946_v24, %v1872_v15  ;;  %v2473_v23 = vsel %vm1155_vm10, %v9298_v62, %v9297_v45  ;;  %v1997_v39 = vmul.f32 %v9294_v2, %v1972_v7 }
 0xe60   : > { %v1970_v11 = vadd.f32 %v9291_v44, %v1873_v51  ;;  %v2954_v37 = vsel %vm1470_vm11, %v9300_v36, %v9302_v12  ;;  %v3456_v40 = vsel %vm3448_vm12, %v7941_v22, %v7935_v4  ;;  %v1992_v59 = vmul.f32 %v9295_v25, %v1967_v3  ;;  %v9304_v51 = vld [vmem:[#allocation127_spill] sm:$0xff]  ;;  %v9308_v3 = vld [vmem:[#allocation137_spill] sm:$0xff] }
 0xe61   : > { %v1874_v50 = vadd.f32 %v1850_v31, %v1777_v48  ;;  %v1994_v31 = vmul.f32 %v9294_v2, %v1969_v35  ;;  %v2498_v54 = vadd.f32 %v9299_v19, %v1997_v39  ;;  %v3455_v48 = vsel %vm3448_vm12, %v7939_v38, %v7941_v22  ;;  %v9306_v19 = vld [vmem:[#allocation138_spill] sm:$0xff] }
 0xe62   : > { %v1995_v61 = vmul.f32 %v9295_v25, %v1970_v11  ;;  %v1993_v52 = vmul.f32 %v8024_v41, %v1968_v1  ;;  %v2472_v35 = vsel %vm1155_vm10, %v9303_v20, %v9305_v10  ;;  %v2952_v1 = vsel %vm1470_vm11, %v9306_v19, %v9308_v3 }
 0xe63   : > { %v1971_v16 = vadd.f32 %v1947_v28, %v1874_v50  ;;  %v2978_v44 = vadd.f32 %v9302_v12, %v2498_v54  ;;  %v2471_v50 = vsel %vm1155_vm10, %v9304_v51, %v9303_v20  ;;  %v2495_v29 = vadd.f32 %v9305_v10, %v1994_v31  ;;  %v9309_v10 = vld [vmem:[#allocation58_spill] sm:$0xff] }
 0xe64   : > { %v7947_v0 = vpop.permute.xlu1 %3438  ;;  %v2496_v57 = vadd.f32 %v2473_v23, %v1995_v61  ;;  %v2494_v45 = vadd.f32 %v2472_v35, %v1993_v52 }
 0xe65   : > { %v1996_v32 = vmul.f32 %v8024_v41, %v1971_v16  ;;  %v3480_v5 = vadd.f32 %v7935_v4, %v2978_v44  ;;  %v2493_v16 = vadd.f32 %v2471_v50, %v1992_v59  ;;  %v2975_v39 = vadd.f32 %v9308_v3, %v2495_v29 }
 0xe66   : > { %v7943_v13 = vpop.permute.xlu2 %3953  ;;  %v2976_v28 = vadd.f32 %v2953_v8, %v2496_v57  ;;  %v3453_v4 = vsel %vm3448_vm12, %v7945_v21, %v7947_v0  ;;  %v1580_v29 = vmul.f32 %v9309_v10, %v5567_v49 }
 0xe67   : > { %v2497_v15 = vadd.f32 %v2474_v60, %v1996_v32  ;;  %v3987_v62 = vadd.f32 %v7943_v13, %v3480_v5  ;;  %v9307_v60 = vld [vmem:[#allocation117_spill] sm:$0xff]  ;;  %v3477_v8 = vadd.f32 %v7937_v14, %v2975_v39  ;;  %v1578_v5 = vmul.f32 0.0, %v9309_v10  ;;  %v9318_v39 = vld [vmem:[#allocation80_spill] sm:$0xff] }
 0xe68   : > { %v3478_v63 = vadd.f32 %v3455_v48, %v2976_v28 }
 0xe69   : > { %v2977_v9 = vadd.f32 %v2954_v37, %v2497_v15  ;;  %v2974_v37 = vadd.f32 %v2952_v1, %v2494_v45  ;;  %v9317_v1 = vld [vmem:[#allocation85_spill] sm:$0xff] }
 0xe6b   : > { %v3479_v11 = vadd.f32 %v3456_v40, %v2977_v9 }
 0xe76   : > { %v7949_v26 = vpop.permute.xlu2 %3434 }
 0xe8e   : > { %v7972_v42 = vpop.permute.xlu2 %3947 }
 0xe91   : > { %v7957_v46 = vpop.permute.xlu0 %3949 }
 0xe92   : > { %v7965_v43 = vpop.permute.xlu1 %3951 }
 0xe93   : > { %v3962_v38 = vsel %vm3955_vm13, %v7957_v46, %v7965_v43  ;;  %v3963_v22 = vsel %vm3955_vm13, %v7965_v43, %v7943_v13  ;;  %v2951_v43 = vsel %vm1470_vm11, %v9307_v60, %v9306_v19  ;;  %v3454_v13 = vsel %vm3448_vm12, %v7947_v0, %v7937_v14 }
 0xe94   : > { %v3985_v46 = vadd.f32 %v3962_v38, %v3478_v63  ;;  %v3986_v23 = vadd.f32 %v3963_v22, %v3479_v11  ;;  %v2973_v12 = vadd.f32 %v2951_v43, %v2493_v16  ;;  %v3476_v48 = vadd.f32 %v3454_v13, %v2974_v37  ;;  %v9310_v22 = vld [vmem:[#allocation73_spill] sm:$0xff]  ;;  %v9312_v63 = vld [vmem:[#allocation74_spill] sm:$0xff] }
 0xe95   : > { %v3984_v14 = vadd.f32 %v7972_v42, %v3477_v8  ;;  %v1579_v38 = vmul.f32 %v9309_v10, %v5575_v56  ;;  %v9313_v16 = vld [vmem:[#allocation65_spill] sm:$0xff]  ;;  %v1676_v60 = vadd.f32 %v9310_v22, %v1580_v29  ;;  %v9316_v43 = vld [vmem:[#allocation70_spill] sm:$0xff]  ;;  %v9324_v10 = vld [vmem:[#allocation92_spill] sm:$0xff] }
 0xe96   : > { %v8026_v55 = vpop.permute.xlu2 %3426  ;;  %v3475_v15 = vadd.f32 %v3453_v4, %v2973_v12  ;;  %v1576_v45 = vmul.f32 %v9313_v16, %v9206_v33  ;;  %v1749_v4 = vsel %vm835_vm1, %v9318_v39, %v9317_v1  ;;  %v9320_v8 = vld [vmem:[#allocation98_spill] sm:$0xff]  ;;  %v9321_v12 = vld [vmem:[#allocation97_spill] sm:$0xff] }
 0xe97   : > { %v1847_v37 = vsel %vm1843_vm4, %v9321_v12, %v9320_v8  ;;  %v1846_v29 = vsel %vm1843_vm4, %v9324_v10, %v9321_v12  ;;  %v9329_v8 = vld [vmem:[#allocation96_spill] sm:$0xff]  ;;  %v9330_v12 = vld [vmem:[#allocation94_spill] sm:$0xff] }
 0xe99   : > { %v8007_v47 = vpop.permute.xlu0 %3430 }
 0xe9a   : > { %v8016_v34 = vpop.permute.xlu1 %3432 }
 0xea1   : > { %v3944_v53 = vpop.permute.xlu0 %3943 }
 0xea2   : > { %v3946_v24 = vpop.permute.xlu1 %3945 }
 0xea3   : > { %v3960_v31 = vsel %vm3955_vm13, %v3944_v53, %v3946_v24  ;;  %v3961_v21 = vsel %vm3955_vm13, %v3946_v24, %v7972_v42  ;;  %v9311_v24 = vld [vmem:[#allocation68_spill] sm:$0xff] }
 0xea4   : > { %v3982_v53 = vadd.f32 %v3960_v31, %v3475_v15  ;;  %v3983_v52 = vadd.f32 %v3961_v21, %v3476_v48  ;;  %v1654_v35 = vsel %vm738_vm2, %v9311_v24, %v9310_v22  ;;  %v1653_v11 = vsel %vm738_vm2, %v9312_v63, %v9311_v24  ;;  %v9322_v48 = vld [vmem:[#allocation83_spill] sm:$0xff]  ;;  %v9326_v24 = vld [vmem:[#allocation104_spill] sm:$0xff] }
 0xea5   : > { %v8069_v7 = vpop.permute.xlu2 %3937  ;;  %v1675_v31 = vadd.f32 %v1654_v35, %v1579_v38  ;;  %v1674_v21 = vadd.f32 %v1653_v11, %v1578_v5  ;;  %v9325_v22 = vld [vmem:[#allocation111_spill] sm:$0xff]  ;;  %v9327_v5 = vld [vmem:[#allocation81_spill] sm:$0xff] }
 0xea6   : > { %v1944_v63 = vsel %vm1940_vm5, %v9326_v24, %v9325_v22  ;;  %v1748_v11 = vsel %vm835_vm1, %v9322_v48, %v9327_v5 }
 0xea9   : > { %v4010_v61 = vpop.permute.xlu0 %4009 }
 0xeaa   : > { %v8089_v32 = vadd.f32 %v4010_v61, %v3985_v46  ;;  %v8091_v36 = vadd.f32 %v4010_v61, %v3986_v23  ;;  %v8093_v17 = vadd.f32 %v4010_v61, %v3987_v62  ;;  %v1575_v62 = vmul.f32 0.0, %v9313_v16  ;;  %v9314_v46 = vld [vmem:[#allocation67_spill] sm:$0xff]  ;;  %v9315_v23 = vld [vmem:[#allocation72_spill] sm:$0xff] }
 0xeab   : > { %v1651_v19 = vsel %vm738_vm2, %v9315_v23, %v9314_v46  ;;  %v1652_v3 = vsel %vm738_vm2, %v9314_v46, %v9316_v43  ;;  %v9319_v61 = vld [vmem:[#allocation84_spill] sm:$0xff]  ;;  %v1770_v46 = vadd.f32 %v1749_v4, %v1674_v21 }
 0xeac   : > { %v4033_v54 = vmax.f32 %v8089_v32, 0.0  ;;  %v4034_v57 = vmax.f32 %v8091_v36, 0.0  ;;  %v4035_v0 = vmax.f32 %v8093_v17, 0.0  ;;  %v1750_v13 = vsel %vm835_vm1, %v9317_v1, %v9319_v61 }
 0xead   : > { %v4005_v40 = vpop.permute.xlu2 %4004  ;;  %v8102_v59 = vpop.permute.xlu1 %3424  ;;  %v1772_v15 = vadd.f32 %v9319_v61, %v1676_v60  ;;  %v1771_v23 = vadd.f32 %v1750_v13, %v1675_v31  ;;  %v1672_v1 = vadd.f32 %v1652_v3, %v1576_v45  ;;  %v1867_v61 = vadd.f32 %v9324_v10, %v1770_v46  ;;  %v9331_v45 = vld [vmem:[#allocation91_spill] sm:$0xff]  ;;  %v9335_v10 = vld [vmem:[#allocation126_spill] sm:$0xff] }
 0xeae   : > { %4070 = vrot.lane.b32.xlu1 %v4035_v0, %s5334_s24  ;;  %4068 = vrot.lane.b32.xlu0 %v4034_v57, %s5334_s24  ;;  %v8114_v44 = vadd.f32 %v4005_v40, %v3984_v14  ;;  %v8116_v28 = vadd.f32 %v4005_v40, %v3982_v53  ;;  %v8118_v42 = vadd.f32 %v4005_v40, %v3983_v52  ;;  %v9323_v40 = vld [vmem:[#allocation79_spill] sm:$0xff] }
 0xeaf   : > { %4066 = vrot.lane.b32.xlu2 %v4033_v54, %s5334_s24  ;;  %v1747_v14 = vsel %vm835_vm1, %v9323_v40, %v9322_v48  ;;  %v1577_v53 = vmul.f32 %v9313_v16, %v9251_v58  ;;  %v1671_v52 = vadd.f32 %v1651_v19, %v1575_v62  ;;  %v1869_v60 = vadd.f32 %v1847_v37, %v1772_v15  ;;  %v9328_v19 = vld [vmem:[#allocation109_spill] sm:$0xff]  ;;  %v9332_v37 = vld [vmem:[#allocation108_spill] sm:$0xff]  ;;  %v9333_v31 = vld [vmem:[#allocation103_spill] sm:$0xff] }
 0xeb0   : > { %v9031_v9 = vmax.f32 %v8114_v44, 0.0  ;;  %v4030_v20 = vmax.f32 %v8116_v28, 0.0  ;;  %v4031_v51 = vmax.f32 %v8118_v42, 0.0  ;;  %v1943_v39 = vsel %vm1940_vm5, %v9328_v19, %v9326_v24 }
 0xeb1   : > { %v1673_v16 = vadd.f32 %v9316_v43, %v1577_v53  ;;  %v1767_v62 = vadd.f32 %v1747_v14, %v1671_v52  ;;  %v1845_v40 = vsel %vm1843_vm4, %v9330_v12, %v9329_v8  ;;  %v1868_v22 = vadd.f32 %v1846_v29, %v1771_v23  ;;  %v9334_v53 = vld [vmem:[#allocation106_spill] sm:$0xff]  ;;  %v9336_v29 = vld [vmem:[#allocation125_spill] sm:$0xff] }
 0xeb2   : > { %v1768_v13 = vadd.f32 %v1748_v11, %v1672_v1  ;;  %v1844_v43 = vsel %vm1843_vm4, %v9331_v45, %v9330_v12  ;;  %v1942_v21 = vsel %vm1940_vm5, %v9333_v31, %v9332_v37  ;;  %v1964_v15 = vadd.f32 %v9328_v19, %v1867_v61  ;;  %v9339_v19 = vld [vmem:[#allocation119_spill] sm:$0xff] }
 0xeb3   : > { %v1769_v4 = vadd.f32 %v9327_v5, %v1673_v16  ;;  %v1864_v3 = vadd.f32 %v9331_v45, %v1767_v62  ;;  %v1965_v48 = vadd.f32 %v1943_v39, %v1868_v22  ;;  %v1941_v52 = vsel %vm1940_vm5, %v9334_v53, %v9333_v31  ;;  %v9338_v62 = vld [vmem:[#allocation136_spill] sm:$0xff]  ;;  %v9340_v61 = vld [vmem:[#allocation135_spill] sm:$0xff] }
 0xeb4   : > { %v2469_v24 = vsel %vm1155_vm10, %v9336_v29, %v9335_v10  ;;  %v1865_v11 = vadd.f32 %v1844_v43, %v1768_v13  ;;  %v1989_v23 = vmul.f32 %v9295_v25, %v1964_v15  ;;  %v2949_v39 = vsel %vm1470_vm11, %v9339_v19, %v9338_v62  ;;  %v9341_v31 = vld [vmem:[#allocation124_spill] sm:$0xff]  ;;  %v9345_v29 = vld [vmem:[#allocation35_spill] sm:$0xff] }
 0xeb5   : > { %v8123_v50 = vpop.permute.xlu1 %3428  ;;  %v1866_v14 = vadd.f32 %v1845_v40, %v1769_v4  ;;  %v1961_v1 = vadd.f32 %v9334_v53, %v1864_v3  ;;  %v2950_v8 = vsel %vm1470_vm11, %v9338_v62, %v9340_v61  ;;  %v3451_v43 = vsel %vm3448_vm12, %v8007_v47, %v8016_v34 }
 0xeb6   : > { %4064 = vrot.lane.b32.xlu1 %v9031_v9, %s5334_s24  ;;  %4062 = vrot.lane.b32.xlu0 %v4031_v51, %s5334_s24  ;;  %v1966_v9 = vadd.f32 %v1944_v63, %v1869_v60  ;;  %v9337_v63 = vld [vmem:[#allocation120_spill] sm:$0xff]  ;;  %v1990_v60 = vmul.f32 %v8024_v41, %v1965_v48  ;;  %v1962_v40 = vadd.f32 %v1941_v52, %v1865_v11  ;;  %v9405_v36 = vmax.f32 %v8114_v44, 0.0 }
 0xeb7   : > { %4060 = vrot.lane.b32.xlu2 %v4030_v20, %s5334_s24  ;;  %v2470_v5 = vsel %vm1155_vm10, %v9335_v10, %v9337_v63  ;;  %v1963_v16 = vadd.f32 %v1942_v21, %v1866_v14  ;;  %v1986_v45 = vmul.f32 %v9295_v25, %v1961_v1  ;;  %v3452_v3 = vsel %vm3448_vm12, %v8016_v34, %v7949_v26  ;;  %v9342_v21 = vld [vmem:[#allocation123_spill] sm:$0xff]  ;;  %v9344_v10 = vld [vmem:[#allocation134_spill] sm:$0xff] }
 0xeb8   : > { %v1991_v46 = vmul.f32 %v9294_v2, %v1966_v9  ;;  %v2490_v9 = vadd.f32 %v2469_v24, %v1989_v23  ;;  %v2491_v4 = vadd.f32 %v2470_v5, %v1990_v60  ;;  %v2467_v15 = vsel %vm1155_vm10, %v9342_v21, %v9341_v31  ;;  %v9346_v60 = vld [vmem:[#allocation133_spill] sm:$0xff] }
 0xeb9   : > { %v1988_v13 = vmul.f32 %v9294_v2, %v1963_v16  ;;  %v9343_v2 = vld [vmem:[#allocation118_spill] sm:$0xff]  ;;  %v2947_v24 = vsel %vm1470_vm11, %v9345_v29, %v9344_v10  ;;  %v2487_v23 = vadd.f32 %v2467_v15, %v1986_v45  ;;  %v2948_v16 = vsel %vm1470_vm11, %v9344_v10, %v9346_v60  ;;  %v9349_v10 = vld [vmem:[#allocation5_spill] sm:$0xff] }
 0xeba   : > { %v2492_v22 = vadd.f32 %v9337_v63, %v1991_v46  ;;  %v2970_v14 = vadd.f32 %v2949_v39, %v2490_v9  ;;  %v2971_v53 = vadd.f32 %v2950_v8, %v2491_v4  ;;  %v2468_v25 = vsel %vm1155_vm10, %v9341_v31, %v9343_v2 }
 0xebb   : > { %v2489_v52 = vadd.f32 %v9343_v2, %v1988_v13  ;;  %v1987_v46 = vmul.f32 %v8024_v41, %v1962_v40  ;;  %v3450_v41 = vsel %vm3448_vm12, %v8026_v55, %v8123_v50  ;;  %v671_v29 = vmul.f32 0.0, %v9349_v10 }
 0xebc   : > { %v2972_v48 = vadd.f32 %v9340_v61, %v2492_v22  ;;  %v3472_v5 = vadd.f32 %v3451_v43, %v2970_v14  ;;  %v3473_v11 = vadd.f32 %v3452_v3, %v2971_v53 }
 0xebd   : > { %v3942_v38 = vpop.permute.xlu1 %3941  ;;  %v2969_v1 = vadd.f32 %v9346_v60, %v2489_v52  ;;  %v2488_v39 = vadd.f32 %v2468_v25, %v1987_v46  ;;  %v9347_v25 = vld [vmem:[#allocation34_spill] sm:$0xff]  ;;  %v9352_v46 = vld [vmem:[#allocation19_spill] sm:$0xff] }
 0xebe   : > { %v3940_v35 = vpop.permute.xlu0 %3939  ;;  %v3474_v63 = vadd.f32 %v7949_v26, %v2972_v48  ;;  %v2967_v26 = vadd.f32 %v2947_v24, %v2487_v23  ;;  %v9353_v60 = vld [vmem:[#allocation30_spill] sm:$0xff] }
 0xebf   : > { %v3958_v47 = vsel %vm3955_vm13, %v8069_v7, %v3940_v35  ;;  %v3959_v34 = vsel %vm3955_vm13, %v3940_v35, %v3942_v38  ;;  %v3449_v7 = vsel %vm3448_vm12, %v8102_v59, %v8026_v55  ;;  %v3471_v8 = vadd.f32 %v8123_v50, %v2969_v1 }
 0xec0   : > { %v3981_v35 = vadd.f32 %v3942_v38, %v3474_v63  ;;  %v3979_v62 = vadd.f32 %v3958_v47, %v3472_v5  ;;  %v3980_v19 = vadd.f32 %v3959_v34, %v3473_v11  ;;  %v2968_v4 = vadd.f32 %v2948_v16, %v2488_v39  ;;  %v3936_v38 = vpop.permute.xlu2 %3935  ;;  %v9348_v47 = vld [vmem:[#allocation22_spill] sm:$0xff]  ;;  %v9350_v63 = vld [vmem:[#allocation156_spill] sm:$0xff] }
 0xec1   : > { %v3469_v59 = vadd.f32 %v3449_v7, %v2967_v26  ;;  %v3978_v21 = vadd.f32 %v3936_v38, %v3471_v8  ;;  %v745_v34 = vsel %vm738_vm2, %v9348_v47, %v9347_v25  ;;  %v668_v5 = vmul.f32 0.0, %v9350_v63  ;;  %v9351_v11 = vld [vmem:[#allocation32_spill] sm:$0xff]  ;;  %v9354_v7 = vld [vmem:[#allocation47_spill] sm:$0xff]  ;;  %v9357_v26 = vld [vmem:[#allocation26_spill] sm:$0xff] }
 0xec2   : > { %v3470_v50 = vadd.f32 %v3450_v41, %v2968_v4  ;;  %v768_v24 = vadd.f32 %v745_v34, %v671_v29  ;;  %v743_v23 = vsel %vm738_vm2, %v9352_v46, %v9351_v11  ;;  %v9359_v8 = vld [vmem:[#allocation52_spill] sm:$0xff]  ;;  %v9363_v47 = vld [vmem:[#allocation61_spill] sm:$0xff]  ;;  %v9364_v34 = vld [vmem:[#allocation51_spill] sm:$0xff] }
 0xec3   : > { %v765_v16 = vadd.f32 %v743_v23, %v668_v5  ;;  %v1475_v29 = vsel %vm1470_vm11, %v9364_v34, %v9363_v47  ;;  %v9365_v23 = vld [vmem:[#allocation28_spill] sm:$0xff] }
 0xec4   : > { %v865_v1 = vadd.f32 %v9353_v60, %v768_v24 }
 0xec5   : > { %v862_v41 = vadd.f32 %v9357_v26, %v765_v16 }
 0xec6   : > { %v3932_v12 = vpop.permute.xlu0 %3931  ;;  %v3934_v37 = vpop.permute.xlu1 %3933 }
 0xec7   : > { %v3956_v13 = vsel %vm3955_vm13, %v3932_v12, %v3934_v37  ;;  %v3957_v45 = vsel %vm3955_vm13, %v3934_v37, %v3936_v38 }
 0xec8   : > { %v3976_v15 = vadd.f32 %v3956_v13, %v3469_v59  ;;  %v3977_v12 = vadd.f32 %v3957_v45, %v3470_v50  ;;  %v9360_v45 = vld [vmem:[#allocation46_spill] sm:$0xff]  ;;  %v9361_v50 = vld [vmem:[#allocation43_spill] sm:$0xff] }
 0xece   : > { %v4000_v61 = vpop.permute.xlu0 %3999  ;;  %v3995_v31 = vpop.permute.xlu1 %3994 }
 0xecf   : > { %v8251_v40 = vadd.f32 %v4000_v61, %v3979_v62  ;;  %v8253_v22 = vadd.f32 %v4000_v61, %v3980_v19  ;;  %v8255_v9 = vadd.f32 %v4000_v61, %v3981_v35  ;;  %v8271_v37 = vadd.f32 %v3995_v31, %v3976_v15  ;;  %v9355_v35 = vld [vmem:[#allocation45_spill] sm:$0xff]  ;;  %v9358_v61 = vld [vmem:[#allocation63_spill] sm:$0xff] }
 0xed0   : > { %v8273_v48 = vadd.f32 %v3995_v31, %v3978_v21  ;;  %v8275_v14 = vadd.f32 %v3995_v31, %v3977_v12  ;;  %v1162_v62 = vsel %vm1155_vm10, %v9355_v35, %v9354_v7  ;;  %v9356_v19 = vld [vmem:[#allocation9_spill] sm:$0xff]  ;;  %v1477_v4 = vsel %vm1470_vm11, %v9359_v8, %v9358_v61  ;;  %v9362_v21 = vld [vmem:[#allocation55_spill] sm:$0xff] }
 0xed1   : > { %v4027_v43 = vmax.f32 %v8251_v40, 0.0  ;;  %v4028_v55 = vmax.f32 %v8253_v22, 0.0  ;;  %v4029_v3 = vmax.f32 %v8255_v9, 0.0  ;;  %v4024_v53 = vmax.f32 %v8271_v37, 0.0  ;;  %v4489_v40 = vld [vmem:[%s8868_s9 + $0x10] sm:$0xff]  ;;  %v4488_v22 = vld [vmem:[%s8868_s9 + $0x8] sm:$0xff] }
 0xed2   : > { %v9035_v2 = vmax.f32 %v8273_v48, 0.0  ;;  %v9034_v52 = vmax.f32 %v8275_v14, 0.0  ;;  %v891_v39 = vmul.f32 %v9356_v19, %v865_v1  ;;  %v888_v13 = vmul.f32 %v9356_v19, %v862_v41  ;;  %v4487_v37 = vld [vmem:[%s8868_s9] sm:$0xff] }
 0xed3   : > { %4054 = vrot.lane.b32.xlu2 %v4027_v43, %s5334_s24  ;;  %4058 = vrot.lane.b32.xlu1 %v4029_v3, %s5334_s24  ;;  %v1160_v31 = vsel %vm1155_vm10, %v9361_v50, %v9360_v45  ;;  %v746_v1 = vsel %vm738_vm2, %v9347_v25, %v9365_v23  ;;  %v672_v35 = vmul.f32 %v9349_v10, %v9245_v27  ;;  %v9368_v27 = vld [vmem:[#allocation18_spill] sm:$0xff]  ;;  %v9406_v9 = vmax.f32 %v8273_v48, 0.0  ;;  %v4525_v48 = vld [vmem:[%s8869_s10 + $0x10] sm:$0xff] }
 0xed4   : > { %4056 = vrot.lane.b32.xlu0 %v4028_v55, %s5334_s24  ;;  %v1185_v59 = vadd.f32 %v1162_v62, %v891_v39  ;;  %v1182_v12 = vadd.f32 %v1160_v31, %v888_v13  ;;  %v9366_v62 = vld [vmem:[#allocation64_spill] sm:$0xff]  ;;  %v673_v41 = vmul.f32 %v9349_v10, %v5611_v30  ;;  %v670_v25 = vmul.f32 %v9350_v63, %v5592_v6 }
 0xed5   : > { %v769_v8 = vadd.f32 %v746_v1, %v672_v35  ;;  %v9369_v31 = vld [vmem:[#allocation24_spill] sm:$0xff]  ;;  %v9372_v1 = vld [vmem:[#allocation7_spill] sm:$0xff] }
 0xed6   : > { %v1500_v38 = vadd.f32 %v1477_v4, %v1185_v59  ;;  %v1497_v5 = vadd.f32 %v1475_v29, %v1182_v12  ;;  %v669_v4 = vmul.f32 %v9350_v63, %v5601_v18  ;;  %v9367_v59 = vld [vmem:[#allocation33_spill] sm:$0xff]  ;;  %v770_v50 = vadd.f32 %v9365_v23, %v673_v41  ;;  %v9370_v29 = vld [vmem:[#allocation31_spill] sm:$0xff] }
 0xed7   : > { %v843_v13 = vsel %vm835_vm1, %v9367_v59, %v9368_v27  ;;  %v744_v30 = vsel %vm738_vm2, %v9351_v11, %v9369_v31  ;;  %v767_v63 = vadd.f32 %v9369_v31, %v670_v25  ;;  %v9371_v23 = vld [vmem:[#allocation15_spill] sm:$0xff] }
 0xed8   : > { %v8311_v15 = vadd.f32 %v9362_v21, %v1500_v38  ;;  %v8326_v39 = vadd.f32 %v9366_v62, %v1497_v5  ;;  %v842_v38 = vsel %vm835_vm1, %v9353_v60, %v9367_v59  ;;  %v867_v12 = vadd.f32 %v843_v13, %v770_v50  ;;  %v9373_v35 = vld [vmem:[#allocation39_spill] sm:$0xff]  ;;  %v9374_v59 = vld [vmem:[#allocation62_spill] sm:$0xff]  ;;  %v9376_v13 = vld [vmem:[#allocation16_spill] sm:$0xff] }
 0xed9   : > { %v866_v10 = vadd.f32 %v842_v38, %v769_v8  ;;  %v766_v6 = vadd.f32 %v744_v30, %v669_v4  ;;  %v840_v5 = vsel %vm835_vm1, %v9357_v26, %v9370_v29  ;;  %v841_v11 = vsel %vm835_vm1, %v9370_v29, %v9371_v23  ;;  %v9375_v27 = vld [vmem:[#allocation27_spill] sm:$0xff] }
 0xeda   : > { %v9033_v24 = vmax.f32 %v8311_v15, 0.0  ;;  %v9032_v18 = vmax.f32 %v8326_v39, 0.0  ;;  %v1163_v41 = vsel %vm1155_vm10, %v9354_v7, %v9373_v35  ;;  %v893_v8 = vmul.f32 %v9372_v1, %v867_v12  ;;  %v9377_v7 = vld [vmem:[#allocation4_spill] sm:$0xff] }
 0xedb   : > { %4052 = vrot.lane.b32.xlu1 %v9035_v2, %s5334_s24  ;;  %4048 = vrot.lane.b32.xlu2 %v4024_v53, %s5334_s24  ;;  %v863_v25 = vadd.f32 %v840_v5, %v766_v6  ;;  %v864_v26 = vadd.f32 %v841_v11, %v767_v63  ;;  %v1478_v38 = vsel %vm1470_vm11, %v9358_v61, %v9374_v59  ;;  %v665_v29 = vmul.f32 0.0, %v9377_v7  ;;  %v9378_v5 = vld [vmem:[#allocation38_spill] sm:$0xff] }
 0xedc   : > { %4050 = vrot.lane.b32.xlu0 %v9034_v52, %s5334_s24  ;;  %v741_v50 = vsel %vm738_vm2, %v9376_v13, %v9375_v27  ;;  %v1187_v31 = vadd.f32 %v9373_v35, %v893_v8  ;;  %v1161_v61 = vsel %vm1155_vm10, %v9360_v45, %v9378_v5  ;;  %v9379_v8 = vld [vmem:[#allocation20_spill] sm:$0xff]  ;;  %v9384_v45 = vld [vmem:[#allocation41_spill] sm:$0xff] }
 0xedd   : > { %v890_v6 = vmul.f32 %v9372_v1, %v864_v26  ;;  %v762_v63 = vadd.f32 %v741_v50, %v665_v29  ;;  %v9383_v50 = vld [vmem:[#allocation44_spill] sm:$0xff] }
 0xf09   : > { %v4067_v46 = vpop.permute.xlu2 %4066 }
 0xf0a   : > { %v4102_v16 = vadd.f32 %v4067_v46, %v9033_v24  ;;  %v9387_v24 = vld [vmem:[#allocation50_spill] sm:$0xff] }
 0xf0c   : > { %4135 = vrot.lane.b32.xlu2 %v4102_v16, %s5334_s24  ;;  %v8356_v16 = vsel %vm877_vm14, %v9356_v19, %v9372_v1 }
 0xf0d   : > { %v892_v4 = vmul.f32 %v8356_v16, %v866_v10  ;;  %v889_v10 = vmul.f32 %v8356_v16, %v863_v25  ;;  %v9381_v25 = vld [vmem:[#allocation13_spill] sm:$0xff] }
 0xf0f   : > { %v1186_v30 = vadd.f32 %v1163_v41, %v892_v4  ;;  %v1183_v35 = vadd.f32 %v1161_v61, %v889_v10  ;;  %v1184_v41 = vadd.f32 %v9378_v5, %v890_v6  ;;  %v859_v4 = vadd.f32 %v9379_v8, %v762_v63 }
 0xf11   : > { %v4061_v34 = vpop.permute.xlu2 %4060  ;;  %v1501_v12 = vadd.f32 %v1478_v38, %v1186_v30  ;;  %v9382_v38 = vld [vmem:[#allocation3_spill] sm:$0xff]  ;;  %v9385_v30 = vld [vmem:[#allocation60_spill] sm:$0xff]  ;;  %v885_v61 = vmul.f32 %v9356_v19, %v859_v4 }
 0xf12   : > { %v4099_v60 = vadd.f32 %v4061_v34, %v9032_v18  ;;  %v662_v13 = vmul.f32 0.0, %v9382_v38  ;;  %v1499_v63 = vadd.f32 %v9385_v30, %v1184_v41  ;;  %v9386_v18 = vld [vmem:[#allocation59_spill] sm:$0xff] }
 0xf13   : > { %v8379_v23 = vadd.f32 %v9362_v21, %v1501_v12 }
 0xf14   : > { %4129 = vrot.lane.b32.xlu2 %v4099_v60, %s5334_s24  ;;  %v1502_v60 = vadd.f32 %v9374_v59, %v1187_v31  ;;  %v9380_v59 = vld [vmem:[#allocation21_spill] sm:$0xff]  ;;  %v1158_v31 = vsel %vm1155_vm10, %v9384_v45, %v9383_v50  ;;  %v8416_v4 = vadd.f32 %v9366_v62, %v1499_v63 }
 0xf15   : > { %v739_v26 = vsel %vm738_vm2, %v9381_v25, %v9380_v59  ;;  %v1179_v41 = vadd.f32 %v1158_v31, %v885_v61  ;;  %v9393_v61 = vld [vmem:[#allocation49_spill] sm:$0xff] }
 0xf16   : > { %v8382_v11 = vadd.f32 %v9362_v21, %v1502_v60  ;;  %v1476_v21 = vsel %vm1470_vm11, %v9363_v47, %v9385_v30  ;;  %v1549_v60 = vmax.f32 %v8379_v23, 0.0  ;;  %v759_v5 = vadd.f32 %v739_v26, %v662_v13  ;;  %v9389_v26 = vld [vmem:[#allocation42_spill] sm:$0xff]  ;;  %v9390_v13 = vld [vmem:[#allocation40_spill] sm:$0xff] }
 0xf17   : > { %v1498_v6 = vadd.f32 %v1476_v21, %v1183_v35  ;;  %v1473_v47 = vsel %vm1470_vm11, %v9387_v24, %v9386_v18  ;;  %v9388_v35 = vld [vmem:[#allocation23_spill] sm:$0xff]  ;;  %v1156_v30 = vsel %vm1155_vm10, %v9390_v13, %v9389_v26 }
 0xf18   : > { %v9044_v10 = vmax.f32 %v8382_v11, 0.0  ;;  %v856_v21 = vadd.f32 %v9388_v35, %v759_v5  ;;  %v1494_v24 = vadd.f32 %v1473_v47, %v1179_v41  ;;  %v9391_v5 = vld [vmem:[#allocation157_spill] sm:$0xff] }
 0xf1a   : > { %v8423_v31 = vadd.f32 %v9391_v5, %v1494_v24 }
 0xf1c   : > { %v9036_v24 = vmax.f32 %v8423_v31, 0.0 }
 0xf20   : > { %v4071_v29 = vpop.permute.xlu1 %4070  ;;  %v4069_v12 = vpop.permute.xlu0 %4068 }
 0xf21   : > { %v4079_v25 = vsel %vm4072_vm15, %v4067_v46, %v4069_v12  ;;  %v4080_v45 = vsel %vm4072_vm15, %v4069_v12, %v4071_v29  ;;  %v8413_v46 = vadd.f32 %v9366_v62, %v1498_v6  ;;  %v882_v29 = vmul.f32 %v9356_v19, %v856_v21 }
 0xf22   : > { %v4103_v52 = vadd.f32 %v4079_v25, %v1549_v60  ;;  %v4104_v2 = vadd.f32 %v4080_v45, %v9044_v10  ;;  %v9037_v62 = vmax.f32 %v8416_v4, 0.0 }
 0xf23   : > { %v9041_v6 = vmax.f32 %v8413_v46, 0.0  ;;  %v1176_v63 = vadd.f32 %v1156_v30, %v882_v29 }
 0xf24   : > { %4137 = vrot.lane.b32.xlu0 %v4103_v52, %s5334_s24  ;;  %4139 = vrot.lane.b32.xlu1 %v4104_v2, %s5334_s24  ;;  %v9392_v52 = vld [vmem:[#allocation56_spill] sm:$0xff] }
 0xf25   : > { %v1471_v2 = vsel %vm1470_vm11, %v9393_v61, %v9392_v52 }
 0xf26   : > { %v1491_v41 = vadd.f32 %v1471_v2, %v1176_v63  ;;  %v666_v2 = vmul.f32 %v9377_v7, %v5575_v56 }
 0xf28   : > { %v4065_v12 = vpop.permute.xlu1 %4064  ;;  %v4063_v25 = vpop.permute.xlu0 %4062 }
 0xf29   : > { %v4077_v45 = vsel %vm4072_vm15, %v4061_v34, %v4063_v25  ;;  %v4078_v47 = vsel %vm4072_vm15, %v4063_v25, %v4065_v12  ;;  %v9394_v34 = vld [vmem:[#allocation53_spill] sm:$0xff]  ;;  %v667_v25 = vmul.f32 %v9377_v7, %v5567_v49  ;;  %v9398_v49 = vld [vmem:[#allocation14_spill] sm:$0xff] }
 0xf2a   : > { %v4100_v19 = vadd.f32 %v4077_v45, %v9041_v6  ;;  %v4101_v21 = vadd.f32 %v4078_v47, %v9037_v62  ;;  %v8443_v29 = vadd.f32 %v9394_v34, %v1491_v41  ;;  %v9395_v12 = vld [vmem:[#allocation17_spill] sm:$0xff]  ;;  %v740_v7 = vsel %vm738_vm2, %v9380_v59, %v9398_v49 }
 0xf2b   : > { %v742_v61 = vsel %vm738_vm2, %v9375_v27, %v9395_v12  ;;  %v9396_v45 = vld [vmem:[#allocation29_spill] sm:$0xff] }
 0xf2c   : > { %4131 = vrot.lane.b32.xlu0 %v4100_v19, %s5334_s24  ;;  %4133 = vrot.lane.b32.xlu1 %v4101_v21, %s5334_s24  ;;  %v9038_v63 = vmax.f32 %v8443_v29, 0.0  ;;  %v838_v47 = vsel %vm835_vm1, %v9379_v8, %v9396_v45  ;;  %v9397_v19 = vld [vmem:[#allocation12_spill] sm:$0xff]  ;;  %v763_v27 = vadd.f32 %v742_v61, %v666_v2  ;;  %v663_v8 = vmul.f32 %v9382_v38, %v9206_v33 }
 0xf2d   : > { %v4055_v13 = vpop.permute.xlu2 %4054  ;;  %v839_v21 = vsel %vm835_vm1, %v9396_v45, %v9397_v19  ;;  %v664_v45 = vmul.f32 %v9382_v38, %v9251_v58  ;;  %v9399_v19 = vld [vmem:[#allocation11_spill] sm:$0xff]  ;;  %v9402_v58 = vld [vmem:[#allocation57_spill] sm:$0xff] }
 0xf2e   : > { %v4096_v30 = vadd.f32 %v4055_v13, %v9036_v24  ;;  %v860_v24 = vadd.f32 %v838_v47, %v763_v27  ;;  %v1474_v38 = vsel %vm1470_vm11, %v9386_v18, %v9402_v58 }
 0xf2f   : > { %v761_v59 = vadd.f32 %v9398_v49, %v664_v45 }
 0xf30   : > { %4123 = vrot.lane.b32.xlu2 %v4096_v30, %s5334_s24  ;;  %v764_v30 = vadd.f32 %v9395_v12, %v667_v25  ;;  %v9400_v12 = vld [vmem:[#allocation25_spill] sm:$0xff] }
 0xf31   : > { %v837_v61 = vsel %vm835_vm1, %v9400_v12, %v9399_v19  ;;  %v836_v2 = vsel %vm835_vm1, %v9388_v35, %v9400_v12  ;;  %v9401_v25 = vld [vmem:[#allocation37_spill] sm:$0xff]  ;;  %vm4189_vm1 = vcmask 261120  }
 0xf32   : > { %v861_v62 = vadd.f32 %v839_v21, %v764_v30  ;;  %v1159_v47 = vsel %vm1155_vm10, %v9383_v50, %v9401_v25  ;;  %v760_v21 = vadd.f32 %v740_v7, %v663_v8  ;;  %v886_v30 = vmul.f32 %v8356_v16, %v860_v24  ;;  %v9403_v50 = vld [vmem:[#allocation36_spill] sm:$0xff]  ;;  %v9404_v8 = vld [vmem:[#allocation54_spill] sm:$0xff] }
 0xf33   : > { %v858_v27 = vadd.f32 %v837_v61, %v761_v59  ;;  %v1157_v49 = vsel %vm1155_vm10, %v9389_v26, %v9403_v50  ;;  %v1472_v45 = vsel %vm1470_vm11, %v9392_v52, %v9404_v8 }
 0xf34   : > { %v887_v33 = vmul.f32 %v9372_v1, %v861_v62  ;;  %v1180_v35 = vadd.f32 %v1159_v47, %v886_v30 }
 0xf35   : > { %v4049_v41 = vpop.permute.xlu2 %4048  ;;  %v884_v62 = vmul.f32 %v9372_v1, %v858_v27 }
 0xf36   : > { %v4093_v56 = vadd.f32 %v4049_v41, %v9038_v63  ;;  %v1181_v19 = vadd.f32 %v9401_v25, %v887_v33  ;;  %v1495_v63 = vadd.f32 %v1474_v38, %v1180_v35 }
 0xf37   : > { %v1178_v61 = vadd.f32 %v9403_v50, %v884_v62 }
 0xf38   : > { %4117 = vrot.lane.b32.xlu2 %v4093_v56, %s5334_s24  ;;  %v857_v56 = vadd.f32 %v836_v2, %v760_v21  ;;  %v1496_v12 = vadd.f32 %v9402_v58, %v1181_v19  ;;  %v8493_v7 = vadd.f32 %v9391_v5, %v1495_v63 }
 0xf39   : > { %v1493_v26 = vadd.f32 %v9404_v8, %v1178_v61 }
 0xf3a   : > { %v883_v24 = vmul.f32 %v8356_v16, %v857_v56  ;;  %v8496_v18 = vadd.f32 %v9391_v5, %v1496_v12  ;;  %v9043_v1 = vmax.f32 %v8493_v7, 0.0 }
 0xf3b   : > { %v8517_v30 = vadd.f32 %v9394_v34, %v1493_v26 }
 0xf3c   : > { %v1177_v2 = vadd.f32 %v1157_v49, %v883_v24  ;;  %v9042_v63 = vmax.f32 %v8496_v18, 0.0 }
 0xf3d   : > { %v9039_v27 = vmax.f32 %v8517_v30, 0.0 }
 0xf3e   : > { %v1492_v47 = vadd.f32 %v1472_v45, %v1177_v2 }
 0xf40   : > { %v8514_v33 = vadd.f32 %v9394_v34, %v1492_v47 }
 0xf42   : > { %v9040_v38 = vmax.f32 %v8514_v33, 0.0 }
 0xf45   : > { %v4059_v25 = vpop.permute.xlu1 %4058 }
 0xf46   : > { %v4057_v16 = vpop.permute.xlu0 %4056 }
 0xf47   : > { %v4075_v59 = vsel %vm4072_vm15, %v4055_v13, %v4057_v16  ;;  %v4076_v5 = vsel %vm4072_vm15, %v4057_v16, %v4059_v25 }
 0xf48   : > { %v4097_v21 = vadd.f32 %v4075_v59, %v9043_v1  ;;  %v4098_v52 = vadd.f32 %v4076_v5, %v9042_v63 }
 0xf4a   : > { %4125 = vrot.lane.b32.xlu0 %v4097_v21, %s5334_s24  ;;  %4127 = vrot.lane.b32.xlu1 %v4098_v52, %s5334_s24 }
 0xf4d   : > { %v4053_v58 = vpop.permute.xlu1 %4052 }
 0xf4e   : > { %v4051_v13 = vpop.permute.xlu0 %4050 }
 0xf4f   : > { %v4073_v56 = vsel %vm4072_vm15, %v4049_v41, %v4051_v13  ;;  %v4074_v19 = vsel %vm4072_vm15, %v4051_v13, %v4053_v58 }
 0xf50   : > { %v4094_v35 = vadd.f32 %v4073_v56, %v9040_v38  ;;  %v4095_v12 = vadd.f32 %v4074_v19, %v9039_v27 }
 0xf52   : > { %4121 = vrot.lane.b32.xlu1 %v4095_v12, %s5334_s24  ;;  %4119 = vrot.lane.b32.xlu0 %v4094_v35, %s5334_s24 }
 0xf66   : > { %v4136_v34 = vpop.permute.xlu2 %4135 }
 0xf6e   : > { %v4130_v8 = vpop.permute.xlu2 %4129 }
 0xf8a   : > { %v4124_v47 = vpop.permute.xlu2 %4123 }
 0xf92   : > { %v4118_v58 = vpop.permute.xlu2 %4117 }
 0xf96   : > { %v4138_v50 = vpop.permute.xlu0 %4137  ;;  %v4140_v49 = vpop.permute.xlu1 %4139 }
 0xf97   : > { %v4147_v62 = vsel %vm4072_vm15, %v4136_v34, %v4138_v50  ;;  %v4148_v24 = vsel %vm4072_vm15, %v4138_v50, %v4140_v49 }
 0xf98   : > { %v4166_v41 = vadd.f32 %v4148_v24, %v4147_v62 }
 0xf9a   : > { %4167 = vadd.xlane.f32.xlu2 %v4166_v41 }
 0xf9e   : > { %v4132_v45 = vpop.permute.xlu0 %4131  ;;  %v4134_v61 = vpop.permute.xlu1 %4133 }
 0xf9f   : > { %v4145_v2 = vsel %vm4072_vm15, %v4130_v8, %v4132_v45  ;;  %v4146_v25 = vsel %vm4072_vm15, %v4132_v45, %v4134_v61  ;;  %v4173_v61 = vld [vmem:[%s8866_s7] sm:$0xff] }
 0xfa0   : > { %v4163_v26 = vadd.f32 %v4146_v25, %v4145_v2  ;;  %v5285_v2 = vld [vmem:[%s5444_s29 + $0x10] sm:$0xff]  ;;  %v5286_v25 = vld [vmem:[%s5444_s29] sm:$0xff]  ;;  %s5066_s29 = sshll.u32 %s9420_s19, 7 }
 0xfa1   : > { %s8834_s26 = scalar_lea.vmem %s8874_s15, %s5066_s29 }
 0xfa2   : > { %4164 = vadd.xlane.f32.xlu0 %v4163_v26  ;;  %v4174_v26 = vld [vmem:[%s8866_s7 + $0x8] sm:$0xff] }
 0xfbc   : > { %v4126_v16 = vpop.permute.xlu0 %4125  ;;  %v4128_v59 = vpop.permute.xlu1 %4127 }
 0xfbd   : > { %v4143_v5 = vsel %vm4072_vm15, %v4124_v47, %v4126_v16  ;;  %v4144_v21 = vsel %vm4072_vm15, %v4126_v16, %v4128_v59  ;;  %v4175_v47 = vld [vmem:[%s8866_s7 + $0x10] sm:$0xff]  ;;  %v4176_v16 = vld [vmem:[%s8866_s7 + $0x18] sm:$0xff]  ;;  %v4177_v59 = vld [vmem:[%s8866_s7 + $0x20] sm:$0xff] }
 0xfbe   : > { %v4160_v52 = vadd.f32 %v4144_v21, %v4143_v5  ;;  %v4178_v5 = vld [vmem:[%s8866_s7 + $0x28] sm:$0xff]  ;;  %v4179_v21 = vld [vmem:[%s8866_s7 + $0x30] sm:$0xff] }
 0xfc0   : > { %4161 = vadd.xlane.f32.xlu1 %v4160_v52  ;;  %v4180_v52 = vld [vmem:[%s8866_s7 + $0x38] sm:$0xff] }
 0xfc4   : > { %v4122_v13 = vpop.permute.xlu1 %4121  ;;  %v4120_v56 = vpop.permute.xlu0 %4119 }
 0xfc5   : > { %v4141_v19 = vsel %vm4072_vm15, %v4118_v58, %v4120_v56  ;;  %v4142_v35 = vsel %vm4072_vm15, %v4120_v56, %v4122_v13 }
 0xfc6   : > { %v4157_v12 = vadd.f32 %v4142_v35, %v4141_v19  ;;  %v4181_v35 = vld [vmem:[%s8867_s8] sm:$0xff] }
 0xfc8   : > { %4158 = vadd.xlane.f32.xlu2 %v4157_v12  ;;  %v4185_v12 = vld [vmem:[%s8867_s8 + $0x20] sm:$0xff] }
0x100d   : > { %v4168_v34 = vpop.xlane.xlu2 %4167 }
0x100e   : > { %v4172_v50 = vmul.f32 0.00390625, %v4168_v34 }
0x1010   : > { %4226 = vmatpush.msra.mxu2 %v4172_v50 }
0x1015   : > { %v4165_v49 = vpop.xlane.xlu0 %4164 }
0x1016   : > { %v4171_v62 = vmul.f32 0.00390625, %v4165_v49 }
0x1018   : > { %4227 = vmatpush.msra.mxu2 %v4171_v62 }
0x1033   : > { %v4162_v24 = vpop.xlane.xlu1 %4161 }
0x1034   : > { %v4170_v41 = vmul.f32 0.00390625, %v4162_v24 }
0x1036   : > { %4228 = vmatpush.msra.mxu2 %v4170_v41 }
0x103b   : > { %v4159_v8 = vpop.xlane.xlu2 %4158 }
0x103c   : > { %v4169_v45 = vmul.f32 0.00390625, %v4159_v8  ;;  %v4182_v8 = vld [vmem:[%s8867_s8 + $0x8] sm:$0xff] }
0x103e   : > { %4229 = vmatpush.msra.mxu2 %v4169_v45  ;;  %v4186_v45 = vld [vmem:[%s8867_s8 + $0x28] sm:$0xff] }
0x103f   : > { %5023 = vmatmul.msk.f32.vlgmr.msra.gmra.mxu2 %vm4189_vm1, %v4173_v61 }
0x1040   : > { %4625 = vmatpush.msrb.mxu2 %v5285_v2 }
0x1042   : > { %4626 = vmatpush.msrb.mxu2 %v5286_v25 }
0x1047   : > { %5024 = vmatmul.msk.f32.gmra.mxu2 %vm4189_vm1, %v4174_v26 }
0x104f   : > { %5025 = vmatmul.msk.f32.gmra.mxu2 %vm4189_vm1, %v4175_v47 }
0x1057   : > { %5026 = vmatmul.msk.f32.gmra.mxu2 %vm4189_vm1, %v4176_v16 }
0x105f   : > { %5027 = vmatmul.msk.f32.gmra.mxu2 %vm4189_vm1, %v4177_v59 }
0x1067   : > { %5028 = vmatmul.msk.f32.gmra.mxu2 %vm4189_vm1, %v4178_v5 }
0x106f   : > { %5029 = vmatmul.msk.f32.gmra.mxu2 %vm4189_vm1, %v4179_v21  ;;  %v4183_v21 = vld [vmem:[%s8867_s8 + $0x10] sm:$0xff] }
0x1077   : > { %5030 = vmatmul.msk.f32.gmra.mxu2 %vm4189_vm1, %v4180_v52  ;;  %v4187_v52 = vld [vmem:[%s8867_s8 + $0x30] sm:$0xff] }
0x10c2   : > { %v4231_v58 = vpop.f32.mrf.mxu2 }
0x10c3   : > { %v4232_v50 = vadd.f32 %v4231_v58, %v4181_v35 }
0x10ca   : > { %v4234_v13 = vpop.f32.mrf.mxu2 }
0x10cb   : > { %v4235_v26 = vadd.f32 %v4234_v13, %v4182_v8 }
0x10d2   : > { %v4237_v56 = vpop.f32.mrf.mxu2 }
0x10da   : > { %v4240_v19 = vpop.f32.mrf.mxu2 }
0x10e2   : > { %v4243_v34 = vpop.f32.mrf.mxu2 }
0x10e3   : > { %v4244_v49 = vadd.f32 %v4243_v34, %v4185_v12 }
0x10e5   : > { %v4255_v62 = vmax.f32 %v4232_v50, %v4244_v49 }
0x10e7   : > { %v4259_v24 = vsub.f32 %v4232_v50, %v4255_v62  ;;  %v4271_v41 = vsub.f32 %v4244_v49, %v4255_v62  ;;  %v4238_v50 = vadd.f32 %v4237_v56, %v4183_v21 }
0x10e9   : > { %v4263_v61 = vmul.f32 1.442695, %v4259_v24  ;;  %v4275_v2 = vmul.f32 1.442695, %v4271_v41 }
0x10ea   : > { %v4246_v25 = vpop.f32.mrf.mxu2 }
0x10eb   : > { %5253 = vpow2.f32 %v4263_v61  ;;  %v4247_v47 = vadd.f32 %v4246_v25, %v4186_v45  ;;  %v4184_v45 = vld [vmem:[%s8867_s8 + $0x18] sm:$0xff] }
0x10ec   : > { %5255 = vpow2.f32 %v4275_v2  ;;  %v4188_v61 = vld [vmem:[%s8867_s8 + $0x38] sm:$0xff] }
0x10ed   : > { %v4256_v16 = vmax.f32 %v4235_v26, %v4247_v47 }
0x10ef   : > { %v4260_v59 = vsub.f32 %v4235_v26, %v4256_v16  ;;  %v4272_v5 = vsub.f32 %v4247_v47, %v4256_v16 }
0x10f1   : > { %v5254_v58 = vpop.eup %5253  ;;  %v4265_v35 = vmul.f32 1.442695, %v4260_v59  ;;  %v4277_v12 = vmul.f32 1.442695, %v4272_v5  ;;  %v4241_v59 = vadd.f32 %v4240_v19, %v4184_v45 }
0x10f2   : > { %v8589_v34 = vpop.eup %5255  ;;  %v4249_v13 = vpop.f32.mrf.mxu2 }
0x10f3   : > { %v4283_v49 = vadd.f32 %v8589_v34, %v5254_v58  ;;  %5257 = vpow2.f32 %v4265_v35  ;;  %v4250_v62 = vadd.f32 %v4249_v13, %v4187_v52 }
0x10f4   : > { %5259 = vpow2.f32 %v4277_v12 }
0x10f5   : > { %5261 = vrcp.f32 %v4283_v49  ;;  %v4257_v24 = vmax.f32 %v4238_v50, %v4250_v62  ;;  %v4296_v38 = vand.u32 2147483647, %v4283_v49  ;;  %vm4292_vm3 = vweird.f32 %v4283_v49 }
0x10f7   : > { %v4261_v41 = vsub.f32 %v4238_v50, %v4257_v24  ;;  %v4273_v8 = vsub.f32 %v4250_v62, %v4257_v24  ;;  %v4298_v24 = vand.u32 2147483648, %v4283_v49  ;;  %vm4297_vm5 = vcmp.eq.f32.partialorder %v4296_v38, 8.507059e+37 }
0x10f9   : > { %v5258_v2 = vpop.eup %5257  ;;  %v4267_v25 = vmul.f32 1.442695, %v4261_v41  ;;  %v4279_v56 = vmul.f32 1.442695, %v4273_v8 }
0x10fa   : > { %v5260_v26 = vpop.eup %5259  ;;  %v4252_v47 = vpop.f32.mrf.mxu2 }
0x10fb   : > { %v5262_v16 = vpop.eup %5261  ;;  %v4284_v5 = vadd.f32 %v5260_v26, %v5258_v2  ;;  %5263 = vpow2.f32 %v4267_v25  ;;  %v4253_v21 = vadd.f32 %v4252_v47, %v4188_v61 }
0x10fc   : > { %5265 = vpow2.f32 %v4279_v56  ;;  %v4288_v52 = vmul.f32 %v5262_v16, %v4283_v49  ;;  %vm4293_vm2 = vweird.f32 %v5262_v16  ;;  %v4299_v56 = vor.u32 1.1754944e-38, %v4298_v24 }
0x10fd   : > { %5267 = vrcp.f32 %v4284_v5  ;;  %v4258_v35 = vmax.f32 %v4241_v59, %v4253_v21  ;;  %vm4294_vm4 = vmor %vm4292_vm3, %vm4293_vm2  ;;  %vm4307_vm7 = vweird.f32 %v4284_v5 }
0x10fe   : > { %v4289_v12 = vsub.f32 1.0, %v4288_v52 }
0x10ff   : > { %v4262_v13 = vsub.f32 %v4241_v59, %v4258_v35  ;;  %v4274_v50 = vsub.f32 %v4253_v21, %v4258_v35  ;;  %v4313_v21 = vand.u32 2147483648, %v4284_v5 }
0x1100   : > { %v4290_v62 = vmul.f32 %v5262_v16, %v4289_v12  ;;  %v4311_v12 = vand.u32 2147483647, %v4284_v5 }
0x1101   : > { %v5264_v27 = vpop.eup %5263  ;;  %v4269_v41 = vmul.f32 1.442695, %v4262_v13  ;;  %v4281_v8 = vmul.f32 1.442695, %v4274_v50 }
0x1102   : > { %v5266_v6 = vpop.eup %5265  ;;  %v4291_v63 = vadd.f32 %v5262_v16, %v4290_v62  ;;  %vm4312_vm9 = vcmp.eq.f32.partialorder %v4311_v12, 8.507059e+37 }
0x1103   : > { %v5268_v19 = vpop.eup %5267  ;;  %v4285_v45 = vadd.f32 %v5266_v6, %v5264_v27  ;;  %5269 = vpow2.f32 %v4269_v41 }
0x1104   : > { %5271 = vpow2.f32 %v4281_v8  ;;  %v4303_v61 = vmul.f32 %v5268_v19, %v4284_v5  ;;  %v4295_v25 = vsel %vm4294_vm4, %v5262_v16, %v4291_v63  ;;  %vm4308_vm6 = vweird.f32 %v5268_v19 }
0x1105   : > { %5273 = vrcp.f32 %v4285_v45  ;;  %v4300_v59 = vsel %vm4297_vm5, %v4299_v56, %v4295_v25  ;;  %vm4309_vm8 = vmor %vm4307_vm7, %vm4308_vm6  ;;  %v4314_v8 = vor.u32 1.1754944e-38, %v4313_v21  ;;  %v4328_v25 = vand.u32 2147483648, %v4285_v45 }
0x1106   : > { %v4304_v47 = vsub.f32 1.0, %v4303_v61  ;;  %v8598_v52 = vmul.f32 %v5254_v58, %v4300_v59  ;;  %vm4322_vm11 = vweird.f32 %v4285_v45 }
0x1108   : > { %v4305_v35 = vmul.f32 %v5268_v19, %v4304_v47  ;;  %v4326_v47 = vand.u32 2147483647, %v4285_v45 }
0x1109   : > { %v5270_v13 = vpop.eup %5269 }
0x110a   : > { %v5272_v49 = vpop.eup %5271  ;;  %v4306_v50 = vadd.f32 %v5268_v19, %v4305_v35  ;;  %v4329_v35 = vor.u32 1.1754944e-38, %v4328_v25  ;;  %vm4327_vm13 = vcmp.eq.f32.partialorder %v4326_v47, 8.507059e+37 }
0x110b   : > { %v5274_v62 = vpop.eup %5273  ;;  %v4286_v41 = vadd.f32 %v5272_v49, %v5270_v13 }
0x110c   : > { %v4310_v63 = vsel %vm4309_vm8, %v5268_v19, %v4306_v50  ;;  %v4318_v16 = vmul.f32 %v5274_v62, %v4285_v45  ;;  %vm4323_vm10 = vweird.f32 %v5274_v62 }
0x110d   : > { %5275 = vrcp.f32 %v4286_v41  ;;  %v4315_v38 = vsel %vm4312_vm9, %v4314_v8, %v4310_v63  ;;  %vm4324_vm12 = vmor %vm4322_vm11, %vm4323_vm10  ;;  %v4341_v63 = vand.u32 2147483647, %v4286_v41  ;;  %vm4337_vm2 = vweird.f32 %v4286_v41 }
0x110e   : > { %v4352_v24 = vmul.f32 %v5260_v26, %v4315_v38  ;;  %v4319_v61 = vsub.f32 1.0, %v4318_v16  ;;  %v4348_v58 = vmul.f32 %v5258_v2, %v4315_v38  ;;  %v4343_v26 = vand.u32 2147483648, %v4286_v41 }
0x110f   : > { %vm4342_vm4 = vcmp.eq.f32.partialorder %v4341_v63, 8.507059e+37 }
0x1110   : > { %4394 = vperm.xlu1 %5222, %v4352_v24   ;;  %v4320_v56 = vmul.f32 %v5274_v62, %v4319_v61  ;;  %v4344_v38 = vor.u32 1.1754944e-38, %v4343_v26 }
0x1112   : > { %v4321_v1 = vadd.f32 %v5274_v62, %v4320_v56 }
0x1113   : > { %v5276_v5 = vpop.eup %5275 }
0x1114   : > { %v4325_v10 = vsel %vm4324_vm12, %v5274_v62, %v4321_v1  ;;  %v4333_v19 = vmul.f32 %v5276_v5, %v4286_v41  ;;  %vm4338_vm14 = vweird.f32 %v5276_v5  ;;  %v4351_v1 = vmul.f32 %v8589_v34, %v4300_v59 }
0x1115   : > { %v4330_v21 = vsel %vm4327_vm13, %v4329_v35, %v4325_v10  ;;  %vm4339_vm3 = vmor %vm4337_vm2, %vm4338_vm14 }
0x1116   : > { %v4353_v12 = vmul.f32 %v5266_v6, %v4330_v21  ;;  %v4334_v50 = vsub.f32 1.0, %v4333_v19  ;;  %v4349_v8 = vmul.f32 %v5264_v27, %v4330_v21 }
0x1118   : > { %4399 = vperm.xlu0 %5219, %v4353_v12   ;;  %v4335_v2 = vmul.f32 %v5276_v5, %v4334_v50  ;;  %v9408_v12 = vmax.f32 %v8382_v11, 0.0 }
0x111a   : > { %v4336_v16 = vadd.f32 %v5276_v5, %v4335_v2 }
0x111c   : > { %v4340_v45 = vsel %vm4339_vm3, %v5276_v5, %v4336_v16 }
0x111d   : > { %v4345_v24 = vsel %vm4342_vm4, %v4344_v38, %v4340_v45 }
0x111e   : > { %v4354_v61 = vmul.f32 %v5272_v49, %v4345_v24  ;;  %v4350_v10 = vmul.f32 %v5270_v13, %v4345_v24 }
0x1120   : > { %4404 = vperm.xlu2 %5221, %v4354_v61   ;;  %4389 = vperm.xlu0 %5219, %v4351_v1  }
0x1128   : > { %4372 = vperm.xlu2 %5221, %v4350_v10  }
0x117a   : > { %v4405_v6 = vpop.permute.xlu2 %4404 }
0x117b   : > { %v4416_v27 = vmul.f32 %v4405_v6, %v4033_v54  ;;  %v4417_v62 = vmul.f32 %v4405_v6, %v4034_v57  ;;  %v4418_v41 = vmul.f32 %v4405_v6, %v4035_v0  ;;  %v4490_v57 = vld [vmem:[%s8868_s9 + $0x18] sm:$0xff] }
0x117d   : > { %4453 = vrot.lane.b32.xlu2 %v4418_v41, %s5334_s24  ;;  %4449 = vrot.lane.b32.xlu1 %v4416_v27, %s5334_s24 }
0x117e   : > { %4451 = vrot.lane.b32.xlu0 %v4417_v62, %s5334_s24 }
0x1182   : > { %v4395_v17 = vpop.permute.xlu1 %4394 }
0x1183   : > { %v4410_v0 = vmul.f32 %v4395_v17, %v4027_v43  ;;  %v4412_v44 = vmul.f32 %v4395_v17, %v4029_v3  ;;  %v4411_v28 = vmul.f32 %v4395_v17, %v4028_v55  ;;  %v9407_v55 = vmax.f32 %v8275_v14, 0.0  ;;  %v4523_v14 = vld [vmem:[%s8869_s10] sm:$0xff] }
0x1185   : > { %4367 = vperm.xlu1 %5222, %v4349_v8  }
0x118a   : > { %v4400_v34 = vpop.permute.xlu0 %4399 }
0x118b   : > { %v4413_v59 = vmul.f32 %v4400_v34, %v4030_v20  ;;  %v4414_v32 = vmul.f32 %v4400_v34, %v4031_v51  ;;  %v4415_v54 = vmul.f32 %v4400_v34, %v9405_v36  ;;  %v4526_v20 = vld [vmem:[%s8869_s10 + $0x18] sm:$0xff] }
0x118d   : > { %4445 = vrot.lane.b32.xlu2 %v4414_v32, %s5334_s24  ;;  %4447 = vrot.lane.b32.xlu1 %v4415_v54, %s5334_s24 }
0x118e   : > { %4443 = vrot.lane.b32.xlu0 %v4413_v59, %s5334_s24 }
0x1192   : > { %v4390_v42 = vpop.permute.xlu0 %4389 }
0x1193   : > { %v4407_v51 = vmul.f32 %v4390_v42, %v4024_v53  ;;  %v4409_v43 = vmul.f32 %v4390_v42, %v9406_v9  ;;  %v4408_v3 = vmul.f32 %v4390_v42, %v9407_v55  ;;  %v4524_v53 = vld [vmem:[%s8869_s10 + $0x8] sm:$0xff]  ;;  %v9411_v42 = vmax.f32 %v8413_v46, 0.0 }
0x1195   : > { %4508 = vperm.xlu2 %5221, %v4490_v57   ;;  %4437 = vrot.lane.b32.xlu1 %v4410_v0, %s5334_s24  ;;  %v9409_v57 = vmax.f32 %v8493_v7, 0.0 }
0x1196   : > { %4362 = vperm.xlu0 %5219, %v4348_v58  }
0x119d   : > { %4441 = vrot.lane.b32.xlu2 %v4412_v44, %s5334_s24  ;;  %4357 = vperm.xlu1 %5222, %v8598_v52   ;;  %v4373_v52 = vpop.permute.xlu2 %4372  ;;  %v9410_v44 = vmax.f32 %v8496_v18, 0.0 }
0x119e   : > { %4439 = vrot.lane.b32.xlu0 %v4411_v28, %s5334_s24  ;;  %v4385_v21 = vmul.f32 %v4373_v52, %v1549_v60  ;;  %v4386_v50 = vmul.f32 %v4373_v52, %v9408_v12 }
0x11a5   : > { %4544 = vperm.xlu2 %5221, %v4526_v20   ;;  %4431 = vrot.lane.b32.xlu1 %v4407_v51, %s5334_s24  ;;  %v9412_v51 = vmax.f32 %v8416_v4, 0.0  ;;  %v9416_v4 = vmax.f32 %v8443_v29, 0.0 }
0x11a6   : > { %4503 = vperm.xlu0 %5219, %v4489_v40  }
0x11ad   : > { %4435 = vrot.lane.b32.xlu2 %v4409_v43, %s5334_s24  ;;  %4498 = vperm.xlu1 %5222, %v4488_v22   ;;  %v9413_v22 = vmax.f32 %v8423_v31, 0.0  ;;  %v9414_v43 = vmax.f32 %v8311_v15, 0.0 }
0x11ae   : > { %4433 = vrot.lane.b32.xlu0 %v4408_v3, %s5334_s24  ;;  %v9415_v3 = vmax.f32 %v8326_v39, 0.0 }
0x11af   : > { %v4384_v55 = vmul.f32 %v4373_v52, %v9414_v43  ;;  %v4853_v43 = vld [vmem:[%s8872_s13 + $0x10] sm:$0xff] }
0x11b5   : > { %4493 = vperm.xlu2 %5221, %v4487_v37   ;;  %4534 = vperm.xlu1 %5222, %v4524_v53  }
0x11b6   : > { %4539 = vperm.xlu0 %5219, %v4525_v48  }
0x11be   : > { %4529 = vperm.xlu0 %5219, %v4523_v14  }
0x11d7   : > { %v4454_v13 = vpop.permute.xlu2 %4453 }
0x11e7   : > { %v4446_v49 = vpop.permute.xlu2 %4445 }
0x11ef   : > { %v8662_v58 = vpop.permute.xlu2 %4508  ;;  %v4450_v25 = vpop.permute.xlu1 %4449 }
0x11f0   : > { %v4452_v56 = vpop.permute.xlu0 %4451 }
0x11f1   : > { %v4461_v47 = vsel %vm4072_vm15, %v4450_v25, %v4452_v56  ;;  %v4462_v5 = vsel %vm4072_vm15, %v4452_v56, %v4454_v13  ;;  %v4484_v13 = vadd.f32 %v4450_v25, %v4384_v55  ;;  %v4855_v55 = vld [vmem:[%s8872_s13 + $0x20] sm:$0xff] }
0x11f2   : > { %v4485_v8 = vadd.f32 %v4461_v47, %v4385_v21  ;;  %v4486_v26 = vadd.f32 %v4462_v5, %v4386_v50  ;;  %v9417_v50 = vmax.f32 %v8514_v33, 0.0 }
0x11f4   : > { %v4521_v2 = vmul.f32 %v8662_v58, %v4485_v8  ;;  %v4522_v63 = vmul.f32 %v8662_v58, %v4486_v26  ;;  %v9418_v8 = vmax.f32 %v8517_v30, 0.0 }
0x11f7   : > { %v4442_v35 = vpop.permute.xlu2 %4441  ;;  %v4368_v19 = vpop.permute.xlu1 %4367 }
0x11f8   : > { %v4382_v20 = vmul.f32 %v4368_v19, %v9411_v42  ;;  %v4383_v40 = vmul.f32 %v4368_v19, %v9412_v51  ;;  %v4381_v37 = vmul.f32 %v4368_v19, %v9415_v3  ;;  %v4854_v3 = vld [vmem:[%s8872_s13 + $0x18] sm:$0xff] }
0x11ff   : > { %v8672_v16 = vpop.permute.xlu2 %4544  ;;  %v4448_v38 = vpop.permute.xlu1 %4447 }
0x1200   : > { %v4557_v45 = vadd.f32 %v8672_v16, %v4521_v2  ;;  %v4558_v24 = vadd.f32 %v8672_v16, %v4522_v63  ;;  %v4444_v61 = vpop.permute.xlu0 %4443  ;;  %v4460_v54 = vsel %vm4072_vm15, %v4446_v49, %v4448_v38 }
0x1201   : > { %v4459_v17 = vsel %vm4072_vm15, %v4444_v61, %v4446_v49  ;;  %v4483_v18 = vadd.f32 %v4460_v54, %v4383_v40  ;;  %v4481_v46 = vadd.f32 %v4444_v61, %v4381_v37  ;;  %v4582_v37 = vld [vmem:[%s8871_s12 + $0x18] sm:$0xff] }
0x1202   : > { %v4569_v1 = vmax.f32 %v4557_v45, 0.0  ;;  %v4570_v23 = vmax.f32 %v4558_v24, 0.0  ;;  %v4482_v14 = vadd.f32 %v4459_v17, %v4382_v20  ;;  %5034 = vmatmul.msk.f32.vlgmr.msra.gmra.mxu3 %vm527_vm0, %v4582_v37 }
0x1204   : > { %v5223_v60 = vpack.i.bf16 %v4570_v23, %v4569_v1 }
0x1206   : > { %5224 = vrot.lane.b32.xlu2 %v5223_v60, %s5334_s24 }
0x1207   : > { %v4438_v11 = vpop.permute.xlu1 %4437  ;;  %v4436_v7 = vpop.permute.xlu2 %4435 }
0x1208   : > { %v4363_v10 = vpop.permute.xlu0 %4362 }
0x1209   : > { %v4379_v0 = vmul.f32 %v4363_v10, %v9409_v57  ;;  %v4380_v28 = vmul.f32 %v4363_v10, %v9410_v44  ;;  %v4378_v9 = vmul.f32 %v4363_v10, %v9413_v22  ;;  %v4852_v22 = vld [vmem:[%s8872_s13 + $0x8] sm:$0xff] }
0x120f   : > { %v4358_v6 = vpop.permute.xlu1 %4357  ;;  %v4494_v30 = vpop.permute.xlu2 %4493 }
0x1210   : > { %v4440_v27 = vpop.permute.xlu0 %4439  ;;  %v4375_v47 = vmul.f32 %v4358_v6, %v9416_v4  ;;  %v4376_v25 = vmul.f32 %v4358_v6, %v9417_v50  ;;  %v4377_v26 = vmul.f32 %v4358_v6, %v9418_v8  ;;  %v4585_v4 = vld [vmem:[%s8871_s12 + $0x30] sm:$0xff] }
0x1211   : > { %v4457_v32 = vsel %vm4072_vm15, %v4438_v11, %v4440_v27  ;;  %v4458_v36 = vsel %vm4072_vm15, %v4440_v27, %v4442_v35  ;;  %v4478_v35 = vadd.f32 %v4438_v11, %v4378_v9  ;;  %v4520_v11 = vmul.f32 %v8662_v58, %v4484_v13  ;;  %v4851_v9 = vld [vmem:[%s8872_s13] sm:$0xff] }
0x1212   : > { %v4479_v53 = vadd.f32 %v4457_v32, %v4379_v0  ;;  %v4480_v48 = vadd.f32 %v4458_v36, %v4380_v28 }
0x1213   : > { %v4556_v32 = vadd.f32 %v8672_v16, %v4520_v11 }
0x1215   : > { %v4568_v44 = vmax.f32 %v4556_v32, 0.0  ;;  %v4574_v32 = vld [vmem:[%s8870_s11 + $0x18] sm:$0xff] }
0x1217   : > { %v4432_v62 = vpop.permute.xlu1 %4431 }
0x1218   : > { %v4504_v41 = vpop.permute.xlu0 %4503  ;;  %v4475_v38 = vadd.f32 %v4432_v62, %v4375_v47  ;;  %v4586_v47 = vld [vmem:[%s8871_s12 + $0x38] sm:$0xff] }
0x1219   : > { %v4518_v31 = vmul.f32 %v4504_v41, %v4482_v14  ;;  %v4519_v5 = vmul.f32 %v4504_v41, %v4483_v18  ;;  %v4517_v63 = vmul.f32 %v4504_v41, %v4481_v46  ;;  %v4857_v18 = vld [vmem:[%s8872_s13 + $0x30] sm:$0xff] }
0x121a   : > { %v4511_v6 = vmul.f32 %v4494_v30, %v4475_v38 }
0x121f   : > { %v4499_v34 = vpop.permute.xlu1 %4498 }
0x1220   : > { %v4434_v59 = vpop.permute.xlu0 %4433  ;;  %v4515_v49 = vmul.f32 %v4499_v34, %v4479_v53  ;;  %v4516_v56 = vmul.f32 %v4499_v34, %v4480_v48  ;;  %v4514_v27 = vmul.f32 %v4499_v34, %v4478_v35  ;;  %v4583_v53 = vld [vmem:[%s8871_s12 + $0x20] sm:$0xff]  ;;  %v4858_v48 = vld [vmem:[%s8872_s13 + $0x38] sm:$0xff]  ;;  %v4581_v35 = vld [vmem:[%s8871_s12 + $0x10] sm:$0xff] }
0x1221   : > { %v4455_v52 = vsel %vm4072_vm15, %v4432_v62, %v4434_v59  ;;  %v4456_v39 = vsel %vm4072_vm15, %v4434_v59, %v4436_v7  ;;  %v4856_v7 = vld [vmem:[%s8872_s13 + $0x28] sm:$0xff]  ;;  %5035 = vmatmul.msk.f32.gmra.mxu3 %vm527_vm0, %v4583_v53 }
0x1222   : > { %v4476_v61 = vadd.f32 %v4455_v52, %v4376_v25  ;;  %v4477_v1 = vadd.f32 %v4456_v39, %v4377_v26 }
0x1224   : > { %v4512_v41 = vmul.f32 %v4494_v30, %v4476_v61  ;;  %v4513_v62 = vmul.f32 %v4494_v30, %v4477_v1  ;;  %v4575_v30 = vld [vmem:[%s8870_s11 + $0x20] sm:$0xff] }
0x1227   : > { %v4535_v15 = vpop.permute.xlu1 %4534 }
0x1228   : > { %v4540_v19 = vpop.permute.xlu0 %4539  ;;  %v4551_v21 = vadd.f32 %v4535_v15, %v4515_v49  ;;  %v4552_v12 = vadd.f32 %v4535_v15, %v4516_v56  ;;  %v4550_v36 = vadd.f32 %v4535_v15, %v4514_v27  ;;  %v4584_v56 = vld [vmem:[%s8871_s12 + $0x28] sm:$0xff] }
0x1229   : > { %v4554_v2 = vadd.f32 %v4540_v19, %v4518_v31  ;;  %v4555_v29 = vadd.f32 %v4540_v19, %v4519_v5  ;;  %v4553_v33 = vadd.f32 %v4540_v19, %v4517_v63  ;;  %5036 = vmatmul.msk.f32.gmra.mxu3 %vm527_vm0, %v4584_v56  ;;  %v4579_v31 = vld [vmem:[%s8871_s12] sm:$0xff]  ;;  %v4580_v5 = vld [vmem:[%s8871_s12 + $0x8] sm:$0xff] }
0x122a   : > { %v4563_v45 = vmax.f32 %v4551_v21, 0.0  ;;  %v4564_v24 = vmax.f32 %v4552_v12, 0.0  ;;  %v4562_v34 = vmax.f32 %v4550_v36, 0.0  ;;  %5031 = vmatmul.msk.f32.vlgmr.msrb.gmra.mxu2 %vm527_vm0, %v4579_v31  ;;  %5039 = vmatmul.msk.f32.vlgmr.msrb.gmra.mxu0 %vm527_vm0, %v4579_v31 }
0x122b   : > { %v4566_v23 = vmax.f32 %v4554_v2, 0.0  ;;  %v4567_v60 = vmax.f32 %v4555_v29, 0.0  ;;  %v4565_v17 = vmax.f32 %v4553_v33, 0.0  ;;  %v4571_v29 = vld [vmem:[%s8870_s11] sm:$0xff]  ;;  %v4573_v33 = vld [vmem:[%s8870_s11 + $0x10] sm:$0xff] }
0x122c   : > { %v5233_v10 = vpack.i.bf16 %v4564_v24, %v4563_v45 }
0x122d   : > { %v5228_v59 = vpack.i.bf16 %v4567_v60, %v4566_v23  ;;  %v5243_v16 = vpack.i.bf16 %v4565_v17, %v4568_v44 }
0x122e   : > { %5234 = vrot.lane.b32.xlu0 %v5233_v10, %s5334_s24  ;;  %v4572_v10 = vld [vmem:[%s8870_s11 + $0x8] sm:$0xff] }
0x122f   : > { %5229 = vrot.lane.b32.xlu1 %v5228_v59, %s5334_s24 }
0x1230   : > { %v4530_v54 = vpop.permute.xlu0 %4529 }
0x1231   : > { %v4547_v57 = vadd.f32 %v4530_v54, %v4511_v6  ;;  %v4548_v0 = vadd.f32 %v4530_v54, %v4512_v41  ;;  %v4549_v58 = vadd.f32 %v4530_v54, %v4513_v62  ;;  %5037 = vmatmul.msk.f32.gmra.mxu3 %vm527_vm0, %v4585_v4  ;;  %v4576_v6 = vld [vmem:[%s8870_s11 + $0x28] sm:$0xff]  ;;  %v4577_v41 = vld [vmem:[%s8870_s11 + $0x30] sm:$0xff]  ;;  %v4578_v62 = vld [vmem:[%s8870_s11 + $0x38] sm:$0xff] }
0x1232   : > { %5032 = vmatmul.msk.f32.gmra.mxu2 %vm527_vm0, %v4580_v5  ;;  %5040 = vmatmul.msk.f32.gmra.mxu0 %vm527_vm0, %v4580_v5 }
0x1233   : > { %v4559_v28 = vmax.f32 %v4547_v57, 0.0  ;;  %v4560_v42 = vmax.f32 %v4548_v0, 0.0  ;;  %v4561_v20 = vmax.f32 %v4549_v58, 0.0 }
0x1235   : > { %v5238_v51 = vpack.i.bf16 %v4561_v20, %v4560_v42  ;;  %v5248_v40 = vpack.i.bf16 %v4559_v28, %v4562_v34 }
0x1237   : > { %5244 = vrot.lane.b32.xlu1 %v5243_v16, %s5334_s24  ;;  %5239 = vrot.lane.b32.xlu2 %v5238_v51, %s5334_s24 }
0x1238   : > { %5249 = vrot.lane.b32.xlu0 %v5248_v40, %s5334_s24 }
0x1239   : > { %5038 = vmatmul.msk.f32.gmra.mxu3 %vm527_vm0, %v4586_v47 }
0x123a   : > { %5033 = vmatmul.msk.f32.gmra.mxu2 %vm527_vm0, %v4581_v35  ;;  %5041 = vmatmul.msk.f32.gmra.mxu0 %vm527_vm0, %v4581_v35 }
0x123f   : > { %4866 = vperm.xlu1 %5222, %v4852_v22   ;;  %4861 = vperm.xlu2 %5221, %v4851_v9  }
0x1240   : > { %4871 = vperm.xlu0 %5219, %v4853_v43  }
0x1242   : > { %5042 = vmatmul.msk.f32.gmra.mxu0 %vm527_vm0, %v4582_v37 }
0x1247   : > { %4881 = vperm.xlu1 %5222, %v4855_v55   ;;  %4876 = vperm.xlu2 %5221, %v4854_v3  }
0x1248   : > { %4886 = vperm.xlu0 %5219, %v4856_v7  }
0x124a   : > { %5043 = vmatmul.msk.f32.gmra.mxu0 %vm527_vm0, %v4583_v53 }
0x124f   : > { %4896 = vperm.xlu1 %5222, %v4858_v48   ;;  %4891 = vperm.xlu2 %5221, %v4857_v18  }
0x1252   : > { %5044 = vmatmul.msk.f32.gmra.mxu0 %vm527_vm0, %v4584_v56 }
0x125a   : > { %5045 = vmatmul.msk.f32.gmra.mxu0 %vm527_vm0, %v4585_v4 }
0x1260   : > { %v5225_v14 = vpop.permute.xlu2 %5224 }
0x1261   : > { %v5227_v13 = vunpack.i.h.bf16 %v5225_v14  ;;  %v5226_v46 = vunpack.i.l.bf16 %v5225_v14 }
0x1262   : > { %5046 = vmatmul.msk.f32.gmra.mxu0 %vm527_vm0, %v4586_v47 }
0x1263   : > { %v4736_v49 = vsel %vm4072_vm15, %v5226_v46, %v5227_v13 }
0x1264   : > { %4822 = vmatpush.msrb.mxu3 %v4736_v49 }
0x1285   : > { %v4637_v36 = vpop.f32.mrf.mxu3 }
0x1291   : > { %v5240_v52 = vpop.permute.xlu2 %5239 }
0x1292   : > { %v5242_v25 = vunpack.i.h.bf16 %v5240_v52  ;;  %v5241_v8 = vunpack.i.l.bf16 %v5240_v52 }
0x1294   : > { %v4730_v63 = vsel %vm4072_vm15, %v5241_v8, %v5242_v25 }
0x1299   : > { %v4862_v20 = vpop.permute.xlu2 %4861 }
0x12a0   : > { %v5235_v15 = vpop.permute.xlu0 %5234 }
0x12a1   : > { %v5230_v39 = vpop.permute.xlu1 %5229  ;;  %v5237_v19 = vunpack.i.h.bf16 %v5235_v15  ;;  %v5236_v21 = vunpack.i.l.bf16 %v5235_v15 }
0x12a2   : > { %v5232_v12 = vunpack.i.h.bf16 %v5230_v39  ;;  %v5231_v50 = vunpack.i.l.bf16 %v5230_v39 }
0x12a3   : > { %v4732_v2 = vsel %vm4072_vm15, %v5236_v21, %v5237_v19 }
0x12a4   : > { %v4734_v26 = vsel %vm4072_vm15, %v5231_v50, %v5232_v12  ;;  %v8822_v54 = vpop.f32.mrf.mxu3 }
0x12a5   : > { %4823 = vmatpush.msrb.mxu3 %v4734_v26 }
0x12a7   : > { %4824 = vmatpush.msrb.mxu3 %v4732_v2  ;;  %v4669_v0 = vpop.f32.mrf.mxu0 }
0x12a9   : > { %v5245_v38 = vpop.permute.xlu1 %5244  ;;  %4825 = vmatpush.msrb.mxu3 %v4730_v63 }
0x12aa   : > { %v5250_v45 = vpop.permute.xlu0 %5249  ;;  %v5247_v24 = vunpack.i.h.bf16 %v5245_v38  ;;  %v5246_v61 = vunpack.i.l.bf16 %v5245_v38  ;;  %5055 = vmatmul.msk.f32.vlgmr.msrb.gmra.mxu3 %vm4189_vm1, %v4571_v29 }
0x12ab   : > { %v5251_v1 = vunpack.i.l.bf16 %v5250_v45  ;;  %v5252_v60 = vunpack.i.h.bf16 %v5250_v45 }
0x12ac   : > { %v4735_v23 = vsel %vm4072_vm15, %v5246_v61, %v5226_v46  ;;  %v4733_v11 = vsel %vm4072_vm15, %v5247_v24, %v5231_v50  ;;  %v8824_v17 = vpop.f32.mrf.mxu3 }
0x12ad   : > { %4781 = vmatpush.msrb.mxu1 %v4735_v23  ;;  %v4731_v27 = vsel %vm4072_vm15, %v5251_v1, %v5236_v21  ;;  %v4729_v59 = vsel %vm4072_vm15, %v5252_v60, %v5241_v8  ;;  %v4628_v34 = vpop.f32.mrf.mxu2  ;;  %v4877_v8 = vpop.permute.xlu2 %4876 }
0x12af   : > { %4782 = vmatpush.msrb.mxu1 %v4733_v11  ;;  %v4672_v44 = vpop.f32.mrf.mxu0 }
0x12b1   : > { %4783 = vmatpush.msrb.mxu1 %v4731_v27  ;;  %v4867_v53 = vpop.permute.xlu1 %4866 }
0x12b2   : > { %5056 = vmatmul.msk.f32.gmra.mxu3 %vm4189_vm1, %v4572_v10  ;;  %v4872_v31 = vpop.permute.xlu0 %4871 }
0x12b3   : > { %4784 = vmatpush.msrb.mxu1 %v4729_v59 }
0x12b4   : > { %5047 = vmatmul.msk.f32.vlgmr.msrb.gmra.mxu1 %vm4189_vm1, %v4571_v29  ;;  %v8826_v57 = vpop.f32.mrf.mxu3 }
0x12b5   : > { %v4631_v3 = vpop.f32.mrf.mxu2 }
0x12b7   : > { %v4675_v40 = vpop.f32.mrf.mxu0 }
0x12b9   : > { %v4882_v1 = vpop.permute.xlu1 %4881 }
0x12ba   : > { %5057 = vmatmul.msk.f32.gmra.mxu3 %vm4189_vm1, %v4573_v33 }
0x12bc   : > { %5048 = vmatmul.msk.f32.gmra.mxu1 %vm4189_vm1, %v4572_v10  ;;  %v8828_v58 = vpop.f32.mrf.mxu3 }
0x12bd   : > { %v4634_v5 = vpop.f32.mrf.mxu2 }
0x12bf   : > { %v4678_v46 = vpop.f32.mrf.mxu0 }
0x12c2   : > { %5058 = vmatmul.msk.f32.gmra.mxu3 %vm4189_vm1, %v4574_v32 }
0x12c4   : > { %5049 = vmatmul.msk.f32.gmra.mxu1 %vm4189_vm1, %v4573_v33 }
0x12c7   : > { %v4681_v12 = vpop.f32.mrf.mxu0 }
0x12ca   : > { %5059 = vmatmul.msk.f32.gmra.mxu3 %vm4189_vm1, %v4575_v30 }
0x12cc   : > { %5050 = vmatmul.msk.f32.gmra.mxu1 %vm4189_vm1, %v4574_v32 }
0x12cf   : > { %v4684_v23 = vpop.f32.mrf.mxu0 }
0x12d2   : > { %5060 = vmatmul.msk.f32.gmra.mxu3 %vm4189_vm1, %v4576_v6 }
0x12d4   : > { %5051 = vmatmul.msk.f32.gmra.mxu1 %vm4189_vm1, %v4575_v30 }
0x12da   : > { %5061 = vmatmul.msk.f32.gmra.mxu3 %vm4189_vm1, %v4577_v41 }
0x12dc   : > { %5052 = vmatmul.msk.f32.gmra.mxu1 %vm4189_vm1, %v4576_v6  ;;  %v4887_v6 = vpop.permute.xlu0 %4886 }
0x12e2   : > { %5062 = vmatmul.msk.f32.gmra.mxu3 %vm4189_vm1, %v4578_v62 }
0x12e4   : > { %5053 = vmatmul.msk.f32.gmra.mxu1 %vm4189_vm1, %v4577_v41 }
0x12ec   : > { %5054 = vmatmul.msk.f32.gmra.mxu1 %vm4189_vm1, %v4578_v62 }
0x132d   : > { %v4827_v28 = vpop.f32.mrf.mxu3 }
0x132e   : > { %v4828_v42 = vadd.f32 %v4827_v28, %v4669_v0 }
0x1330   : > { %v4900_v16 = vadd.f32 %v4862_v20, %v4828_v42 }
0x1331   : > { %v4786_v51 = vpop.f32.mrf.mxu1 }
0x1332   : > { %v4916_v22 = vmax.f32 %v4900_v16, 0.0  ;;  %v4787_v9 = vadd.f32 %v4786_v51, %v4628_v34 }
0x1334   : > { %4932 = vst [vmem:[%s8834_s26 + $0x8] sm:$0xff] %v4916_v22  ;;  %v4899_v43 = vadd.f32 %v4862_v20, %v4787_v9  ;;  %v4892_v20 = vpop.permute.xlu2 %4891 }
0x1335   : > { %v4830_v55 = vpop.f32.mrf.mxu3 }
0x1336   : > { %v4915_v37 = vmax.f32 %v4899_v43, 0.0  ;;  %v4831_v7 = vadd.f32 %v4830_v55, %v4672_v44 }
0x1338   : > { %4931 = vst [vmem:[%s8834_s26] sm:$0xff] %v4915_v37  ;;  %v4902_v48 = vadd.f32 %v4867_v53, %v4831_v7  ;;  %v4897_v37 = vpop.permute.xlu1 %4896 }
0x1339   : > { %v4789_v18 = vpop.f32.mrf.mxu1 }
0x133a   : > { %v4918_v14 = vmax.f32 %v4902_v48, 0.0  ;;  %v4790_v13 = vadd.f32 %v4789_v18, %v4631_v3 }
0x133c   : > { %4934 = vst [vmem:[%s8834_s26 + $0x18] sm:$0xff] %v4918_v14  ;;  %v4901_v49 = vadd.f32 %v4867_v53, %v4790_v13 }
0x133d   : > { %v4833_v56 = vpop.f32.mrf.mxu3 }
0x133e   : > { %v4917_v4 = vmax.f32 %v4901_v49, 0.0  ;;  %v4834_v47 = vadd.f32 %v4833_v56, %v4675_v40 }
0x1340   : > { %4933 = vst [vmem:[%s8834_s26 + $0x10] sm:$0xff] %v4917_v4  ;;  %v4904_v35 = vadd.f32 %v4872_v31, %v4834_v47 }
0x1341   : > { %v4792_v15 = vpop.f32.mrf.mxu1 }
0x1342   : > { %v4920_v52 = vmax.f32 %v4904_v35, 0.0  ;;  %v4793_v39 = vadd.f32 %v4792_v15, %v4634_v5 }
0x1344   : > { %4936 = vst [vmem:[%s8834_s26 + $0x28] sm:$0xff] %v4920_v52  ;;  %v4903_v19 = vadd.f32 %v4872_v31, %v4793_v39 }
0x1345   : > { %v4836_v21 = vpop.f32.mrf.mxu3 }
0x1346   : > { %v4919_v50 = vmax.f32 %v4903_v19, 0.0  ;;  %v4837_v25 = vadd.f32 %v4836_v21, %v4678_v46 }
0x1348   : > { %4935 = vst [vmem:[%s8834_s26 + $0x20] sm:$0xff] %v4919_v50  ;;  %v4906_v26 = vadd.f32 %v4877_v8, %v4837_v25 }
0x1349   : > { %v4795_v2 = vpop.f32.mrf.mxu1 }
0x134a   : > { %v4922_v29 = vmax.f32 %v4906_v26, 0.0  ;;  %v4796_v63 = vadd.f32 %v4795_v2, %v4637_v36  ;;  %v4687_v36 = vpop.f32.mrf.mxu0 }
0x134c   : > { %4938 = vst [vmem:[%s8834_s26 + $0x38] sm:$0xff] %v4922_v29  ;;  %v4905_v38 = vadd.f32 %v4877_v8, %v4796_v63 }
0x134d   : > { %v4839_v45 = vpop.f32.mrf.mxu3 }
0x134e   : > { %v4921_v24 = vmax.f32 %v4905_v38, 0.0  ;;  %v4840_v61 = vadd.f32 %v4839_v45, %v4681_v12 }
0x1350   : > { %4937 = vst [vmem:[%s8834_s26 + $0x30] sm:$0xff] %v4921_v24  ;;  %v4908_v60 = vadd.f32 %v4882_v1, %v4840_v61 }
0x1351   : > { %v4798_v11 = vpop.f32.mrf.mxu1 }
0x1352   : > { %v4924_v10 = vmax.f32 %v4908_v60, 0.0  ;;  %v4799_v27 = vadd.f32 %v4798_v11, %v8822_v54  ;;  %v4690_v9 = vpop.f32.mrf.mxu0 }
0x1354   : > { %4940 = vst [vmem:[%s8834_s26 + $0x48] sm:$0xff] %v4924_v10  ;;  %v4907_v59 = vadd.f32 %v4882_v1, %v4799_v27 }
0x1355   : > { %v4842_v33 = vpop.f32.mrf.mxu3 }
0x1356   : > { %v4923_v32 = vmax.f32 %v4907_v59, 0.0  ;;  %v4843_v30 = vadd.f32 %v4842_v33, %v4684_v23 }
0x1358   : > { %4939 = vst [vmem:[%s8834_s26 + $0x40] sm:$0xff] %v4923_v32  ;;  %v4910_v41 = vadd.f32 %v4887_v6, %v4843_v30 }
0x1359   : > { %v4801_v62 = vpop.f32.mrf.mxu1 }
0x135a   : > { %v4926_v0 = vmax.f32 %v4910_v41, 0.0  ;;  %v4802_v44 = vadd.f32 %v4801_v62, %v8824_v17 }
0x135c   : > { %4942 = vst [vmem:[%s8834_s26 + $0x58] sm:$0xff] %v4926_v0  ;;  %v4909_v34 = vadd.f32 %v4887_v6, %v4802_v44 }
0x135d   : > { %v4845_v28 = vpop.f32.mrf.mxu3 }
0x135e   : > { %v4925_v54 = vmax.f32 %v4909_v34, 0.0  ;;  %v4846_v42 = vadd.f32 %v4845_v28, %v4687_v36 }
0x1360   : > { %4941 = vst [vmem:[%s8834_s26 + $0x50] sm:$0xff] %v4925_v54  ;;  %v4912_v16 = vadd.f32 %v4892_v20, %v4846_v42 }
0x1361   : > { %v4804_v51 = vpop.f32.mrf.mxu1 }
0x1362   : > { %v4928_v40 = vmax.f32 %v4912_v16, 0.0  ;;  %v4805_v22 = vadd.f32 %v4804_v51, %v8826_v57 }
0x1364   : > { %4944 = vst [vmem:[%s8834_s26 + $0x68] sm:$0xff] %v4928_v40  ;;  %v4911_v43 = vadd.f32 %v4892_v20, %v4805_v22 }
0x1365   : > { %v4848_v55 = vpop.f32.mrf.mxu3 }
0x1366   : > { %v4927_v17 = vmax.f32 %v4911_v43, 0.0  ;;  %v4849_v3 = vadd.f32 %v4848_v55, %v4690_v9 }
0x1368   : > { %4943 = vst [vmem:[%s8834_s26 + $0x60] sm:$0xff] %v4927_v17  ;;  %v4914_v7 = vadd.f32 %v4897_v37, %v4849_v3 }
0x1369   : > { %v4807_v53 = vpop.f32.mrf.mxu1 }
0x136a   : > { %v4930_v48 = vmax.f32 %v4914_v7, 0.0  ;;  %v4808_v18 = vadd.f32 %v4807_v53, %v8828_v58 }
0x136c   : > { %4946 = vst [vmem:[%s8834_s26 + $0x78] sm:$0xff] %v4930_v48  ;;  %v4913_v14 = vadd.f32 %v4897_v37, %v4808_v18 }
0x136e   : > { %v4929_v13 = vmax.f32 %v4913_v14, 0.0 }
0x1370   : > { %4945 = vst [vmem:[%s8834_s26 + $0x70] sm:$0xff] %v4929_v13 }
0x1371 PF: > { %s25_s18 = sadd.s32 1, %s5293_s18  }
0x1372   : > { %p22_p4 = scmp.ge.s32.totalorder %s25_s18, 4  }
0x1374   :  { %24 = sbr.rel (!%p22_p4) target bundleno = 1 (0x1), region = 114 }

</bundles_post_ra>
